<compile_context>
chip_gen: v7x
topology: tpu7x:2x2x1
jax: 0.10.0
libtpu: 0.0.40
codegen_flags: <defaults>
</compile_context>

<pallas_src>
import numpy as np
import jax
import jax.numpy as jnp
from jax.experimental import pallas as pl
from jax.experimental.pallas import tpu as pltpu


# ----------------------------------------------------------------------------
# Configuration (small synthetic sizes, consistent with the module's __init__)
# ----------------------------------------------------------------------------
FEATURE_VECTOR_SIZE = 16
D_IN = 3
D_OUT = 1
HIDDEN_DIMS = [32, 32]          # `dims` argument of the module
SKIP_IN = ()                    # default in __init__
GEOMETRIC_INIT = True
BIAS_INIT = 1.0
INSIDE_OUTSIDE = False
MULTIRES = 0                    # default -> no positional-embedding branch
DIVIDE_FACTOR = 1.5
USE_GRID_FEATURE = True
NUM_LEVELS = 4
LEVEL_DIM = 2
BASE_SIZE = 4
END_SIZE = 16
LOGMAP = 10                     # 2**10 entries per level (small synthetic tables)
GRID_FEATURE_DIM = NUM_LEVELS * LEVEL_DIM
CLAMP = False                   # default; the 'fine'-name tanh-clamp branch is unused

D_IN_PAD = 16                   # 3 (pts) + 8 (grid feat) zero-padded to 16 -> one K=16 matmul
MAX_TILE_N = 2048
TILE_STEP = 256


def _device_kind():
    try:
        return jax.devices()[0].device_kind.lower()
    except Exception:
        return ""


_KIND = _device_kind()
_IS_V7X = "v7" in _KIND
# bf16 MXU inputs on bf16-native MXUs; keep f32 on v5e/older (no bf16 VALU for casts).
_USE_BF16_MXU = not any(g in _KIND for g in ("v2", "v3", "v4", "v5"))
COMPUTE_DTYPE = jnp.bfloat16 if _USE_BF16_MXU else jnp.float32


def _round_up(x, m):
    return ((x + m - 1) // m) * m


def _pick_tile(n):
    if _IS_V7X and n > TILE_STEP:
        # 2 TensorCores per chip: keep >= 2 grid steps so "parallel" can shard rows.
        tile = _round_up((n + 1) // 2, TILE_STEP)
    else:
        # Single TensorCore (v5e/v6e): one big tile; extra grid steps are pure overhead.
        tile = _round_up(n, TILE_STEP)
    return min(tile, MAX_TILE_N)


# ----------------------------------------------------------------------------
# Softplus(beta=100, threshold=20) -- same formula in kernel and reference
# ----------------------------------------------------------------------------
def _softplus_beta100(x):
    bx = 100.0 * x
    safe = jnp.minimum(bx, 20.0)                    # keep the untaken branch finite
    return jnp.where(bx > 20.0, x, jnp.log(1.0 + jnp.exp(safe)) * 0.01)


# ----------------------------------------------------------------------------
# Pallas kernel: fused decoder MLP, batch-on-lanes layout (h = W @ x)
# ----------------------------------------------------------------------------
def _make_decoder_kernel(part_counts, skip_flags, num_layers, compute_dtype):
    inv_sqrt2 = np.float32(1.0 / np.sqrt(2.0))

    def kernel(*refs):
        x_ref = refs[0]                             # (16, tile_n): [pts; feat; zeros]
        o_ref = refs[-1]                            # (24, tile_n) lane-dense output
        prefs = refs[1:-1]                          # flat [w_parts..., b] per layer

        x_in = x_ref[...].astype(compute_dtype)     # bf16 on v6e/v7x, f32 on v5e
        h = x_in
        p = 0
        for l in range(num_layers):
            nparts = part_counts[l]
            w_refs = prefs[p:p + nparts]
            b = prefs[p + nparts][...]              # (out_dim, 1) f32, lane-broadcast
            p += nparts + 1

            parts = (h, x_in) if skip_flags[l] else (h,)
            acc = jnp.dot(w_refs[0][...], parts[0],
                          preferred_element_type=jnp.float32)
            for xpart, wref in zip(parts[1:], w_refs[1:]):
                acc = acc + jnp.dot(wref[...], xpart,
                                    preferred_element_type=jnp.float32)
            if skip_flags[l]:
                acc = acc * inv_sqrt2               # cat([x, input]) / sqrt(2) before lin
            h = acc + b
            if l < num_layers - 1:
                h = _softplus_beta100(h).astype(compute_dtype)

        o_ref[...] = h.astype(o_ref.dtype)          # 128-lane-dense unmasked stores

    return kernel


def implicit_decoder_pallas(x_slab, layers, *, compute_dtype=COMPUTE_DTYPE, tile_n=None):
    """x_slab: (16, N) f32 transposed input. layers[l] = dict(w_parts, b, skip, ...)."""
    d_in_pad, n = x_slab.shape
    if tile_n is None:
        tile_n = _pick_tile(n)
    if n % tile_n:
        x_slab = jnp.pad(x_slab, ((0, 0), (0, tile_n - n % tile_n)))
    n_pad = x_slab.shape[1]

    operands = [x_slab]
    in_specs = [pl.BlockSpec((d_in_pad, tile_n), lambda i: (0, i))]
    part_counts, skip_flags = [], []
    for layer in layers:
        part_counts.append(len(layer["w_parts"]))
        skip_flags.append(layer["skip"])
        for w in layer["w_parts"]:
            operands.append(w.astype(compute_dtype))               # bf16 MXU inputs
            in_specs.append(pl.BlockSpec(w.shape, lambda i: (0, 0)))   # resident block
        operands.append(layer["b"])                                # f32 bias (out, 1)
        in_specs.append(pl.BlockSpec(layer["b"].shape, lambda i: (0, 0)))
    d_last = layers[-1]["b"].shape[0]                              # padded to mult of 8

    flops = 2 * n_pad * sum(int(w.shape[0]) * int(w.shape[1])
                            for layer in layers for w in layer["w_parts"])
    transc = 2 * n_pad * sum(int(layer["b"].shape[0]) for layer in layers[:-1])
    bytes_acc = (x_slab.size * x_slab.dtype.itemsize
                 + n_pad * d_last * 4
                 + sum(int(op.size) * op.dtype.itemsize for op in operands[1:]))

    out = pl.pallas_call(
        _make_decoder_kernel(tuple(part_counts), tuple(skip_flags),
                             len(layers), compute_dtype),
        out_shape=jax.ShapeDtypeStruct((d_last, n_pad), jnp.float32),
        grid_spec=pltpu.PrefetchScalarGridSpec(
            num_scalar_prefetch=0,
            grid=(n_pad // tile_n,),
            in_specs=in_specs,
            out_specs=pl.BlockSpec((d_last, tile_n), lambda i: (0, i)),
        ),
        compiler_params=pltpu.CompilerParams(
            dimension_semantics=("parallel",),      # shards tiles across TCs on v7x
        ),
        cost_estimate=pl.CostEstimate(flops=flops, transcendentals=transc,
                                      bytes_accessed=bytes_acc),
    )(*operands)
    return out[:, :n]


# ----------------------------------------------------------------------------
# HashEncoder (torch-ngp style multi-level grid), plain JAX, vectorised gathers.
# TODO(synk): HashEncoder is an external CUDA extension not shipped with the module;
#             this re-implementation uses dense indexing for levels whose grid fits the
#             table and a spatial hash otherwise (torch-ngp semantics).  The gather
#             stays in XLA -- Mosaic has no efficient in-kernel gather at this shape.
# ----------------------------------------------------------------------------
_PRIMES = np.array([1, 2654435761, 805459861], dtype=np.uint32)


def hash_grid_encode_t(x, tables, resolutions, table_size):
    """x: (N, 3) already divided by divide_factor.  Returns (NUM_LEVELS*LEVEL_DIM, N),
    row order = level-major / dim-minor (matches concat([lvl0, lvl1, ...], -1).T)."""
    n = x.shape[0]
    xn = jnp.clip((x + 1.0) * 0.5, 0.0, 1.0)                          # (N, 3)
    res_f = jnp.asarray(resolutions, jnp.float32)[:, None, None]      # (L, 1, 1)
    pos = jnp.clip(xn[None, :, :] * res_f, 0.0, res_f - 1e-6)         # (L, N, 3)
    pos0 = jnp.floor(pos)
    frac = pos - pos0
    pos0i = pos0.astype(jnp.uint32)

    offs = np.array([[(c >> d) & 1 for d in range(3)] for c in range(8)],
                    dtype=np.float32)                                  # (8, 3)
    cpos = pos0i[:, :, None, :] + jnp.asarray(offs.astype(np.uint32))[None, None]  # (L,N,8,3)

    n_vert = np.asarray([r + 1 for r in resolutions], dtype=np.uint32)
    use_dense = np.asarray([(r + 1) ** 3 <= table_size for r in resolutions])
    nv = jnp.asarray(n_vert)[:, None, None]                           # (L, 1, 1)
    dense_idx = cpos[..., 0] + cpos[..., 1] * nv + cpos[..., 2] * nv * nv
    hash_idx = ((cpos[..., 0] * jnp.uint32(_PRIMES[0]))
                ^ (cpos[..., 1] * jnp.uint32(_PRIMES[1]))
                ^ (cpos[..., 2] * jnp.uint32(_PRIMES[2]))) & jnp.uint32(table_size - 1)
    idx = jnp.where(jnp.asarray(use_dense)[:, None, None], dense_idx, hash_idx)  # (L,N,8)

    w = jnp.prod(jnp.where(jnp.asarray(offs)[None, None, :, :] == 1.0,
                           frac[:, :, None, :], 1.0 - frac[:, :, None, :]),
                 axis=-1)                                              # (L, N, 8)

    # One batched gather per level (vmap) instead of 32 sequential jnp.take calls.
    vals = jax.vmap(lambda t, i: jnp.take(t, i, axis=0))(
        tables, idx.reshape(NUM_LEVELS, -1).astype(jnp.int32))          # (L, N*8, 2)
    vals = vals.reshape(NUM_LEVELS, n, 8, LEVEL_DIM)
    level_feat = jnp.sum(w[..., None] * vals, axis=2)                  # (L, N, 2)
    return jnp.transpose(level_feat, (0, 2, 1)).reshape(NUM_LEVELS * LEVEL_DIM, n)


# ----------------------------------------------------------------------------
# Deterministic parameter construction (geometric init; weight_norm is an identity
# reparameterization at init so effective weights are used directly).
# With multires == 0 the reference takes the plain geometric-init branch for l == 0.
# ----------------------------------------------------------------------------
def _pad_cols(a, to_cols):
    if a.shape[1] == to_cols:
        return a
    return np.concatenate([a, np.zeros((a.shape[0], to_cols - a.shape[1]), a.dtype)], 1)


def _pad_rows(a, to_rows):
    if a.shape[0] == to_rows:
        return a
    return np.concatenate([a, np.zeros((to_rows - a.shape[0],) + a.shape[1:], a.dtype)], 0)


def build_params(seed=0):
    rng = np.random.default_rng(seed)
    dims = [D_IN + GRID_FEATURE_DIM] + HIDDEN_DIMS + [D_OUT + FEATURE_VECTOR_SIZE]
    d0 = dims[0]
    num_linear = len(dims) - 1

    layers = []
    for l in range(num_linear):
        in_dim = dims[l]
        out_dim = dims[l + 1] - d0 if (l + 1) in SKIP_IN else dims[l + 1]

        if GEOMETRIC_INIT and l == num_linear - 1:
            mean = np.sqrt(np.pi) / np.sqrt(dims[l]) * (-1.0 if INSIDE_OUTSIDE else 1.0)
            w = rng.normal(mean, 1e-4, size=(out_dim, in_dim))
            b = np.full((out_dim,), BIAS_INIT if INSIDE_OUTSIDE else -BIAS_INIT)
        else:
            w = rng.normal(0.0, np.sqrt(2.0) / np.sqrt(out_dim), size=(out_dim, in_dim))
            b = np.zeros((out_dim,))
        w = w.astype(np.float32)
        b = b.astype(np.float32)

        skip = l in SKIP_IN
        if l == 0:
            parts = [_pad_cols(w, D_IN_PAD)]          # zero cols for the padded x_in rows
        elif skip:
            h_dim = in_dim - d0
            parts = [w[:, :h_dim], _pad_cols(w[:, h_dim:], D_IN_PAD)]
        else:
            parts = [w]

        b_k = b
        if l == num_linear - 1:
            # Pad the last layer (17 rows) to a multiple of 8 so the output slab is
            # sublane- and lane-dense; padded rows are all-zero and sliced off outside.
            out_pad = _round_up(out_dim, 8)
            parts = [_pad_rows(p, out_pad) for p in parts]
            b_k = _pad_rows(b, out_pad)

        layers.append(dict(
            w_full=jnp.asarray(w),                    # unpadded, for the reference
            b_full=jnp.asarray(b),
            w_parts=[jnp.asarray(p) for p in parts],  # kernel-ready (padded)
            b=jnp.asarray(b_k[:, None]),              # (out_dim_pad, 1)
            skip=skip))

    table_size = 2 ** LOGMAP
    tables = jnp.asarray(rng.uniform(-1e-4, 1e-4,
                                     size=(NUM_LEVELS, table_size, LEVEL_DIM))
                         .astype(np.float32))
    scale = np.exp2(np.log2(END_SIZE / BASE_SIZE) / max(NUM_LEVELS - 1, 1))
    resolutions = [int(np.ceil(BASE_SIZE * scale ** l - 1e-6)) for l in range(NUM_LEVELS)]
    return layers, tables, resolutions, table_size


# ----------------------------------------------------------------------------
# Full forward (ImplicitNetworkGrid.forward, default config: multires=0, skip_in=(),
# clamp=False, concat_coarse_feature=False, use_grid_feature=True)
# ----------------------------------------------------------------------------
def implicit_network_forward(points, params, compute_dtype=COMPUTE_DTYPE):
    layers, tables, resolutions, table_size = params
    n = points.shape[0]
    pts_t = points.T                                                   # (3, N)
    if USE_GRID_FEATURE:
        feat_t = hash_grid_encode_t(points / DIVIDE_FACTOR, tables, resolutions, table_size)
    else:
        feat_t = jnp.zeros((GRID_FEATURE_DIM, n), points.dtype)
    pad_rows = D_IN_PAD - (D_IN + GRID_FEATURE_DIM)
    x_slab = jnp.concatenate(
        [pts_t, feat_t, jnp.zeros((pad_rows, n), points.dtype)], axis=0)   # (16, N)
    # multires == 0 -> no positional embedding; clamp == False -> no tanh branch.
    out_t = implicit_decoder_pallas(x_slab, layers, compute_dtype=compute_dtype)
    d_true = layers[-1]["w_full"].shape[0]
    return out_t[:d_true].T                                            # (N, 1 + 16)


# Pure-JAX reference of the decoder (mirrors the kernel's compute dtype / f32 accum).
def _decoder_reference(points, feature, layers, compute_dtype=COMPUTE_DTYPE):
    x_in = jnp.concatenate([points, feature], axis=-1)
    h = x_in
    for l, layer in enumerate(layers):
        w = layer["w_full"]
        if layer["skip"]:
            h = jnp.concatenate([h, x_in], axis=-1) / np.sqrt(2.0)
        h = jnp.dot(h.astype(compute_dtype), w.T.astype(compute_dtype),
                    preferred_element_type=jnp.float32) + layer["b_full"]
        if l < len(layers) - 1:
            h = _softplus_beta100(h)
    return h


if __name__ == "__main__":
    params = build_params()

    key = jax.random.PRNGKey(0)
    n_points = 2048                                   # small batch of SDF query points
    points = jax.random.uniform(key, (n_points, D_IN), jnp.float32, -1.0, 1.0)

    fwd = jax.jit(lambda p: implicit_network_forward(p, params))
    out = jax.block_until_ready(fwd(points))

    expected_cols = D_OUT + FEATURE_VECTOR_SIZE
    assert out.shape == (n_points, expected_cols), out.shape
    assert bool(jnp.all(jnp.isfinite(out)))

    # Cross-check the fused Pallas decoder against a plain-JAX reference.
    layers, tables, resolutions, table_size = params
    feat_t = hash_grid_encode_t(points / DIVIDE_FACTOR, tables, resolutions, table_size)
    ref = _decoder_reference(points, feat_t.T, layers)
    np.testing.assert_allclose(np.asarray(out), np.asarray(ref), rtol=2e-2, atol=2e-2)

    print("KERNEL_OK")
</pallas_src>

<mosaic_0001>
module attributes {stable_mosaic.version = 11 : i64} {
  func.func @kernel(%arg0: i32, %arg1: memref<16x2048xf32, #tpu.memory_space<vmem>>, %arg2: memref<32x16xbf16, #tpu.memory_space<vmem>>, %arg3: memref<32x1xf32, #tpu.memory_space<vmem>>, %arg4: memref<32x32xbf16, #tpu.memory_space<vmem>>, %arg5: memref<32x1xf32, #tpu.memory_space<vmem>>, %arg6: memref<24x32xbf16, #tpu.memory_space<vmem>>, %arg7: memref<24x1xf32, #tpu.memory_space<vmem>>, %arg8: memref<24x2048xf32, #tpu.memory_space<vmem>>) attributes {dimension_semantics = [#tpu.dimension_semantics<parallel>], iteration_bounds = array<i64: 1>, scalar_prefetch = 0 : i64, scratch_operands = 0 : i64, tpu.core_type = #tpu.core_type<tc>, window_params = [{transform_indices = @transform_0, window_bounds = array<i64: 16, 2048>}, {pipeline_mode = #tpu.pipeline_mode<synchronous>, transform_indices = @transform_1, window_bounds = array<i64: 32, 16>}, {pipeline_mode = #tpu.pipeline_mode<synchronous>, transform_indices = @transform_2, window_bounds = array<i64: 32, 1>}, {pipeline_mode = #tpu.pipeline_mode<synchronous>, transform_indices = @transform_3, window_bounds = array<i64: 32, 32>}, {pipeline_mode = #tpu.pipeline_mode<synchronous>, transform_indices = @transform_4, window_bounds = array<i64: 32, 1>}, {pipeline_mode = #tpu.pipeline_mode<synchronous>, transform_indices = @transform_5, window_bounds = array<i64: 24, 32>}, {pipeline_mode = #tpu.pipeline_mode<synchronous>, transform_indices = @transform_6, window_bounds = array<i64: 24, 1>}, {transform_indices = @transform_7, window_bounds = array<i64: 24, 2048>}]} {
    %c0 = arith.constant 0 : index
    %c0_0 = arith.constant 0 : index
    %0 = vector.load %arg1[%c0, %c0_0] : memref<16x2048xf32, #tpu.memory_space<vmem>>, vector<16x2048xf32>
    %1 = arith.truncf %0 : vector<16x2048xf32> to vector<16x2048xbf16>
    %c0_1 = arith.constant 0 : index
    %c0_2 = arith.constant 0 : index
    %2 = vector.load %arg3[%c0_1, %c0_2] : memref<32x1xf32, #tpu.memory_space<vmem>>, vector<32x1xf32>
    %c0_3 = arith.constant 0 : index
    %c0_4 = arith.constant 0 : index
    %3 = vector.load %arg2[%c0_3, %c0_4] : memref<32x16xbf16, #tpu.memory_space<vmem>>, vector<32x16xbf16>
    %cst = arith.constant dense<0.000000e+00> : vector<32x2048xf32>
    %4 = tpu.matmul %3, %1, %cst {dimension_numbers = #tpu.dot_dimension_numbers<[1], [0], [0], [1], [0, 0, 1, 1], [], []>} : vector<32x16xbf16>, vector<16x2048xbf16>, vector<32x2048xf32> -> vector<32x2048xf32>
    %5 = vector.broadcast %2 : vector<32x1xf32> to vector<32x2048xf32>
    %6 = arith.addf %4, %5 : vector<32x2048xf32>
    %cst_5 = arith.constant 1.000000e+02 : f32
    %7 = vector.broadcast %cst_5 : f32 to vector<32x2048xf32>
    %8 = arith.mulf %7, %6 : vector<32x2048xf32>
    %cst_6 = arith.constant 2.000000e+01 : f32
    %9 = vector.broadcast %cst_6 : f32 to vector<32x2048xf32>
    %10 = arith.minimumf %8, %9 : vector<32x2048xf32>
    %cst_7 = arith.constant 2.000000e+01 : f32
    %11 = vector.broadcast %cst_7 : f32 to vector<32x2048xf32>
    %12 = arith.cmpf ogt, %8, %11 : vector<32x2048xf32>
    %13 = math.exp %10 : vector<32x2048xf32>
    %cst_8 = arith.constant 1.000000e+00 : f32
    %14 = vector.broadcast %cst_8 : f32 to vector<32x2048xf32>
    %15 = arith.addf %14, %13 : vector<32x2048xf32>
    %16 = math.log %15 : vector<32x2048xf32>
    %cst_9 = arith.constant 0.00999999977 : f32
    %17 = vector.broadcast %cst_9 : f32 to vector<32x2048xf32>
    %18 = arith.mulf %16, %17 : vector<32x2048xf32>
    %19 = arith.select %12, %6, %18 : vector<32x2048xi1>, vector<32x2048xf32>
    %20 = arith.truncf %19 : vector<32x2048xf32> to vector<32x2048xbf16>
    %c0_10 = arith.constant 0 : index
    %c0_11 = arith.constant 0 : index
    %21 = vector.load %arg5[%c0_10, %c0_11] : memref<32x1xf32, #tpu.memory_space<vmem>>, vector<32x1xf32>
    %c0_12 = arith.constant 0 : index
    %c0_13 = arith.constant 0 : index
    %22 = vector.load %arg4[%c0_12, %c0_13] : memref<32x32xbf16, #tpu.memory_space<vmem>>, vector<32x32xbf16>
    %cst_14 = arith.constant dense<0.000000e+00> : vector<32x2048xf32>
    %23 = tpu.matmul %22, %20, %cst_14 {dimension_numbers = #tpu.dot_dimension_numbers<[1], [0], [0], [1], [0, 0, 1, 1], [], []>} : vector<32x32xbf16>, vector<32x2048xbf16>, vector<32x2048xf32> -> vector<32x2048xf32>
    %24 = vector.broadcast %21 : vector<32x1xf32> to vector<32x2048xf32>
    %25 = arith.addf %23, %24 : vector<32x2048xf32>
    %cst_15 = arith.constant 1.000000e+02 : f32
    %26 = vector.broadcast %cst_15 : f32 to vector<32x2048xf32>
    %27 = arith.mulf %26, %25 : vector<32x2048xf32>
    %cst_16 = arith.constant 2.000000e+01 : f32
    %28 = vector.broadcast %cst_16 : f32 to vector<32x2048xf32>
    %29 = arith.minimumf %27, %28 : vector<32x2048xf32>
    %cst_17 = arith.constant 2.000000e+01 : f32
    %30 = vector.broadcast %cst_17 : f32 to vector<32x2048xf32>
    %31 = arith.cmpf ogt, %27, %30 : vector<32x2048xf32>
    %32 = math.exp %29 : vector<32x2048xf32>
    %cst_18 = arith.constant 1.000000e+00 : f32
    %33 = vector.broadcast %cst_18 : f32 to vector<32x2048xf32>
    %34 = arith.addf %33, %32 : vector<32x2048xf32>
    %35 = math.log %34 : vector<32x2048xf32>
    %cst_19 = arith.constant 0.00999999977 : f32
    %36 = vector.broadcast %cst_19 : f32 to vector<32x2048xf32>
    %37 = arith.mulf %35, %36 : vector<32x2048xf32>
    %38 = arith.select %31, %25, %37 : vector<32x2048xi1>, vector<32x2048xf32>
    %39 = arith.truncf %38 : vector<32x2048xf32> to vector<32x2048xbf16>
    %c0_20 = arith.constant 0 : index
    %c0_21 = arith.constant 0 : index
    %40 = vector.load %arg7[%c0_20, %c0_21] : memref<24x1xf32, #tpu.memory_space<vmem>>, vector<24x1xf32>
    %c0_22 = arith.constant 0 : index
    %c0_23 = arith.constant 0 : index
    %41 = vector.load %arg6[%c0_22, %c0_23] : memref<24x32xbf16, #tpu.memory_space<vmem>>, vector<24x32xbf16>
    %cst_24 = arith.constant dense<0.000000e+00> : vector<24x2048xf32>
    %42 = tpu.matmul %41, %39, %cst_24 {dimension_numbers = #tpu.dot_dimension_numbers<[1], [0], [0], [1], [0, 0, 1, 1], [], []>} : vector<24x32xbf16>, vector<32x2048xbf16>, vector<24x2048xf32> -> vector<24x2048xf32>
    %43 = vector.broadcast %40 : vector<24x1xf32> to vector<24x2048xf32>
    %44 = arith.addf %42, %43 : vector<24x2048xf32>
    %c0_25 = arith.constant 0 : index
    %c0_26 = arith.constant 0 : index
    %45 = vector.load %arg8[%c0_25, %c0_26] : memref<24x2048xf32, #tpu.memory_space<vmem>>, vector<24x2048xf32>
    tpu.vector_store %arg8[%c0_25, %c0_26], %44 {strides = array<i32>} : memref<24x2048xf32, #tpu.memory_space<vmem>>, vector<24x2048xf32>,
    return
  }
  func.func @transform_0(%arg0: i32) -> (i32, i32) {
    %c0_i32 = arith.constant 0 : i32
    %c0_i32_0 = arith.constant 0 : i32
    return %c0_i32, %arg0 : i32, i32
  }
  func.func @transform_1(%arg0: i32) -> (i32, i32) {
    %c0_i32 = arith.constant 0 : i32
    %c0_i32_0 = arith.constant 0 : i32
    %c0_i32_1 = arith.constant 0 : i32
    return %c0_i32, %c0_i32_0 : i32, i32
  }
  func.func @transform_2(%arg0: i32) -> (i32, i32) {
    %c0_i32 = arith.constant 0 : i32
    %c0_i32_0 = arith.constant 0 : i32
    %c0_i32_1 = arith.constant 0 : i32
    return %c0_i32, %c0_i32_0 : i32, i32
  }
  func.func @transform_3(%arg0: i32) -> (i32, i32) {
    %c0_i32 = arith.constant 0 : i32
    %c0_i32_0 = arith.constant 0 : i32
    %c0_i32_1 = arith.constant 0 : i32
    return %c0_i32, %c0_i32_0 : i32, i32
  }
  func.func @transform_4(%arg0: i32) -> (i32, i32) {
    %c0_i32 = arith.constant 0 : i32
    %c0_i32_0 = arith.constant 0 : i32
    %c0_i32_1 = arith.constant 0 : i32
    return %c0_i32, %c0_i32_0 : i32, i32
  }
  func.func @transform_5(%arg0: i32) -> (i32, i32) {
    %c0_i32 = arith.constant 0 : i32
    %c0_i32_0 = arith.constant 0 : i32
    %c0_i32_1 = arith.constant 0 : i32
    return %c0_i32, %c0_i32_0 : i32, i32
  }
  func.func @transform_6(%arg0: i32) -> (i32, i32) {
    %c0_i32 = arith.constant 0 : i32
    %c0_i32_0 = arith.constant 0 : i32
    %c0_i32_1 = arith.constant 0 : i32
    return %c0_i32, %c0_i32_0 : i32, i32
  }
  func.func @transform_7(%arg0: i32) -> (i32, i32) {
    %c0_i32 = arith.constant 0 : i32
    %c0_i32_0 = arith.constant 0 : i32
    return %c0_i32, %arg0 : i32, i32
  }
}

</mosaic_0001>

<bundles_post_ra>
// kernel: _lambda_.1
= control target key start
LH: loop header
LB: loop body
LE: loop exit
PB: predicated region body
PF: predicated region fallthrough
CT: control target
= control target key end

     0   :  { %v6055_v3 = vmov 0   ;;  %vm113_vm0 = vcmask 130048   ;;  %s6047_s0 = inlined_call_operand.vmem [shape: f32[16,2048], index: 0, kind: input, shape index: {}]   ;;  %s6048_s1 = inlined_call_operand.vmem [shape: bf16[32,16], index: 1, kind: input, shape index: {}]   ;;  %s6049_s2 = inlined_call_operand.vmem [shape: f32[32,1], index: 2, kind: input, shape index: {}, may-alias: {2,4}]   ;;  %s6050_s4 = inlined_call_operand.vmem [shape: f32[32,1], index: 4, kind: input, shape index: {}, may-alias: {2,4}]   ;;  %s6051_s6 = inlined_call_operand.vmem [shape: f32[24,1], index: 6, kind: input, shape index: {}]   ;;  %s6052_s3 = inlined_call_operand.vmem [shape: bf16[32,32], index: 3, kind: input, shape index: {}]   ;;  %s6053_s5 = inlined_call_operand.vmem [shape: bf16[24,32], index: 5, kind: input, shape index: {}]   ;;  %s6054_s7 = inlined_call_operand.vmem [shape: f32[24,2048], index: 7, kind: output, shape index: {}]  }
   0x1   :  { %v28_v0 = vld [vmem:[%s6047_s0 + $0x8] sm:$0xff]  ;;  %v30_v2 = vld [vmem:[%s6047_s0 + $0x18] sm:$0xff]  ;;  %152 = vmatprep.mubr.bf16.mxu0 %v6055_v3  ;;  %205 = vmatprep.mubr.bf16.mxu1 %v6055_v3  ;;  %v27_v6 = vld [vmem:[%s6047_s0] sm:$0xff] }
   0x2   :  { %v44_v1 = vld [vmem:[%s6047_s0 + $0x88] sm:$0xff]  ;;  %v46_v5 = vld [vmem:[%s6047_s0 + $0x98] sm:$0xff]  ;;  %v43_v7 = vld [vmem:[%s6047_s0 + $0x80] sm:$0xff]  ;;  %2907 = vset.pattern.permute.xlu0 %v6055_v3  ;;  %2908 = vset.pattern.permute.xlu1 %v6055_v3 }
   0x3   :  { %v60_v4 = vpack.c.bf16 %v44_v1, %v28_v0  ;;  %v62_v8 = vpack.c.bf16 %v46_v5, %v30_v2  ;;  %v59_v9 = vpack.c.bf16 %v43_v7, %v27_v6  ;;  %v29_v10 = vld [vmem:[%s6047_s0 + $0x10] sm:$0xff]  ;;  %v3499_v13 = vld [vmem:[%s6048_s1] sm:$0xff]   ;;  %v32_v14 = vld [vmem:[%s6047_s0 + $0x28] sm:$0xff] }
   0x4   :  { %v45_v11 = vld [vmem:[%s6047_s0 + $0x90] sm:$0xff]  ;;  %v48_v15 = vld [vmem:[%s6047_s0 + $0xa8] sm:$0xff]  ;;  %v34_v16 = vld [vmem:[%s6047_s0 + $0x38] sm:$0xff] }
   0x5   :  { %120 = vmatprep.subr.bf16.mxu0 %v60_v4  ;;  %v61_v12 = vpack.c.bf16 %v45_v11, %v29_v10  ;;  %173 = vmatprep.subr.bf16.mxu1 %v62_v8  ;;  %v50_v17 = vld [vmem:[%s6047_s0 + $0xb8] sm:$0xff]  ;;  %v64_v18 = vpack.c.bf16 %v48_v15, %v32_v14  ;;  %v31_v20 = vld [vmem:[%s6047_s0 + $0x20] sm:$0xff]  ;;  %v33_v22 = vld [vmem:[%s6047_s0 + $0x30] sm:$0xff] }
   0x6   :  { %121 = vmatpush1.bf16.msra.mxu0 %v59_v9  ;;  %v66_v19 = vpack.c.bf16 %v50_v17, %v34_v16  ;;  %v47_v21 = vld [vmem:[%s6047_s0 + $0xa0] sm:$0xff]  ;;  %v49_v24 = vld [vmem:[%s6047_s0 + $0xb0] sm:$0xff]  ;;  %v36_v26 = vld [vmem:[%s6047_s0 + $0x48] sm:$0xff] }
   0x7   :  { %174 = vmatpush1.bf16.msra.mxu1 %v61_v12  ;;  %v63_v23 = vpack.c.bf16 %v47_v21, %v31_v20  ;;  %226 = vmatprep.subr.bf16.mxu0 %v64_v18  ;;  %v65_v25 = vpack.c.bf16 %v49_v24, %v33_v22  ;;  %v52_v27 = vld [vmem:[%s6047_s0 + $0xc8] sm:$0xff]  ;;  %v38_v29 = vld [vmem:[%s6047_s0 + $0x58] sm:$0xff]  ;;  %v75_v33 = vld [vmem:[%s6049_s2] sm:$0xff] }
   0x8   :  { %279 = vmatprep.subr.bf16.mxu1 %v66_v19  ;;  %v68_v28 = vpack.c.bf16 %v52_v27, %v36_v26  ;;  %v54_v30 = vld [vmem:[%s6047_s0 + $0xd8] sm:$0xff]  ;;  %v3546_v32 = vld [vmem:[%s6048_s1 + $0x8] sm:$0xff]   ;;  %85 = vperm.xlu0 %2907, %v75_v33   ;;  %v77_v34 = vld [vmem:[%s6049_s2 + $0x10] sm:$0xff] }
   0x9   :  { %2854 = vmatmul.mubr.msk.bf16.vlgmr.msra.gmra.mrb[0].mxu0 %vm113_vm0, %v3499_v13  ;;  %v70_v31 = vpack.c.bf16 %v54_v30, %v38_v29  ;;  %v76_v35 = vld [vmem:[%s6049_s2 + $0x8] sm:$0xff]  ;;  %95 = vperm.xlu1 %2908, %v77_v34   ;;  %v78_v36 = vld [vmem:[%s6049_s2 + $0x18] sm:$0xff]  ;;  %v35_v37 = vld [vmem:[%s6047_s0 + $0x40] sm:$0xff] }
   0xa   :  { %2856 = vmatmul.mubr.msk.bf16.vlgmr.msra.gmra.mrb[0].mxu1 %vm113_vm0, %v3499_v13  ;;  %227 = vmatpush1.bf16.msra.mxu0 %v63_v23  ;;  %v51_v38 = vld [vmem:[%s6047_s0 + $0xc0] sm:$0xff]  ;;  %v37_v39 = vld [vmem:[%s6047_s0 + $0x50] sm:$0xff]  ;;  %v40_v42 = vld [vmem:[%s6047_s0 + $0x68] sm:$0xff] }
   0xb   :  { %280 = vmatpush1.bf16.msra.mxu1 %v65_v25  ;;  %162 = vmatprep.mubr.bf16.mxu0 %v6055_v3  ;;  %v53_v40 = vld [vmem:[%s6047_s0 + $0xd0] sm:$0xff]  ;;  %v1216_v41 = vld [vmem:[%s6050_s4] sm:$0xff]  ;;  %v56_v43 = vld [vmem:[%s6047_s0 + $0xe8] sm:$0xff]  ;;  %v67_v45 = vpack.c.bf16 %v51_v38, %v35_v37 }
   0xc   :  { %215 = vmatprep.mubr.bf16.mxu1 %v6055_v3  ;;  %332 = vmatprep.subr.bf16.mxu0 %v68_v28  ;;  %v1217_v44 = vld [vmem:[%s6050_s4 + $0x8] sm:$0xff]  ;;  %v42_v46 = vld [vmem:[%s6047_s0 + $0x78] sm:$0xff]  ;;  %v69_v48 = vpack.c.bf16 %v53_v40, %v37_v39  ;;  %v72_v49 = vpack.c.bf16 %v56_v43, %v40_v42  ;;  %v1218_v51 = vld [vmem:[%s6050_s4 + $0x10] sm:$0xff] }
   0xd   :  { %385 = vmatprep.subr.bf16.mxu1 %v70_v31  ;;  %90 = vperm.xlu0 %2907, %v76_v35   ;;  %v58_v47 = vld [vmem:[%s6047_s0 + $0xf8] sm:$0xff]  ;;  %v2357_v53 = vld [vmem:[%s6051_s6] sm:$0xff]  ;;  %v2358_v54 = vld [vmem:[%s6051_s6 + $0x8] sm:$0xff] }
   0xe   :  { %100 = vperm.xlu1 %2908, %v78_v36   ;;  %v74_v50 = vpack.c.bf16 %v58_v47, %v42_v46  ;;  %v1219_v52 = vld [vmem:[%s6050_s4 + $0x18] sm:$0xff]  ;;  %v2359_v55 = vld [vmem:[%s6051_s6 + $0x10] sm:$0xff]  ;;  %v39_v56 = vld [vmem:[%s6047_s0 + $0x60] sm:$0xff] }
   0xf   :  { %v55_v57 = vld [vmem:[%s6047_s0 + $0xe0] sm:$0xff]  ;;  %v41_v58 = vld [vmem:[%s6047_s0 + $0x70] sm:$0xff] }
  0x10   :  { %v57_v59 = vld [vmem:[%s6047_s0 + $0xf0] sm:$0xff]  ;;  %v71_v60 = vpack.c.bf16 %v55_v57, %v39_v56 }
  0x11   :  { %2855 = vmatmul.mubr.msk.bf16.gmra.mrb[4].mxu0 %vm113_vm0, %v3546_v32  ;;  %1226 = vperm.xlu0 %2907, %v1216_v41   ;;  %v73_v61 = vpack.c.bf16 %v57_v59, %v41_v58 }
  0x12   :  { %2857 = vmatmul.mubr.msk.bf16.gmra.mrb[4].mxu1 %vm113_vm0, %v3546_v32  ;;  %258 = vmatprep.mubr.bf16.mxu0 %v6055_v3 }
  0x13   :  { %311 = vmatprep.mubr.bf16.mxu1 %v6055_v3  ;;  %1231 = vperm.xlu1 %2908, %v1217_v44  }
  0x15   :  { %1236 = vperm.xlu0 %2907, %v1218_v51  }
  0x17   :  { %1241 = vperm.xlu1 %2908, %v1219_v52  }
  0x19   :  { %2858 = vmatmul.mubr.msk.bf16.vlgmr.msra.gmra.mrb[8].mxu0 %vm113_vm0, %v3499_v13  ;;  %2365 = vperm.xlu0 %2907, %v2357_v53  }
  0x1a   :  { %2860 = vmatmul.mubr.msk.bf16.vlgmr.msra.gmra.mrb[8].mxu1 %vm113_vm0, %v3499_v13  ;;  %333 = vmatpush1.bf16.msra.mxu0 %v67_v45 }
  0x1b   :  { %386 = vmatpush1.bf16.msra.mxu1 %v69_v48  ;;  %268 = vmatprep.mubr.bf16.mxu0 %v6055_v3 }
  0x1c   :  { %321 = vmatprep.mubr.bf16.mxu1 %v6055_v3  ;;  %438 = vmatprep.subr.bf16.mxu0 %v72_v49 }
  0x1d   :  { %491 = vmatprep.subr.bf16.mxu1 %v74_v50  ;;  %2370 = vperm.xlu1 %2908, %v2358_v54  }
  0x1e   :  { %2375 = vperm.xlu0 %2907, %v2359_v55  }
  0x21   :  { %2859 = vmatmul.mubr.msk.bf16.gmra.mrb[12].mxu0 %vm113_vm0, %v3546_v32 }
  0x22   :  { %2861 = vmatmul.mubr.msk.bf16.gmra.mrb[12].mxu1 %vm113_vm0, %v3546_v32  ;;  %364 = vmatprep.mubr.bf16.mxu0 %v6055_v3 }
  0x23   :  { %417 = vmatprep.mubr.bf16.mxu1 %v6055_v3 }
  0x29   :  { %2862 = vmatmul.mubr.msk.bf16.vlgmr.msra.gmra.mrb[16].mxu0 %vm113_vm0, %v3499_v13 }
  0x2a   :  { %2864 = vmatmul.mubr.msk.bf16.vlgmr.msra.gmra.mrb[16].mxu1 %vm113_vm0, %v3499_v13  ;;  %439 = vmatpush1.bf16.msra.mxu0 %v71_v60 }
  0x2b   :  { %492 = vmatpush1.bf16.msra.mxu1 %v73_v61  ;;  %374 = vmatprep.mubr.bf16.mxu0 %v6055_v3 }
  0x2c   :  { %427 = vmatprep.mubr.bf16.mxu1 %v6055_v3 }
  0x31   :  { %2863 = vmatmul.mubr.msk.bf16.gmra.mrb[20].mxu0 %vm113_vm0, %v3546_v32 }
  0x32   :  { %2865 = vmatmul.mubr.msk.bf16.gmra.mrb[20].mxu1 %vm113_vm0, %v3546_v32  ;;  %470 = vmatprep.mubr.bf16.mxu0 %v6055_v3 }
  0x33   :  { %523 = vmatprep.mubr.bf16.mxu1 %v6055_v3 }
  0x39   :  { %2866 = vmatmul.mubr.msk.bf16.vlgmr.msra.gmra.mrb[24].mxu0 %vm113_vm0, %v3499_v13 }
  0x3a   :  { %2868 = vmatmul.mubr.msk.bf16.vlgmr.msra.gmra.mrb[24].mxu1 %vm113_vm0, %v3499_v13  ;;  %480 = vmatprep.mubr.bf16.mxu0 %v6055_v3 }
  0x3b   :  { %533 = vmatprep.mubr.bf16.mxu1 %v6055_v3 }
  0x41   :  { %2867 = vmatmul.mubr.msk.bf16.gmra.mrb[28].mxu0 %vm113_vm0, %v3546_v32 }
  0x42   :  { %2869 = vmatmul.mubr.msk.bf16.gmra.mrb[28].mxu1 %vm113_vm0, %v3546_v32  ;;  %1293 = vmatprep.mubr.bf16.mxu0 %v6055_v3 }
  0x43   :  { %1346 = vmatprep.mubr.bf16.mxu1 %v6055_v3 }
  0x87   :  { %v3659_v62 = vpop.permute.xlu0 %85 }
  0x88   :  { %v3707_v30 = vpop.permute.xlu1 %95 }
  0x8c   :  { %v3661_v63 = vpop.permute.xlu0 %90 }
  0x8d   :  { %v3736_v54 = vpop.permute.xlu1 %100 }
  0xdc   :  { %v154_v0 = vpop.f32.mrb[0].mxu0 }
  0xdd   :  { %v3664_v1 = vadd.f32 %v154_v0, %v3659_v62  ;;  %v207_v2 = vpop.f32.mrb[0].mxu1  ;;  %v156_v4 = vpop.f32.mrb[1].mxu0 }
  0xde   :  { %v3667_v5 = vadd.f32 %v207_v2, %v3659_v62  ;;  %v3670_v6 = vadd.f32 %v156_v4, %v3659_v62  ;;  %v209_v7 = vpop.f32.mrb[1].mxu1  ;;  %v158_v8 = vpop.f32.mrb[2].mxu0 }
  0xdf   :  { %v3673_v9 = vmul.f32 100.0, %v3664_v1  ;;  %v3676_v10 = vadd.f32 %v209_v7, %v3659_v62  ;;  %v3679_v11 = vadd.f32 %v158_v8, %v3661_v63  ;;  %v211_v12 = vpop.f32.mrb[2].mxu1  ;;  %v160_v13 = vpop.f32.mrb[3].mxu0 }
  0xe0   :  { %6254 = vst [vmem:[#allocation2_spill] sm:$0xff] %v3670_v6  ;;  %v3682_v14 = vmul.f32 100.0, %v3667_v5  ;;  %v3685_v15 = vmul.f32 100.0, %v3670_v6  ;;  %v3688_v16 = vadd.f32 %v211_v12, %v3661_v63  ;;  %v213_v17 = vpop.f32.mrb[3].mxu1  ;;  %v3698_v21 = vadd.f32 %v160_v13, %v3661_v63 }
  0xe1   :  { %6255 = vst [vmem:[#allocation3_spill] sm:$0xff] %v3676_v10  ;;  %v608_v18 = vmin.f32 %v3673_v9, 20.0  ;;  %v3692_v19 = vmul.f32 100.0, %v3676_v10  ;;  %v3695_v20 = vmul.f32 100.0, %v3679_v11  ;;  %v3714_v35 = vadd.f32 %v213_v17, %v3661_v63 }
  0xe2   :  { %6256 = vst [vmem:[#allocation4_spill] sm:$0xff] %v3685_v15  ;;  %6258 = vst [vmem:[#allocation6_spill] sm:$0xff] %v3698_v21  ;;  %v610_v22 = vmin.f32 %v3682_v14, 20.0  ;;  %v609_v23 = vmin.f32 %v3685_v15, 20.0  ;;  %v3705_v29 = vmul.f32 100.0, %v3688_v16  ;;  %v3710_v32 = vmul.f32 100.0, %v3698_v21 }
  0xe3   :  { %6257 = vst [vmem:[#allocation5_spill] sm:$0xff] %v3692_v19  ;;  %v736_v24 = vmul.f32 1.442695, %v608_v18  ;;  %v611_v25 = vmin.f32 %v3692_v19, 20.0  ;;  %v624_v26 = vmin.f32 %v3695_v20, 20.0  ;;  %6260 = vst [vmem:[#allocation8_spill] sm:$0xff] %v3714_v35 }
  0xe4   :  { %v740_v27 = vmul.f32 1.442695, %v610_v22  ;;  %v738_v28 = vmul.f32 1.442695, %v609_v23  ;;  %6259 = vst [vmem:[#allocation7_spill] sm:$0xff] %v3710_v32  ;;  %v164_v33 = vpop.f32.mrb[4].mxu0 }
  0xe5   :  { %2915 = vpow2.f32 %v736_v24  ;;  %v768_v31 = vmul.f32 1.442695, %v624_v26  ;;  %v626_v34 = vmin.f32 %v3705_v29, 20.0  ;;  %v217_v36 = vpop.f32.mrb[4].mxu1  ;;  %v166_v37 = vpop.f32.mrb[5].mxu0  ;;  %v625_v39 = vmin.f32 %v3710_v32, 20.0 }
  0xe6   :  { %2917 = vpow2.f32 %v740_v27  ;;  %v742_v38 = vmul.f32 1.442695, %v611_v25  ;;  %v3718_v40 = vadd.f32 %v164_v33, %v3707_v30  ;;  %v219_v41 = vpop.f32.mrb[5].mxu1  ;;  %v168_v42 = vpop.f32.mrb[6].mxu0  ;;  %v3721_v44 = vadd.f32 %v217_v36, %v3707_v30 }
  0xe7   :  { %2919 = vpow2.f32 %v738_v28  ;;  %v772_v43 = vmul.f32 1.442695, %v626_v34  ;;  %v221_v45 = vpop.f32.mrb[6].mxu1  ;;  %v170_v46 = vpop.f32.mrb[7].mxu0  ;;  %v3724_v47 = vmul.f32 100.0, %v3714_v35  ;;  %v3730_v49 = vadd.f32 %v166_v37, %v3707_v30 }
  0xe8   :  { %2921 = vpow2.f32 %v768_v31  ;;  %v3727_v48 = vmul.f32 100.0, %v3718_v40  ;;  %v223_v50 = vpop.f32.mrb[7].mxu1  ;;  %v770_v51 = vmul.f32 1.442695, %v625_v39  ;;  %v3733_v52 = vmul.f32 100.0, %v3721_v44 }
  0xe9   :  { %6261 = vst [vmem:[#allocation9_spill] sm:$0xff] %v3724_v47  ;;  %6262 = vst [vmem:[#allocation10_spill] sm:$0xff] %v3730_v49  ;;  %2923 = vpow2.f32 %v772_v43  ;;  %v3740_v56 = vmul.f32 100.0, %v3730_v49  ;;  %v3743_v57 = vadd.f32 %v219_v41, %v3707_v30  ;;  %v627_v59 = vmin.f32 %v3724_v47, 20.0 }
  0xea   :  { %2925 = vpow2.f32 %v742_v38  ;;  %v640_v53 = vmin.f32 %v3727_v48, 20.0  ;;  %v642_v55 = vmin.f32 %v3733_v52, 20.0  ;;  %v3747_v61 = vadd.f32 %v168_v42, %v3736_v54 }
  0xeb   :  { %6263 = vst [vmem:[#allocation11_spill] sm:$0xff] %v3740_v56  ;;  %6264 = vst [vmem:[#allocation12_spill] sm:$0xff] %v3743_v57  ;;  %2927 = vpow2.f32 %v770_v51  ;;  %v3752_v7 = vadd.f32 %v221_v45, %v3736_v54  ;;  %v3759_v17 = vmul.f32 100.0, %v3743_v57  ;;  %v641_v26 = vmin.f32 %v3740_v56, 20.0 }
  0xec   :  { %v260_v58 = vpop.f32.mrb[8].mxu0  ;;  %v800_v60 = vmul.f32 1.442695, %v640_v53  ;;  %v804_v4 = vmul.f32 1.442695, %v642_v55  ;;  %v3762_v18 = vmul.f32 100.0, %v3747_v61  ;;  %v3772_v33 = vadd.f32 %v170_v46, %v3736_v54 }
  0xed   :  { %v313_v0 = vpop.f32.mrb[8].mxu1  ;;  %v3749_v2 = vpop.f32.mrb[9].mxu0  ;;  %6265 = vst [vmem:[#allocation13_spill] sm:$0xff] %v3759_v17  ;;  %v774_v31 = vmul.f32 1.442695, %v627_v59  ;;  %v3776_v37 = vmul.f32 100.0, %v3752_v7 }
  0xee   :  { %v3754_v8 = vpop.f32.mrb[9].mxu1  ;;  %v3756_v12 = vpop.f32.mrb[10].mxu0  ;;  %2929 = vpow2.f32 %v800_v60  ;;  %6266 = vst [vmem:[#allocation14_spill] sm:$0xff] %v3772_v33  ;;  %v656_v36 = vmin.f32 %v3762_v18, 20.0  ;;  %v643_v39 = vmin.f32 %v3759_v17, 20.0  ;;  %v3782_v55 = vmul.f32 100.0, %v3772_v33 }
  0xef   :  { %v2916_v13 = vpop.eup %2915  ;;  %v3764_v22 = vpop.f32.mrb[10].mxu1  ;;  %2931 = vpow2.f32 %v804_v4  ;;  %v802_v43 = vmul.f32 1.442695, %v641_v26  ;;  %v3821_v33 = vadd.f32 %v3749_v2, %v3659_v62  ;;  %vm672_vm1 = vcmp.gt.f32.partialorder %v3673_v9, 20.0 }
  0xf0   :  { %v3766_v23 = vpop.f32.mrb[11].mxu0  ;;  %v2918_v24 = vpop.eup %2917  ;;  %v864_v25 = vadd.f32 1.0, %v2916_v13  ;;  %6267 = vst [vmem:[#allocation15_spill] sm:$0xff] %v3782_v55  ;;  %v832_v4 = vmul.f32 1.442695, %v656_v36  ;;  %v658_v13 = vmin.f32 %v3776_v37, 20.0 }
  0xf1   :  { %v3769_v27 = vpop.f32.mrb[11].mxu1  ;;  %v866_v28 = vadd.f32 1.0, %v2918_v24  ;;  %v2920_v34 = vpop.eup %2919  ;;  %v3790_v24 = vadd.f32 %v223_v50, %v3736_v54  ;;  %6270 = vst [vmem:[#allocation18_spill] sm:$0xff] %v3821_v33  ;;  %vm674_vm2 = vcmp.gt.f32.partialorder %v3682_v14, 20.0  ;;  %vm688_vm3 = vcmp.gt.f32.partialorder %v3695_v20, 20.0 }
  0xf2   :  { %2933 = vlog2.f32 %v864_v25  ;;  %v2922_v38 = vpop.eup %2921  ;;  %v865_v53 = vadd.f32 1.0, %v2920_v34  ;;  %v3800_v34 = vadd.f32 %v313_v0, %v3659_v62  ;;  %vm690_vm4 = vcmp.gt.f32.partialorder %v3705_v29, 20.0 }
  0xf3   :  { %2935 = vlog2.f32 %v866_v28  ;;  %v2924_v41 = vpop.eup %2923  ;;  %v880_v42 = vadd.f32 1.0, %v2922_v38  ;;  %6268 = vst [vmem:[#allocation16_spill] sm:$0xff] %v3790_v24  ;;  %v806_v28 = vmul.f32 1.442695, %v643_v39  ;;  %v3807_v50 = vmul.f32 100.0, %v3790_v24 }
  0xf4   :  { %v3779_v45 = vpop.f32.mrb[12].mxu0  ;;  %v2926_v51 = vpop.eup %2925  ;;  %v882_v46 = vadd.f32 1.0, %v2924_v41  ;;  %2937 = vpow2.f32 %v774_v31  ;;  %v3797_v31 = vadd.f32 %v260_v58, %v3659_v62  ;;  %v657_v58 = vmin.f32 %v3782_v55, 20.0 }
  0xf5   :  { %v3784_v59 = vpop.f32.mrb[12].mxu1  ;;  %v3786_v60 = vpop.f32.mrb[13].mxu0  ;;  %2939 = vlog2.f32 %v880_v42  ;;  %v867_v42 = vadd.f32 1.0, %v2926_v51  ;;  %6269 = vst [vmem:[#allocation17_spill] sm:$0xff] %v3807_v50  ;;  %v3816_v0 = vmul.f32 100.0, %v3800_v34  ;;  %v659_v55 = vmin.f32 %v3807_v50, 20.0 }
  0xf6   :  { %v3792_v25 = vpop.f32.mrb[13].mxu1  ;;  %v3794_v26 = vpop.f32.mrb[14].mxu0  ;;  %2941 = vlog2.f32 %v882_v46  ;;  %v3813_v39 = vmul.f32 100.0, %v3797_v31  ;;  %v836_v51 = vmul.f32 1.442695, %v658_v13  ;;  %v3829_v13 = vadd.f32 %v3754_v8, %v3659_v62 }
  0xf7   :  { %v3802_v38 = vpop.f32.mrb[14].mxu1  ;;  %v3804_v36 = vpop.f32.mrb[15].mxu0  ;;  %2943 = vpow2.f32 %v802_v43  ;;  %v614_v56 = vmin.f32 %v3816_v0, 20.0  ;;  %vm704_vm5 = vcmp.gt.f32.partialorder %v3727_v48, 20.0  ;;  %vm706_vm6 = vcmp.gt.f32.partialorder %v3733_v52, 20.0 }
  0xf8   :  { %v2928_v41 = vpop.eup %2927  ;;  %v3809_v3 = vpop.f32.mrb[15].mxu1  ;;  %2945 = vlog2.f32 %v865_v53  ;;  %v612_v24 = vmin.f32 %v3813_v39, 20.0  ;;  %6271 = vst [vmem:[#allocation19_spill] sm:$0xff] %v3829_v13  ;;  %vm720_vm7 = vcmp.gt.f32.partialorder %v3762_v18, 20.0  ;;  %vm722_vm8 = vcmp.gt.f32.partialorder %v3776_v37, 20.0 }
  0xf9   :  { %v2930_v46 = vpop.eup %2929  ;;  %2947 = vpow2.f32 %v832_v4  ;;  %v881_v49 = vadd.f32 1.0, %v2928_v41  ;;  %vm676_vm9 = vcmp.gt.f32.partialorder %v3813_v39, 20.0  ;;  %v4059_v37 = vadd.f32 %v3809_v3, %v3736_v54 }
  0xfa   :  { %v2932_v57 = vpop.eup %2931  ;;  %v896_v17 = vadd.f32 1.0, %v2930_v46  ;;  %2949 = vpow2.f32 %v806_v28  ;;  %vm678_vm11 = vcmp.gt.f32.partialorder %v3816_v0, 20.0 }
  0xfb   :  { %v898_v43 = vadd.f32 1.0, %v2932_v57  ;;  %v834_v57 = vmul.f32 1.442695, %v657_v58  ;;  %6307 = vst [vmem:[#allocation55_spill] sm:$0xff] %v4059_v37 }
  0xfc   :  { %v2934_v53 = vpop.eup %2933  ;;  %2951 = vlog2.f32 %v896_v17  ;;  %v3825_v35 = vpop.f32.mrb[16].mxu0  ;;  %v744_v17 = vmul.f32 1.442695, %v612_v24  ;;  %v3846_v24 = vadd.f32 %v3756_v12, %v3661_v63 }
  0xfd   :  { %v2936_v46 = vpop.eup %2935  ;;  %v929_v4 = vmul.f32 0.6931472, %v2934_v53  ;;  %2953 = vlog2.f32 %v867_v42  ;;  %v3831_v28 = vpop.f32.mrb[16].mxu1  ;;  %v748_v53 = vmul.f32 1.442695, %v614_v56  ;;  %v3838_v42 = vmul.f32 100.0, %v3821_v33 }
  0xfe   :  { %v933_v2 = vmul.f32 0.6931472, %v2936_v46  ;;  %2955 = vlog2.f32 %v898_v43  ;;  %v3834_v41 = vpop.f32.mrb[17].mxu0  ;;  %v2938_v50 = vpop.eup %2937  ;;  %v838_v46 = vmul.f32 1.442695, %v659_v55  ;;  %v3854_v33 = vmul.f32 100.0, %v3829_v13 }
  0xff   :  { %2957 = vpow2.f32 %v836_v51  ;;  %6272 = vst [vmem:[#allocation20_spill] sm:$0xff] %v3838_v42  ;;  %v3840_v58 = vpop.f32.mrb[17].mxu1  ;;  %v3842_v8 = vpop.f32.mrb[18].mxu0  ;;  %v1056_v21 = vmul.f32 0.01, %v929_v4  ;;  %v883_v32 = vadd.f32 1.0, %v2938_v50 }
 0x100   :  { %v2940_v10 = vpop.eup %2939  ;;  %2959 = vlog2.f32 %v881_v49  ;;  %v3848_v43 = vpop.f32.mrb[18].mxu1  ;;  %6273 = vst [vmem:[#allocation21_spill] sm:$0xff] %v3854_v33  ;;  %v1058_v55 = vmul.f32 0.01, %v933_v2  ;;  %v613_v15 = vmin.f32 %v3838_v42, 20.0  ;;  %v3868_v2 = vmul.f32 100.0, %v3846_v24 }
 0x101   :  { %v3850_v6 = vpop.f32.mrb[19].mxu0  ;;  %v2942_v56 = vpop.eup %2941  ;;  %v961_v51 = vmul.f32 0.6931472, %v2940_v10  ;;  %2961 = vpow2.f32 %v834_v57  ;;  %v3865_v57 = vsel %vm672_vm1, %v3664_v1, %v1056_v21  ;;  %v3880_v1 = vadd.f32 %v3764_v22, %v3661_v63 }
 0x102   :  { %v3856_v47 = vpop.f32.mrb[19].mxu1  ;;  %v2944_v49 = vpop.eup %2943  ;;  %v965_v12 = vmul.f32 0.6931472, %v2942_v56  ;;  %2963 = vpow2.f32 %v744_v17  ;;  %6275 = vst [vmem:[#allocation23_spill] sm:$0xff] %v3865_v57  ;;  %v628_v20 = vmin.f32 %v3868_v2, 20.0  ;;  %v3916_v42 = vadd.f32 %v3766_v23, %v3661_v63 }
 0x103   :  { %v3859_v4 = vpop.eup %2945  ;;  %v1072_v19 = vmul.f32 0.01, %v961_v51  ;;  %2965 = vpow2.f32 %v748_v53  ;;  %v615_v51 = vmin.f32 %v3854_v33, 20.0  ;;  %v746_v14 = vmul.f32 1.442695, %v613_v15 }
 0x104   :  { %6274 = vst [vmem:[#allocation22_spill] sm:$0xff] %v3859_v4  ;;  %v2948_v10 = vpop.eup %2947  ;;  %v1074_v13 = vmul.f32 0.01, %v965_v12  ;;  %2967 = vpow2.f32 %v838_v46  ;;  %v3870_v56 = vpop.f32.mrb[20].mxu0  ;;  %v3889_v12 = vsel %vm674_vm2, %v3667_v5, %v1058_v55  ;;  %6281 = vst [vmem:[#allocation29_spill] sm:$0xff] %v3916_v42  ;;  %vm692_vm10 = vcmp.gt.f32.partialorder %v3868_v2, 20.0 }
 0x105   :  { %v2950_v17 = vpop.eup %2949  ;;  %v3875_v50 = vsel %vm688_vm3, %v3679_v11, %v1072_v19  ;;  %v912_v53 = vadd.f32 1.0, %v2948_v10  ;;  %v3882_v9 = vpop.f32.mrb[20].mxu1  ;;  %6277 = vst [vmem:[#allocation25_spill] sm:$0xff] %v3889_v12  ;;  %v750_v12 = vmul.f32 1.442695, %v615_v51  ;;  %v4113_v2 = vadd.f32 %v3840_v58, %v3659_v62 }
 0x106   :  { %6276 = vst [vmem:[#allocation24_spill] sm:$0xff] %v3875_v50  ;;  %v3884_v21 = vpop.f32.mrb[21].mxu0  ;;  %v2952_v46 = vpop.eup %2951  ;;  %v3896_v19 = vsel %vm690_vm4, %v3688_v16, %v1074_v13  ;;  %v776_v16 = vmul.f32 1.442695, %v628_v20  ;;  %v3912_v13 = vmul.f32 100.0, %v3880_v1  ;;  %v899_v15 = vadd.f32 1.0, %v2950_v17 }
 0x107   :  { %6278 = vst [vmem:[#allocation26_spill] sm:$0xff] %v3896_v19  ;;  %v3899_v22 = vpop.f32.mrb[21].mxu1  ;;  %v3901_v10 = vpop.f32.mrb[22].mxu0  ;;  %2969 = vlog2.f32 %v912_v53  ;;  %v993_v5 = vmul.f32 0.6931472, %v2952_v46  ;;  %v897_v53 = vadd.f32 1.0, %v2944_v49  ;;  %v3928_v20 = vadd.f32 %v3779_v45, %v3707_v30 }
 0x108   :  { %v3903_v33 = vpop.eup %2953  ;;  %v3907_v55 = vpop.f32.mrb[22].mxu1  ;;  %2971 = vlog2.f32 %v883_v32  ;;  %v3924_v32 = vadd.f32 %v3769_v27, %v3661_v63  ;;  %v630_v4 = vmin.f32 %v3912_v13, 20.0  ;;  %v3932_v49 = vmul.f32 100.0, %v3916_v42  ;;  %6312 = vst [vmem:[#allocation60_spill] sm:$0xff] %v4113_v2 }
 0x109   :  { %6279 = vst [vmem:[#allocation27_spill] sm:$0xff] %v3903_v33  ;;  %v3909_v11 = vpop.f32.mrb[23].mxu0  ;;  %v2956_v29 = vpop.eup %2955  ;;  %2973 = vpow2.f32 %v776_v16  ;;  %v3936_v17 = vadd.f32 %v3784_v59, %v3707_v30  ;;  %v1088_v46 = vmul.f32 0.01, %v993_v5  ;;  %v4129_v58 = vmul.f32 100.0, %v4113_v2 }
 0x10a   :  { %6280 = vst [vmem:[#allocation28_spill] sm:$0xff] %v3909_v11  ;;  %v3918_v57 = vpop.f32.mrb[23].mxu1  ;;  %v2958_v50 = vpop.eup %2957  ;;  %6284 = vst [vmem:[#allocation32_spill] sm:$0xff] %v3924_v32  ;;  %2975 = vpow2.f32 %v746_v14  ;;  %v997_v27 = vmul.f32 0.6931472, %v2956_v29  ;;  %v629_v14 = vmin.f32 %v3932_v49, 20.0 }
 0x10b   :  { %6282 = vst [vmem:[#allocation30_spill] sm:$0xff] %v3918_v57  ;;  %v3920_v19 = vpop.eup %2959  ;;  %v914_v33 = vadd.f32 1.0, %v2958_v50  ;;  %6285 = vst [vmem:[#allocation33_spill] sm:$0xff] %v3932_v49  ;;  %v3947_v11 = vmul.f32 100.0, %v3924_v32  ;;  %vm694_vm12 = vcmp.gt.f32.partialorder %v3912_v13, 20.0 }
 0x10c   :  { %6283 = vst [vmem:[#allocation31_spill] sm:$0xff] %v3920_v19  ;;  %v2962_v23 = vpop.eup %2961  ;;  %v3939_v51 = vpop.f32.mrb[24].mxu0  ;;  %v1090_v32 = vmul.f32 0.01, %v997_v27  ;;  %v778_v49 = vmul.f32 1.442695, %v629_v14 }
 0x10d   :  { %v2964_v50 = vpop.eup %2963  ;;  %2977 = vlog2.f32 %v914_v33  ;;  %6286 = vst [vmem:[#allocation34_spill] sm:$0xff] %v3939_v51  ;;  %v3942_v19 = vpop.f32.mrb[24].mxu1  ;;  %6289 = vst [vmem:[#allocation37_spill] sm:$0xff] %v3947_v11  ;;  %v3950_v33 = vmul.f32 100.0, %v3928_v20 }
 0x10e   :  { %v2966_v45 = vpop.eup %2965  ;;  %v868_v16 = vadd.f32 1.0, %v2964_v50  ;;  %2979 = vpow2.f32 %v750_v12  ;;  %6287 = vst [vmem:[#allocation35_spill] sm:$0xff] %v3942_v19  ;;  %v3944_v42 = vpop.f32.mrb[25].mxu0  ;;  %v780_v12 = vmul.f32 1.442695, %v630_v4  ;;  %v3959_v50 = vmul.f32 100.0, %v3936_v17 }
 0x10f   :  { %6288 = vst [vmem:[#allocation36_spill] sm:$0xff] %v3944_v42  ;;  %v2968_v57 = vpop.eup %2967  ;;  %2981 = vlog2.f32 %v897_v53  ;;  %v870_v59 = vadd.f32 1.0, %v2966_v45  ;;  %v3952_v29 = vpop.f32.mrb[25].mxu1  ;;  %v913_v4 = vadd.f32 1.0, %v2962_v23  ;;  %v644_v19 = vmin.f32 %v3950_v33, 20.0  ;;  %6314 = vst [vmem:[#allocation62_spill] sm:$0xff] %v4129_v58 }
 0x110   :  { %6290 = vst [vmem:[#allocation38_spill] sm:$0xff] %v3952_v29  ;;  %v3954_v5 = vpop.f32.mrb[26].mxu0  ;;  %2983 = vlog2.f32 %v899_v15  ;;  %v3961_v53 = vpop.f32.mrb[26].mxu1  ;;  %v631_v29 = vmin.f32 %v3947_v11, 20.0  ;;  %v3971_v15 = vsel %vm704_vm5, %v3718_v40, %v1088_v46  ;;  %v3980_v40 = vadd.f32 %v3786_v60, %v3707_v30 }
 0x111   :  { %6291 = vst [vmem:[#allocation39_spill] sm:$0xff] %v3954_v5  ;;  %6292 = vst [vmem:[#allocation40_spill] sm:$0xff] %v3961_v53  ;;  %v3963_v45 = vpop.f32.mrb[27].mxu0  ;;  %2985 = vlog2.f32 %v868_v16  ;;  %v3966_v42 = vpop.f32.mrb[27].mxu1  ;;  %v646_v53 = vmin.f32 %v3959_v50, 20.0  ;;  %v915_v16 = vadd.f32 1.0, %v2968_v57  ;;  %v3984_v46 = vadd.f32 %v3792_v25, %v3707_v30 }
 0x112   :  { %6293 = vst [vmem:[#allocation41_spill] sm:$0xff] %v3966_v42  ;;  %v2970_v5 = vpop.eup %2969  ;;  %6294 = vst [vmem:[#allocation42_spill] sm:$0xff] %v3971_v15  ;;  %2987 = vlog2.f32 %v870_v59  ;;  %v782_v14 = vmul.f32 1.442695, %v631_v29  ;;  %v808_v11 = vmul.f32 1.442695, %v644_v19  ;;  %v3997_v60 = vadd.f32 %v3802_v38, %v3736_v54 }
 0x113   :  { %v3975_v51 = vpop.eup %2971  ;;  %v1025_v27 = vmul.f32 0.6931472, %v2970_v5  ;;  %2989 = vpow2.f32 %v780_v12  ;;  %v812_v42 = vmul.f32 1.442695, %v646_v53  ;;  %6295 = vst [vmem:[#allocation43_spill] sm:$0xff] %v3980_v40  ;;  %6296 = vst [vmem:[#allocation44_spill] sm:$0xff] %v3984_v46  ;;  %v3988_v5 = vadd.f32 %v3794_v26, %v3736_v54 }
 0x114   :  { %v2974_v48 = vpop.eup %2973  ;;  %2991 = vpow2.f32 %v778_v49  ;;  %v3990_v57 = vpop.f32.mrb[28].mxu0  ;;  %v3993_v29 = vmul.f32 100.0, %v3980_v40  ;;  %v4009_v53 = vmul.f32 100.0, %v3984_v46  ;;  %v4030_v46 = vsel %vm706_vm6, %v3721_v44, %v1090_v32 }
 0x115   :  { %v1104_v23 = vmul.f32 0.01, %v1025_v27  ;;  %v2976_v59 = vpop.eup %2975  ;;  %v884_v19 = vadd.f32 1.0, %v2974_v48  ;;  %2993 = vpow2.f32 %v782_v14  ;;  %v3999_v49 = vpop.f32.mrb[28].mxu1  ;;  %v4012_v27 = vmul.f32 100.0, %v3988_v5 }
 0x116   :  { %6297 = vst [vmem:[#allocation45_spill] sm:$0xff] %v3993_v29  ;;  %v4001_v25 = vpop.f32.mrb[29].mxu0  ;;  %2995 = vpow2.f32 %v808_v11  ;;  %6299 = vst [vmem:[#allocation47_spill] sm:$0xff] %v4009_v53  ;;  %v4014_v14 = vpop.f32.mrb[29].mxu1  ;;  %v4039_v52 = vmul.f32 100.0, %v3997_v60  ;;  %v4043_v44 = vadd.f32 %v3804_v36, %v3736_v54  ;;  %vm708_vm13 = vcmp.gt.f32.partialorder %v3950_v33, 20.0 }
 0x117   :  { %6298 = vst [vmem:[#allocation46_spill] sm:$0xff] %v4001_v25  ;;  %v2978_v12 = vpop.eup %2977  ;;  %v4006_v26 = vsel %vm720_vm7, %v3747_v61, %v1104_v23  ;;  %6300 = vst [vmem:[#allocation48_spill] sm:$0xff] %v4014_v14  ;;  %v4016_v38 = vpop.f32.mrb[30].mxu0  ;;  %2997 = vlog2.f32 %v884_v19  ;;  %v645_v61 = vmin.f32 %v3993_v29, 20.0  ;;  %v647_v14 = vmin.f32 %v4009_v53, 20.0 }
 0x118   :  { %6301 = vst [vmem:[#allocation49_spill] sm:$0xff] %v4016_v38  ;;  %v2980_v48 = vpop.eup %2979  ;;  %v1029_v25 = vmul.f32 0.6931472, %v2978_v12  ;;  %v4021_v18 = vpop.f32.mrb[30].mxu1  ;;  %v869_v38 = vadd.f32 1.0, %v2976_v59  ;;  %2999 = vpow2.f32 %v812_v42  ;;  %6305 = vst [vmem:[#allocation53_spill] sm:$0xff] %v4043_v44 }
 0x119   :  { %6302 = vst [vmem:[#allocation50_spill] sm:$0xff] %v4021_v18  ;;  %v4023_v11 = vpop.f32.mrb[31].mxu0  ;;  %v4025_v23 = vpop.eup %2981  ;;  %3001 = vlog2.f32 %v913_v4  ;;  %v810_v29 = vmul.f32 1.442695, %v645_v61  ;;  %v871_v15 = vadd.f32 1.0, %v2980_v48  ;;  %v4054_v36 = vmul.f32 100.0, %v4043_v44 }
 0x11a   :  { %6303 = vst [vmem:[#allocation51_spill] sm:$0xff] %v4023_v11  ;;  %v4033_v40 = vpop.f32.mrb[31].mxu1  ;;  %v4035_v19 = vpop.eup %2983  ;;  %v1106_v12 = vmul.f32 0.01, %v1029_v25  ;;  %v660_v11 = vmin.f32 %v4012_v27, 20.0  ;;  %3003 = vlog2.f32 %v915_v16  ;;  %v662_v25 = vmin.f32 %v4039_v52, 20.0 }
 0x11b   :  { %6304 = vst [vmem:[#allocation52_spill] sm:$0xff] %v4033_v40  ;;  %v2986_v18 = vpop.eup %2985  ;;  %3005 = vpow2.f32 %v810_v29  ;;  %v814_v32 = vmul.f32 1.442695, %v647_v14  ;;  %6306 = vst [vmem:[#allocation54_spill] sm:$0xff] %v4054_v36  ;;  %vm724_vm14 = vcmp.gt.f32.partialorder %v4012_v27, 20.0  ;;  %vm710_vm15 = vcmp.gt.f32.partialorder %v3959_v50, 20.0 }
 0x11c   :  { %v4048_v42 = vsel %vm722_vm8, %v3752_v7, %v1106_v12  ;;  %v840_v4 = vmul.f32 1.442695, %v660_v11  ;;  %v2988_v59 = vpop.eup %2987  ;;  %3007 = vlog2.f32 %v869_v38  ;;  %v937_v61 = vmul.f32 0.6931472, %v2986_v18 }
 0x11d   :  { %v2990_v48 = vpop.eup %2989  ;;  %v661_v38 = vmin.f32 %v4054_v36, 20.0  ;;  %v844_v11 = vmul.f32 1.442695, %v662_v25  ;;  %v4064_v12 = vmul.f32 100.0, %v4059_v37  ;;  %vm726_vm0 = vcmp.gt.f32.partialorder %v4039_v52, 20.0 }
 0x11e   :  { %3009 = vpow2.f32 %v840_v4  ;;  %v2992_v53 = vpop.eup %2991  ;;  %v886_v7 = vadd.f32 1.0, %v2990_v48  ;;  %v1060_v3 = vmul.f32 0.01, %v937_v61 }
 0x11f   :  { %3011 = vlog2.f32 %v871_v15  ;;  %v2994_v29 = vpop.eup %2993  ;;  %v885_v14 = vadd.f32 1.0, %v2992_v53  ;;  %6308 = vst [vmem:[#allocation56_spill] sm:$0xff] %v4064_v12  ;;  %v4068_v15 = vadd.f32 %v3825_v35, %v3659_v62  ;;  %v4072_v53 = vadd.f32 %v3831_v28, %v3659_v62 }
 0x120   :  { %3013 = vpow2.f32 %v814_v32  ;;  %v2996_v18 = vpop.eup %2995  ;;  %v887_v48 = vadd.f32 1.0, %v2994_v29  ;;  %v663_v25 = vmin.f32 %v4064_v12, 20.0  ;;  %v4096_v40 = vsel %vm676_vm9, %v3797_v31, %v1060_v3 }
 0x121   :  { %3015 = vlog2.f32 %v886_v7  ;;  %v2998_v4 = vpop.eup %2997  ;;  %v900_v16 = vadd.f32 1.0, %v2996_v18  ;;  %v842_v7 = vmul.f32 1.442695, %v661_v38  ;;  %v4078_v35 = vmul.f32 100.0, %v4068_v15  ;;  %6310 = vst [vmem:[#allocation58_spill] sm:$0xff] %v4096_v40 }
 0x122   :  { %v3000_v32 = vpop.eup %2999  ;;  %v969_v44 = vmul.f32 0.6931472, %v2998_v4  ;;  %3017 = vlog2.f32 %v885_v14  ;;  %v4081_v61 = vmul.f32 100.0, %v4072_v53  ;;  %v846_v18 = vmul.f32 1.442695, %v663_v25 }
 0x123   :  { %v4075_v37 = vpop.eup %3001  ;;  %3019 = vlog2.f32 %v900_v16  ;;  %v902_v36 = vadd.f32 1.0, %v3000_v32  ;;  %v4087_v14 = vadd.f32 %v3834_v41, %v3659_v62  ;;  %v941_v4 = vmul.f32 0.6931472, %v2988_v59 }
 0x124   :  { %v4083_v29 = vpop.eup %3003  ;;  %v1076_v28 = vmul.f32 0.01, %v969_v44  ;;  %3021 = vpow2.f32 %v844_v11  ;;  %v616_v16 = vmin.f32 %v4078_v35, 20.0  ;;  %v618_v32 = vmin.f32 %v4081_v61, 20.0 }
 0x125   :  { %6309 = vst [vmem:[#allocation57_spill] sm:$0xff] %v4087_v14  ;;  %v3006_v38 = vpop.eup %3005  ;;  %3023 = vlog2.f32 %v902_v36  ;;  %v4109_v3 = vmul.f32 100.0, %v4087_v14  ;;  %vm680_vm5 = vcmp.gt.f32.partialorder %v4078_v35, 20.0  ;;  %vm682_vm6 = vcmp.gt.f32.partialorder %v4081_v61, 20.0 }
 0x126   :  { %v4091_v12 = vpop.eup %3007  ;;  %v4101_v44 = vsel %vm692_vm10, %v3846_v24, %v1076_v28  ;;  %v901_v41 = vadd.f32 1.0, %v3006_v38  ;;  %3025 = vpow2.f32 %v842_v7  ;;  %v752_v11 = vmul.f32 1.442695, %v616_v16 }
 0x127   :  { %6311 = vst [vmem:[#allocation59_spill] sm:$0xff] %v4101_v44  ;;  %3027 = vpow2.f32 %v846_v18  ;;  %v756_v39 = vmul.f32 1.442695, %v618_v32  ;;  %v4117_v7 = vadd.f32 %v3842_v8, %v3661_v63  ;;  %v4121_v28 = vadd.f32 %v3848_v43, %v3661_v63 }
 0x128   :  { %v3010_v59 = vpop.eup %3009  ;;  %3029 = vlog2.f32 %v887_v48  ;;  %v1062_v18 = vmul.f32 0.01, %v941_v4  ;;  %v617_v38 = vmin.f32 %v4109_v3, 20.0  ;;  %v4126_v16 = vadd.f32 %v3850_v6, %v3661_v63 }
 0x129   :  { %v4106_v25 = vpop.eup %3011  ;;  %v916_v31 = vadd.f32 1.0, %v3010_v59  ;;  %3031 = vlog2.f32 %v901_v41  ;;  %v4132_v8 = vmul.f32 100.0, %v4117_v7  ;;  %v4137_v59 = vmul.f32 100.0, %v4121_v28 }
 0x12a   :  { %v3014_v24 = vpop.eup %3013  ;;  %6313 = vst [vmem:[#allocation61_spill] sm:$0xff] %v4126_v16  ;;  %v754_v4 = vmul.f32 1.442695, %v617_v38  ;;  %v619_v6 = vmin.f32 %v4129_v58, 20.0  ;;  %v4147_v14 = vsel %vm678_vm11, %v3800_v34, %v1062_v18 }
 0x12b   :  { %v3016_v48 = vpop.eup %3015  ;;  %3033 = vlog2.f32 %v916_v31  ;;  %v903_v43 = vadd.f32 1.0, %v3014_v24  ;;  %6316 = vst [vmem:[#allocation64_spill] sm:$0xff] %v4147_v14  ;;  %vm696_vm7 = vcmp.gt.f32.partialorder %v4132_v8, 20.0  ;;  %vm698_vm8 = vcmp.gt.f32.partialorder %v4137_v59, 20.0 }
 0x12c   :  { %v973_v32 = vmul.f32 0.6931472, %v3016_v48  ;;  %3035 = vpow2.f32 %v752_v11  ;;  %v4134_v41 = vpop.eup %3017  ;;  %v632_v11 = vmin.f32 %v4132_v8, 20.0  ;;  %v4142_v48 = vmul.f32 100.0, %v4126_v16  ;;  %v6351_v8 = vld [vmem:[#allocation23_spill] sm:$0xff] }
 0x12d   :  { %3037 = vpow2.f32 %v756_v39  ;;  %v3020_v31 = vpop.eup %3019  ;;  %v634_v39 = vmin.f32 %v4137_v59, 20.0  ;;  %v758_v40 = vmul.f32 1.442695, %v619_v6 }
 0x12e   :  { %v1078_v36 = vmul.f32 0.01, %v973_v32  ;;  %6315 = vst [vmem:[#allocation63_spill] sm:$0xff] %v4142_v48  ;;  %v3022_v2 = vpop.eup %3021  ;;  %3039 = vpow2.f32 %v754_v4  ;;  %v1001_v32 = vmul.f32 0.6931472, %v3020_v31  ;;  %v633_v13 = vmin.f32 %v4142_v48, 20.0 }
 0x12f   :  { %v3024_v24 = vpop.eup %3023  ;;  %v918_v58 = vadd.f32 1.0, %v3022_v2  ;;  %3041 = vlog2.f32 %v903_v43  ;;  %v784_v18 = vmul.f32 1.442695, %v632_v11  ;;  %v4164_v43 = vadd.f32 %v3856_v47, %v3661_v63  ;;  %v6346_v48 = vld [vmem:[#allocation6_spill] sm:$0xff] }
 0x130   :  { %v4152_v38 = vsel %vm694_vm12, %v3880_v1, %v1078_v36  ;;  %v3026_v16 = vpop.eup %3025  ;;  %v788_v1 = vmul.f32 1.442695, %v634_v39  ;;  %v1092_v2 = vmul.f32 0.01, %v1001_v32  ;;  %v1005_v31 = vmul.f32 0.6931472, %v3024_v24 }
 0x131   :  { %6317 = vst [vmem:[#allocation65_spill] sm:$0xff] %v4152_v38  ;;  %v3028_v0 = vpop.eup %3027  ;;  %3043 = vlog2.f32 %v918_v58  ;;  %v917_v34 = vadd.f32 1.0, %v3026_v16  ;;  %v786_v6 = vmul.f32 1.442695, %v633_v13  ;;  %6318 = vst [vmem:[#allocation66_spill] sm:$0xff] %v4164_v43  ;;  %v4168_v11 = vadd.f32 %v3870_v56, %v3707_v30 }
 0x132   :  { %v4157_v4 = vpop.eup %3029  ;;  %3045 = vpow2.f32 %v758_v40  ;;  %v919_v16 = vadd.f32 1.0, %v3028_v0  ;;  %v4172_v40 = vadd.f32 %v3882_v9, %v3707_v30  ;;  %v4175_v24 = vmul.f32 100.0, %v4164_v43 }
 0x133   :  { %v4160_v36 = vpop.eup %3031  ;;  %3047 = vlog2.f32 %v917_v34  ;;  %v4179_v47 = vadd.f32 %v3884_v21, %v3707_v30  ;;  %v4182_v56 = vmul.f32 100.0, %v4168_v11  ;;  %v4191_v21 = vsel %vm708_vm13, %v3928_v20, %v1092_v2 }
 0x134   :  { %3049 = vpow2.f32 %v784_v18  ;;  %6319 = vst [vmem:[#allocation67_spill] sm:$0xff] %v4175_v24  ;;  %v4185_v34 = vmul.f32 100.0, %v4172_v40  ;;  %v635_v18 = vmin.f32 %v4175_v24, 20.0  ;;  %6321 = vst [vmem:[#allocation69_spill] sm:$0xff] %v4191_v21 }
 0x135   :  { %v3034_v58 = vpop.eup %3033  ;;  %6320 = vst [vmem:[#allocation68_spill] sm:$0xff] %v4179_v47  ;;  %3051 = vpow2.f32 %v788_v1  ;;  %v648_v1 = vmin.f32 %v4182_v56, 20.0  ;;  %vm712_vm9 = vcmp.gt.f32.partialorder %v4182_v56, 20.0 }
 0x136   :  { %v3036_v39 = vpop.eup %3035  ;;  %v1033_v44 = vmul.f32 0.6931472, %v3034_v58  ;;  %3053 = vpow2.f32 %v786_v6  ;;  %v650_v20 = vmin.f32 %v4185_v34, 20.0  ;;  %v790_v27 = vmul.f32 1.442695, %v635_v18 }
 0x137   :  { %v3038_v32 = vpop.eup %3037  ;;  %v872_v0 = vadd.f32 1.0, %v3036_v39  ;;  %v1094_v39 = vmul.f32 0.01, %v1005_v31  ;;  %v816_v33 = vmul.f32 1.442695, %v648_v1  ;;  %v4212_v31 = vadd.f32 %v3901_v10, %v3736_v54 }
 0x138   :  { %v1108_v9 = vmul.f32 0.01, %v1033_v44  ;;  %v874_v13 = vadd.f32 1.0, %v3038_v32  ;;  %v3040_v58 = vpop.eup %3039  ;;  %v6329_v32 = vld [vmem:[#allocation28_spill] sm:$0xff]  ;;  %vm714_vm10 = vcmp.gt.f32.partialorder %v4185_v34, 20.0  ;;  %v4406_v34 = vadd.f32 %v3990_v57, %v3707_v30 }
 0x139   :  { %3055 = vlog2.f32 %v872_v0  ;;  %v873_v44 = vadd.f32 1.0, %v3040_v58  ;;  %v4198_v6 = vpop.eup %3041  ;;  %v4204_v0 = vmul.f32 100.0, %v4179_v47  ;;  %v4216_v58 = vadd.f32 %v3907_v55, %v3736_v54 }
 0x13a   :  { %v4196_v43 = vsel %vm724_vm14, %v3988_v5, %v1108_v9  ;;  %3057 = vlog2.f32 %v919_v16  ;;  %6323 = vst [vmem:[#allocation71_spill] sm:$0xff] %v4198_v6  ;;  %v4208_v5 = vadd.f32 %v3899_v22, %v3707_v30  ;;  %v4230_v55 = vsel %vm710_vm15, %v3936_v17, %v1094_v39 }
 0x13b   :  { %6322 = vst [vmem:[#allocation70_spill] sm:$0xff] %v4196_v43  ;;  %3059 = vlog2.f32 %v874_v13  ;;  %v3044_v2 = vpop.eup %3043  ;;  %6324 = vst [vmem:[#allocation72_spill] sm:$0xff] %v4204_v0  ;;  %v820_v13 = vmul.f32 1.442695, %v650_v20  ;;  %v649_v22 = vmin.f32 %v4204_v0, 20.0  ;;  %v4233_v52 = vmul.f32 100.0, %v4216_v58 }
 0x13c   :  { %6325 = vst [vmem:[#allocation73_spill] sm:$0xff] %v4208_v5  ;;  %v3046_v16 = vpop.eup %3045  ;;  %v1037_v9 = vmul.f32 0.6931472, %v3044_v2  ;;  %3061 = vlog2.f32 %v873_v44  ;;  %v4224_v10 = vmul.f32 100.0, %v4208_v5  ;;  %v4227_v44 = vmul.f32 100.0, %v4212_v31  ;;  %6327 = vst [vmem:[#allocation75_spill] sm:$0xff] %v4230_v55 }
 0x13d   :  { %3063 = vpow2.f32 %v816_v33  ;;  %v4221_v18 = vpop.eup %3047  ;;  %v875_v50 = vadd.f32 1.0, %v3046_v16  ;;  %v4241_v5 = vadd.f32 %v6329_v32, %v3736_v54  ;;  %v6332_v32 = vld [vmem:[#allocation4_spill] sm:$0xff]  ;;  %v6335_v55 = vld [vmem:[#allocation30_spill] sm:$0xff]  ;;  %vm730_vm12 = vcmp.gt.f32.partialorder %v4233_v52, 20.0 }
 0x13e   :  { %v1110_v1 = vmul.f32 0.01, %v1037_v9  ;;  %3065 = vpow2.f32 %v820_v13  ;;  %6326 = vst [vmem:[#allocation74_spill] sm:$0xff] %v4224_v10  ;;  %v3050_v20 = vpop.eup %3049  ;;  %v651_v13 = vmin.f32 %v4224_v10, 20.0  ;;  %v664_v16 = vmin.f32 %v4227_v44, 20.0  ;;  %v6341_v0 = vld [vmem:[#allocation22_spill] sm:$0xff] }
 0x13f   :  { %3067 = vpow2.f32 %v790_v27  ;;  %v3052_v33 = vpop.eup %3051  ;;  %v888_v9 = vadd.f32 1.0, %v3050_v20  ;;  %6330 = vst [vmem:[#allocation28_spill] sm:$0xff] %v4241_v5  ;;  %v818_v27 = vmul.f32 1.442695, %v649_v22  ;;  %v666_v20 = vmin.f32 %v4233_v52, 20.0  ;;  %v6334_v22 = vld [vmem:[#allocation7_spill] sm:$0xff] }
 0x140   :  { %v4236_v2 = vsel %vm726_vm0, %v3997_v60, %v1110_v1  ;;  %v3054_v47 = vpop.eup %3053  ;;  %v890_v39 = vadd.f32 1.0, %v3052_v33  ;;  %v848_v1 = vmul.f32 1.442695, %v664_v16  ;;  %vm673_vm1 = vcmp.gt.f32.partialorder %v6332_v32, 20.0  ;;  %v6338_v16 = vld [vmem:[#allocation5_spill] sm:$0xff] }
 0x141   :  { %6328 = vst [vmem:[#allocation76_spill] sm:$0xff] %v4236_v2  ;;  %3069 = vlog2.f32 %v888_v9  ;;  %v822_v14 = vmul.f32 1.442695, %v651_v13  ;;  %v4251_v17 = vmul.f32 100.0, %v4241_v5  ;;  %vm689_vm2 = vcmp.gt.f32.partialorder %v6334_v22, 20.0  ;;  %v6339_v2 = vld [vmem:[#allocation9_spill] sm:$0xff] }
 0x142   :  { %3071 = vlog2.f32 %v890_v39  ;;  %v889_v33 = vadd.f32 1.0, %v3054_v47  ;;  %v852_v9 = vmul.f32 1.442695, %v666_v20  ;;  %vm675_vm3 = vcmp.gt.f32.partialorder %v6338_v16, 20.0 }
 0x143   :  { %v3056_v21 = vpop.eup %3055  ;;  %3073 = vlog2.f32 %v875_v50  ;;  %6333 = vst [vmem:[#allocation4_spill] sm:$0xff] %v4251_v17  ;;  %vm691_vm4 = vcmp.gt.f32.partialorder %v6339_v2, 20.0  ;;  %v665_v50 = vmin.f32 %v4251_v17, 20.0  ;;  %v6349_v2 = vld [vmem:[#allocation35_spill] sm:$0xff]  ;;  %vm728_vm11 = vcmp.gt.f32.partialorder %v4227_v44, 20.0 }
 0x144   :  { %v4246_v43 = vpop.eup %3057  ;;  %v945_v60 = vmul.f32 0.6931472, %v3056_v21  ;;  %3075 = vpow2.f32 %v818_v27  ;;  %v4256_v21 = vadd.f32 %v6335_v55, %v3736_v54  ;;  %v6369_v44 = vld [vmem:[#allocation15_spill] sm:$0xff] }
 0x145   :  { %6331 = vst [vmem:[#allocation77_spill] sm:$0xff] %v4246_v43  ;;  %v3060_v10 = vpop.eup %3059  ;;  %3077 = vpow2.f32 %v848_v1  ;;  %v850_v38 = vmul.f32 1.442695, %v665_v50  ;;  %v6343_v43 = vld [vmem:[#allocation27_spill] sm:$0xff]  ;;  %v6344_v50 = vld [vmem:[#allocation34_spill] sm:$0xff]  ;;  %vm721_vm14 = vcmp.gt.f32.partialorder %v6369_v44, 20.0 }
 0x146   :  { %6336 = vst [vmem:[#allocation7_spill] sm:$0xff] %v4256_v21  ;;  %v4258_v39 = vpop.eup %3061  ;;  %v1064_v5 = vmul.f32 0.01, %v945_v60  ;;  %v949_v47 = vmul.f32 0.6931472, %v3060_v10  ;;  %3079 = vpow2.f32 %v852_v9  ;;  %v4265_v27 = vmul.f32 100.0, %v4256_v21 }
 0x147   :  { %6337 = vst [vmem:[#allocation30_spill] sm:$0xff] %v4258_v39  ;;  %v3064_v13 = vpop.eup %3063  ;;  %3081 = vpow2.f32 %v822_v14  ;;  %v931_v39 = vmul.f32 0.6931472, %v6341_v0  ;;  %v6342_v9 = vld [vmem:[#allocation31_spill] sm:$0xff]  ;;  %v935_v24 = vmul.f32 0.6931472, %v6343_v43  ;;  %v4277_v0 = vadd.f32 %v6344_v50, %v3659_v62 }
 0x148   :  { %6340 = vst [vmem:[#allocation5_spill] sm:$0xff] %v4265_v27  ;;  %v3066_v55 = vpop.eup %3065  ;;  %v904_v20 = vadd.f32 1.0, %v3064_v13  ;;  %3083 = vlog2.f32 %v889_v33  ;;  %v667_v10 = vmin.f32 %v4265_v27, 20.0  ;;  %v963_v21 = vmul.f32 0.6931472, %v6342_v9  ;;  %v6345_v43 = vld [vmem:[#allocation2_spill] sm:$0xff] }
 0x149   :  { %v3068_v1 = vpop.eup %3067  ;;  %v906_v60 = vadd.f32 1.0, %v3066_v55  ;;  %v1057_v17 = vmul.f32 0.01, %v931_v39  ;;  %v967_v14 = vmul.f32 0.6931472, %v3975_v51  ;;  %v4282_v33 = vsel %vm680_vm5, %v4068_v15, %v1064_v5 }
 0x14a   :  { %3085 = vlog2.f32 %v904_v20  ;;  %v854_v6 = vmul.f32 1.442695, %v667_v10  ;;  %v1066_v55 = vmul.f32 0.01, %v949_v47  ;;  %v1073_v20 = vmul.f32 0.01, %v963_v21 }
 0x14b   :  { %3087 = vlog2.f32 %v906_v60  ;;  %v3070_v13 = vpop.eup %3069  ;;  %v1121_v60 = vsel %vm673_vm1, %v6345_v43, %v1057_v17  ;;  %v1059_v51 = vmul.f32 0.01, %v935_v24  ;;  %v1075_v10 = vmul.f32 0.01, %v967_v14  ;;  %v6347_v47 = vld [vmem:[#allocation3_spill] sm:$0xff]  ;;  %v6348_v24 = vld [vmem:[#allocation8_spill] sm:$0xff] }
 0x14c   :  { %3089 = vpow2.f32 %v850_v38  ;;  %v3072_v39 = vpop.eup %3071  ;;  %v977_v9 = vmul.f32 0.6931472, %v3070_v13  ;;  %v1137_v15 = vsel %vm689_vm2, %v6346_v48, %v1073_v20  ;;  %v4293_v35 = vmul.f32 100.0, %v4277_v0 }
 0x14d   :  { %v4287_v27 = vpop.eup %3073  ;;  %v981_v50 = vmul.f32 0.6931472, %v3072_v39  ;;  %3091 = vpow2.f32 %v854_v6  ;;  %v1185_v21 = vpack.c.bf16 %v1137_v15, %v1121_v60  ;;  %v1123_v17 = vsel %vm675_vm3, %v6347_v47, %v1059_v51  ;;  %v6353_v15 = vld [vmem:[#allocation26_spill] sm:$0xff]  ;;  %v6356_v47 = vld [vmem:[#allocation36_spill] sm:$0xff] }
 0x14e   :  { %v3076_v38 = vpop.eup %3075  ;;  %v1080_v5 = vmul.f32 0.01, %v977_v9  ;;  %v1139_v32 = vsel %vm691_vm4, %v6348_v24, %v1075_v10  ;;  %v891_v13 = vadd.f32 1.0, %v3068_v1  ;;  %v620_v48 = vmin.f32 %v4293_v35, 20.0  ;;  %v6357_v24 = vld [vmem:[#allocation38_spill] sm:$0xff] }
 0x14f   :  { %v3078_v14 = vpop.eup %3077  ;;  %v1082_v6 = vmul.f32 0.01, %v981_v50  ;;  %v1187_v39 = vpack.c.bf16 %v1139_v32, %v1123_v17  ;;  %v4305_v20 = vsel %vm682_vm6, %v4072_v53, %v1066_v55  ;;  %1261 = vmatprep.subr.bf16.mxu0 %v1185_v21  ;;  %v4314_v43 = vadd.f32 %v6349_v2, %v3659_v62 }
 0x150   :  { %v3080_v22 = vpop.eup %3079  ;;  %v4310_v16 = vsel %vm696_vm7, %v4117_v7, %v1080_v5  ;;  %v920_v9 = vadd.f32 1.0, %v3078_v14  ;;  %v905_v61 = vadd.f32 1.0, %v3076_v38  ;;  %v6350_v7 = vld [vmem:[#allocation24_spill] sm:$0xff]  ;;  %v6354_v5 = vld [vmem:[#allocation25_spill] sm:$0xff]  ;;  %v760_v59 = vmul.f32 1.442695, %v620_v48 }
 0x151   :  { %v3082_v1 = vpop.eup %3081  ;;  %v4321_v53 = vsel %vm698_vm8, %v4121_v28, %v1082_v6  ;;  %v922_v55 = vadd.f32 1.0, %v3080_v22  ;;  %1314 = vmatprep.subr.bf16.mxu1 %v1187_v39  ;;  %v6352_v51 = vpack.c.bf16 %v6350_v7, %v6351_v8  ;;  %v6355_v21 = vpack.c.bf16 %v6353_v15, %v6354_v5  ;;  %v6359_v14 = vld [vmem:[#allocation39_spill] sm:$0xff]  ;;  %v6360_v5 = vld [vmem:[#allocation40_spill] sm:$0xff] }
 0x152   :  { %v4326_v10 = vpop.eup %3083  ;;  %3093 = vlog2.f32 %v920_v9  ;;  %v4334_v28 = vmul.f32 100.0, %v4314_v43  ;;  %v4338_v17 = vadd.f32 %v6356_v47, %v3659_v62  ;;  %v4342_v32 = vadd.f32 %v6357_v24, %v3659_v62 }
 0x153   :  { %1262 = vmatpush1.bf16.msra.mxu0 %v6352_v51  ;;  %1315 = vmatpush1.bf16.msra.mxu1 %v6355_v21  ;;  %3095 = vlog2.f32 %v922_v55  ;;  %v4346_v6 = vadd.f32 %v6359_v14, %v3661_v63  ;;  %v907_v48 = vadd.f32 1.0, %v3082_v1  ;;  %v4360_v1 = vadd.f32 %v6360_v5, %v3661_v63  ;;  %v6363_v5 = vld [vmem:[#allocation41_spill] sm:$0xff] }
 0x154   :  { %v3086_v38 = vpop.eup %3085  ;;  %6358 = vst [vmem:[#allocation9_spill] sm:$0xff] %v4342_v32  ;;  %3097 = vpow2.f32 %v760_v59  ;;  %v622_v9 = vmin.f32 %v4334_v28, 20.0  ;;  %v4350_v55 = vmul.f32 100.0, %v4338_v17  ;;  %v4353_v7 = vmul.f32 100.0, %v4342_v32 }
 0x155   :  { %v3088_v39 = vpop.eup %3087  ;;  %v1009_v22 = vmul.f32 0.6931472, %v3086_v38  ;;  %3099 = vlog2.f32 %v891_v13  ;;  %v4356_v62 = vmul.f32 100.0, %v4346_v6  ;;  %v4436_v44 = vmul.f32 100.0, %v4406_v34 }
 0x156   :  { %v3090_v2 = vpop.eup %3089  ;;  %v1013_v8 = vmul.f32 0.6931472, %v3088_v39  ;;  %v764_v15 = vmul.f32 1.442695, %v622_v9  ;;  %3101 = vlog2.f32 %v905_v61  ;;  %v621_v13 = vmin.f32 %v4350_v55, 20.0  ;;  %v6361_v61 = vld [vmem:[#allocation11_spill] sm:$0xff] }
 0x157   :  { %v921_v51 = vadd.f32 1.0, %v3090_v2  ;;  %v3092_v21 = vpop.eup %3091  ;;  %v1096_v59 = vmul.f32 0.01, %v1009_v22  ;;  %3103 = vlog2.f32 %v907_v48  ;;  %v623_v38 = vmin.f32 %v4353_v7, 20.0 }
 0x158   :  { %v762_v47 = vmul.f32 1.442695, %v621_v13  ;;  %v636_v24 = vmin.f32 %v4356_v62, 20.0  ;;  %v1098_v14 = vmul.f32 0.01, %v1013_v8  ;;  %v923_v39 = vadd.f32 1.0, %v3092_v21 }
 0x159   :  { %3105 = vlog2.f32 %v921_v51  ;;  %v4370_v9 = vmul.f32 100.0, %v4360_v1  ;;  %vm705_vm13 = vcmp.gt.f32.partialorder %v6361_v61, 20.0  ;;  %v766_v22 = vmul.f32 1.442695, %v623_v38  ;;  %v6372_v61 = vld [vmem:[#allocation46_spill] sm:$0xff] }
 0x15a   :  { %3107 = vpow2.f32 %v764_v15  ;;  %v792_v48 = vmul.f32 1.442695, %v636_v24  ;;  %v4375_v2 = vadd.f32 %v3963_v45, %v3661_v63  ;;  %v4379_v51 = vadd.f32 %v6363_v5, %v3661_v63 }
 0x15b   :  { %v4384_v8 = vsel %vm712_vm9, %v4168_v11, %v1096_v59  ;;  %3109 = vpow2.f32 %v762_v47  ;;  %v638_v15 = vmin.f32 %v4370_v9, 20.0  ;;  %v995_v21 = vmul.f32 0.6931472, %v4025_v23 }
 0x15c   :  { %6362 = vst [vmem:[#allocation22_spill] sm:$0xff] %v4375_v2  ;;  %6364 = vst [vmem:[#allocation31_spill] sm:$0xff] %v4379_v51  ;;  %v3094_v13 = vpop.eup %3093  ;;  %3111 = vpow2.f32 %v792_v48  ;;  %v4389_v45 = vmul.f32 100.0, %v4375_v2  ;;  %v4392_v63 = vmul.f32 100.0, %v4379_v51  ;;  %v4397_v11 = vsel %vm714_vm10, %v4172_v40, %v1098_v14  ;;  %v6397_v2 = vld [vmem:[#allocation37_spill] sm:$0xff] }
 0x15d   :  { %6365 = vst [vmem:[#allocation27_spill] sm:$0xff] %v4384_v8  ;;  %v3096_v38 = vpop.eup %3095  ;;  %v1041_v24 = vmul.f32 0.6931472, %v3094_v13  ;;  %6366 = vst [vmem:[#allocation34_spill] sm:$0xff] %v4397_v11  ;;  %v796_v59 = vmul.f32 1.442695, %v638_v15  ;;  %3113 = vpow2.f32 %v766_v22 }
 0x15e   :  { %v3098_v5 = vpop.eup %3097  ;;  %v1045_v56 = vmul.f32 0.6931472, %v3096_v38  ;;  %v1027_v47 = vmul.f32 0.6931472, %v4075_v37  ;;  %v637_v50 = vmin.f32 %v4389_v45, 20.0  ;;  %v639_v51 = vmin.f32 %v4392_v63, 20.0 }
 0x15f   :  { %v4400_v23 = vpop.eup %3099  ;;  %v1112_v13 = vmul.f32 0.01, %v1041_v24  ;;  %v876_v48 = vadd.f32 1.0, %v3098_v5  ;;  %3115 = vpow2.f32 %v796_v59  ;;  %v1089_v22 = vmul.f32 0.01, %v995_v21  ;;  %v6370_v59 = vld [vmem:[#allocation10_spill] sm:$0xff] }
 0x160   :  { %v1114_v60 = vmul.f32 0.01, %v1045_v56  ;;  %v4408_v40 = vpop.eup %3101  ;;  %v794_v14 = vmul.f32 1.442695, %v637_v50  ;;  %v798_v24 = vmul.f32 1.442695, %v639_v51 }
 0x161   :  { %v4413_v37 = vsel %vm728_vm11, %v4212_v31, %v1112_v13  ;;  %3117 = vlog2.f32 %v876_v48  ;;  %v4415_v15 = vpop.eup %3103  ;;  %v1105_v5 = vmul.f32 0.01, %v1027_v47  ;;  %v999_v50 = vmul.f32 0.6931472, %v4035_v19 }
 0x162   :  { %6367 = vst [vmem:[#allocation2_spill] sm:$0xff] %v4413_v37  ;;  %v4422_v57 = vsel %vm730_vm12, %v4216_v58, %v1114_v60  ;;  %3119 = vlog2.f32 %v923_v39  ;;  %v1153_v52 = vsel %vm705_vm13, %v6370_v59, %v1089_v22  ;;  %v6371_v58 = vld [vmem:[#allocation14_spill] sm:$0xff]  ;;  %v1031_v51 = vmul.f32 0.6931472, %v4083_v29  ;;  %v6375_v29 = vld [vmem:[#allocation17_spill] sm:$0xff] }
 0x163   :  { %6368 = vst [vmem:[#allocation6_spill] sm:$0xff] %v4422_v57  ;;  %v4424_v56 = vpop.eup %3105  ;;  %3121 = vpow2.f32 %v794_v14  ;;  %v1169_v60 = vsel %vm721_vm14, %v6371_v58, %v1105_v5  ;;  %v1091_v48 = vmul.f32 0.01, %v999_v50  ;;  %v4440_v19 = vadd.f32 %v3999_v49, %v3707_v30  ;;  %v6374_v5 = vld [vmem:[#allocation13_spill] sm:$0xff] }
 0x164   :  { %v3108_v21 = vpop.eup %3107  ;;  %v1201_v13 = vpack.c.bf16 %v1169_v60, %v1153_v52  ;;  %3123 = vpow2.f32 %v798_v24  ;;  %v1107_v39 = vmul.f32 0.01, %v1031_v51  ;;  %v4444_v14 = vadd.f32 %v6372_v61, %v3707_v30  ;;  %v4451_v24 = vld [vmem:[%s6052_s3] sm:$0xff]   ;;  %v6377_v52 = vld [vmem:[#allocation16_spill] sm:$0xff] }
 0x165   :  { %v878_v47 = vadd.f32 1.0, %v3108_v21  ;;  %v3110_v31 = vpop.eup %3109  ;;  %vm707_vm15 = vcmp.gt.f32.partialorder %v6374_v5, 20.0  ;;  %vm723_vm0 = vcmp.gt.f32.partialorder %v6375_v29, 20.0  ;;  %v652_v50 = vmin.f32 %v4436_v44, 20.0  ;;  %v6376_v21 = vld [vmem:[#allocation12_spill] sm:$0xff]  ;;  %v6378_v60 = vld [vmem:[#allocation42_spill] sm:$0xff] }
 0x166   :  { %6373 = vst [vmem:[#allocation3_spill] sm:$0xff] %v4444_v14  ;;  %v3112_v22 = vpop.eup %3111  ;;  %1263 = vmatprep.subr.bf16.mxu0 %v1201_v13  ;;  %v1155_v59 = vsel %vm707_vm15, %v6376_v21, %v1091_v48  ;;  %v1171_v58 = vsel %vm723_vm0, %v6377_v52, %v1107_v39  ;;  %v6379_v51 = vpack.c.bf16 %v4006_v26, %v6378_v60  ;;  %vm1254_vm1 = vcmask 261120   ;;  %v6381_v48 = vld [vmem:[#allocation48_spill] sm:$0xff]  ;;  %v6383_v26 = vld [vmem:[#allocation49_spill] sm:$0xff] }
 0x167   :  { %3125 = vlog2.f32 %v878_v47  ;;  %v892_v49 = vadd.f32 1.0, %v3112_v22  ;;  %v3114_v61 = vpop.eup %3113  ;;  %v877_v47 = vadd.f32 1.0, %v3110_v31  ;;  %v1203_v13 = vpack.c.bf16 %v1171_v58, %v1155_v59 }
 0x168   :  { %1264 = vmatpush1.bf16.msra.mxu0 %v6379_v51  ;;  %v824_v5 = vmul.f32 1.442695, %v652_v50  ;;  %v4460_v29 = vmul.f32 100.0, %v4440_v19  ;;  %v4463_v22 = vmul.f32 100.0, %v4444_v14  ;;  %v4467_v39 = vadd.f32 %v6381_v48, %v3707_v30  ;;  %v6390_v14 = vld [vmem:[#allocation51_spill] sm:$0xff] }
 0x169   :  { %v3116_v38 = vpop.eup %3115  ;;  %3127 = vlog2.f32 %v892_v49  ;;  %v4471_v21 = vadd.f32 %v6383_v26, %v3736_v54  ;;  %1316 = vmatprep.subr.bf16.mxu1 %v1203_v13  ;;  %v879_v59 = vadd.f32 1.0, %v3114_v61  ;;  %v6384_v58 = vpack.c.bf16 %v4048_v42, %v4030_v46  ;;  %v6387_v61 = vld [vmem:[#allocation50_spill] sm:$0xff] }
 0x16a   :  { %6380 = vst [vmem:[#allocation8_spill] sm:$0xff] %v4463_v22  ;;  %6382 = vst [vmem:[#allocation35_spill] sm:$0xff] %v4467_v39  ;;  %v894_v31 = vadd.f32 1.0, %v3116_v38  ;;  %3129 = vpow2.f32 %v824_v5  ;;  %v654_v50 = vmin.f32 %v4460_v29, 20.0  ;;  %v653_v30 = vmin.f32 %v4463_v22, 20.0  ;;  %v6392_v22 = vld [vmem:[#allocation33_spill] sm:$0xff] }
 0x16b   :  { %v3118_v52 = vpop.eup %3117  ;;  %2872 = vmatmul.mubr.msk.bf16.vlgmr.msra.gmra.mrb[32].mxu0 %vm1254_vm1, %v4451_v24  ;;  %1317 = vmatpush1.bf16.msra.mxu1 %v6384_v58  ;;  %v4481_v60 = vmul.f32 100.0, %v4467_v39  ;;  %v6386_v51 = vmov 0   ;;  %v4487_v5 = vmul.f32 100.0, %v4471_v21  ;;  %v4491_v48 = vadd.f32 %v6387_v61, %v3736_v54  ;;  %v6389_v58 = vld [vmem:[#allocation20_spill] sm:$0xff] }
 0x16c   :  { %v953_v49 = vmul.f32 0.6931472, %v3118_v52  ;;  %1303 = vmatprep.mubr.bf16.mxu0 %v6386_v51  ;;  %v4484_v38 = vpop.eup %3119  ;;  %3131 = vlog2.f32 %v894_v31  ;;  %v828_v13 = vmul.f32 1.442695, %v654_v50  ;;  %v826_v42 = vmul.f32 1.442695, %v653_v30 }
 0x16d   :  { %6385 = vst [vmem:[#allocation24_spill] sm:$0xff] %v4481_v60  ;;  %6388 = vst [vmem:[#allocation23_spill] sm:$0xff] %v4491_v48  ;;  %v3122_v46 = vpop.eup %3121  ;;  %3133 = vlog2.f32 %v877_v47  ;;  %v655_v26 = vmin.f32 %v4481_v60, 20.0  ;;  %vm684_vm2 = vcmp.gt.f32.partialorder %v4293_v35, 20.0  ;;  %v668_v52 = vmin.f32 %v4487_v5, 20.0  ;;  %v4501_v31 = vld [vmem:[%s6052_s3 + $0x8] sm:$0xff]  }
 0x16e   :  { %2874 = vmatmul.mubr.msk.bf16.vlgmr.msra.gmra.mrb[32].mxu1 %vm1254_vm1, %v4451_v24  ;;  %3135 = vpow2.f32 %v828_v13  ;;  %v3124_v50 = vpop.eup %3123  ;;  %vm677_vm3 = vcmp.gt.f32.partialorder %v6389_v58, 20.0  ;;  %vm686_vm4 = vcmp.gt.f32.partialorder %v4334_v28, 20.0  ;;  %vm700_vm5 = vcmp.gt.f32.partialorder %v4356_v62, 20.0  ;;  %v6402_v62 = vld [vmem:[#allocation29_spill] sm:$0xff] }
 0x16f   :  { %3137 = vlog2.f32 %v879_v59  ;;  %v830_v47 = vmul.f32 1.442695, %v655_v26  ;;  %1356 = vmatprep.mubr.bf16.mxu1 %v6386_v51  ;;  %v1068_v13 = vmul.f32 0.01, %v953_v49  ;;  %v856_v61 = vmul.f32 1.442695, %v668_v52 }
 0x170   :  { %v4508_v39 = vmul.f32 100.0, %v4491_v48  ;;  %v4512_v60 = vadd.f32 %v6390_v14, %v3736_v54  ;;  %vm693_vm6 = vcmp.gt.f32.partialorder %v6392_v22, 20.0  ;;  %v4515_v11 = vadd.f32 1.0, %v3122_v46  ;;  %v6393_v59 = vld [vmem:[#allocation52_spill] sm:$0xff]  ;;  %v6404_v22 = vld [vmem:[#allocation63_spill] sm:$0xff] }
 0x171   :  { %v3126_v30 = vpop.eup %3125  ;;  %3139 = vpow2.f32 %v826_v42  ;;  %v4519_v26 = vadd.f32 %v6393_v59, %v3736_v54  ;;  %vm702_vm7 = vcmp.gt.f32.partialorder %v4370_v9, 20.0  ;;  %v939_v14 = vmul.f32 0.6931472, %v4091_v12  ;;  %v6396_v12 = vld [vmem:[#allocation21_spill] sm:$0xff] }
 0x172   :  { %6391 = vst [vmem:[#allocation26_spill] sm:$0xff] %v4512_v60  ;;  %v957_v32 = vmul.f32 0.6931472, %v3126_v30  ;;  %3141 = vpow2.f32 %v830_v47  ;;  %v670_v49 = vmin.f32 %v4508_v39, 20.0  ;;  %v4524_v52 = vmul.f32 100.0, %v4512_v60 }
 0x173   :  { %6394 = vst [vmem:[#allocation25_spill] sm:$0xff] %v4519_v26  ;;  %2873 = vmatmul.mubr.msk.bf16.gmra.mrb[36].mxu0 %vm1254_vm1, %v4501_v31  ;;  %v3128_v46 = vpop.eup %3127  ;;  %3143 = vpow2.f32 %v856_v61  ;;  %v4530_v42 = vmul.f32 100.0, %v4519_v26  ;;  %v971_v54 = vmul.f32 0.6931472, %v4134_v41  ;;  %v895_v48 = vadd.f32 1.0, %v3124_v50  ;;  %v6399_v26 = vld [vmem:[#allocation54_spill] sm:$0xff] }
 0x174   :  { %6395 = vst [vmem:[#allocation36_spill] sm:$0xff] %v4524_v52  ;;  %v1070_v30 = vmul.f32 0.01, %v957_v32  ;;  %1399 = vmatprep.mubr.bf16.mxu0 %v6386_v51  ;;  %v3130_v47 = vpop.eup %3129  ;;  %v985_v59 = vmul.f32 0.6931472, %v3128_v46  ;;  %v669_v57 = vmin.f32 %v4524_v52, 20.0  ;;  %v4540_v32 = vsel %vm684_vm2, %v4277_v0, %v1068_v13 }
 0x175   :  { %v860_v60 = vmul.f32 1.442695, %v670_v49  ;;  %vm679_vm8 = vcmp.gt.f32.partialorder %v6396_v12, 20.0  ;;  %vm695_vm9 = vcmp.gt.f32.partialorder %v6397_v2, 20.0  ;;  %v908_v61 = vadd.f32 1.0, %v3130_v47  ;;  %v6398_v46 = vld [vmem:[#allocation45_spill] sm:$0xff] }
 0x176   :  { %v4545_v41 = vsel %vm686_vm4, %v4314_v43, %v1070_v30  ;;  %v671_v50 = vmin.f32 %v4530_v42, 20.0  ;;  %v3132_v49 = vpop.eup %3131  ;;  %vm709_vm10 = vcmp.gt.f32.partialorder %v6398_v46, 20.0  ;;  %vm725_vm11 = vcmp.gt.f32.partialorder %v6399_v26, 20.0  ;;  %2875 = vmatmul.mubr.msk.bf16.gmra.mrb[36].mxu1 %vm1254_vm1, %v4501_v31  ;;  %v6412_v12 = vld [vmem:[#allocation53_spill] sm:$0xff] }
 0x177   :  { %v1084_v52 = vmul.f32 0.01, %v985_v59  ;;  %3145 = vpow2.f32 %v860_v60  ;;  %v858_v8 = vmul.f32 1.442695, %v669_v57  ;;  %v1061_v37 = vmul.f32 0.01, %v939_v14  ;;  %v4552_v0 = vpop.eup %3133  ;;  %1452 = vmatprep.mubr.bf16.mxu1 %v6386_v51 }
 0x178   :  { %v989_v35 = vmul.f32 0.6931472, %v3132_v49  ;;  %3147 = vlog2.f32 %v908_v61  ;;  %v862_v43 = vmul.f32 1.442695, %v671_v50  ;;  %v1077_v28 = vmul.f32 0.01, %v971_v54  ;;  %v3136_v13 = vpop.eup %3135 }
 0x179   :  { %v4558_v30 = vsel %vm700_vm5, %v4346_v6, %v1084_v52  ;;  %3149 = vpow2.f32 %v858_v8  ;;  %v6400_v57 = vld [vmem:[#allocation18_spill] sm:$0xff]  ;;  %v943_v14 = vmul.f32 0.6931472, %v4106_v25  ;;  %v4564_v47 = vpop.eup %3137  ;;  %v6401_v59 = vld [vmem:[#allocation47_spill] sm:$0xff]  ;;  %v910_v50 = vadd.f32 1.0, %v3136_v13  ;;  %v6403_v52 = vld [vmem:[#allocation56_spill] sm:$0xff] }
 0x17a   :  { %v1125_v60 = vsel %vm677_vm3, %v6400_v57, %v1061_v37  ;;  %vm711_vm12 = vcmp.gt.f32.partialorder %v6401_v59, 20.0  ;;  %v1196_v54 = vpack.c.bf16 %v4558_v30, %v4540_v32  ;;  %v1086_v61 = vmul.f32 0.01, %v989_v35  ;;  %v4758_v32 = vpop.permute.xlu0 %1226 }
 0x17b   :  { %3151 = vpow2.f32 %v862_v43  ;;  %v1141_v6 = vsel %vm693_vm6, %v6402_v62, %v1077_v28  ;;  %v975_v8 = vmul.f32 0.6931472, %v4157_v4  ;;  %v1063_v58 = vmul.f32 0.01, %v943_v14  ;;  %v3140_v25 = vpop.eup %3139  ;;  %v6408_v4 = vld [vmem:[#allocation58_spill] sm:$0xff] }
 0x17c   :  { %v1003_v37 = vmul.f32 0.6931472, %v4160_v36  ;;  %vm727_vm13 = vcmp.gt.f32.partialorder %v6403_v52, 20.0  ;;  %v4578_v49 = vsel %vm702_vm7, %v4360_v1, %v1086_v61  ;;  %3153 = vlog2.f32 %v910_v50  ;;  %v3142_v13 = vpop.eup %3141  ;;  %v6406_v50 = vld [vmem:[#allocation32_spill] sm:$0xff] }
 0x17d   :  { %v1189_v35 = vpack.c.bf16 %v1141_v6, %v1125_v60  ;;  %v1035_v43 = vmul.f32 0.6931472, %v4221_v18  ;;  %vm681_vm14 = vcmp.gt.f32.partialorder %v4109_v3, 20.0  ;;  %vm697_vm15 = vcmp.gt.f32.partialorder %v6404_v22, 20.0  ;;  %v3144_v57 = vpop.eup %3143  ;;  %v6405_v18 = vld [vmem:[#allocation19_spill] sm:$0xff] }
 0x17e   :  { %3155 = vlog2.f32 %v4515_v11  ;;  %v909_v36 = vadd.f32 1.0, %v3140_v25  ;;  %v1079_v28 = vmul.f32 0.01, %v975_v8  ;;  %v911_v1 = vadd.f32 1.0, %v3142_v13  ;;  %v6407_v6 = vld [vmem:[#allocation59_spill] sm:$0xff] }
 0x17f   :  { %3157 = vlog2.f32 %v895_v48  ;;  %1367 = vmatprep.subr.bf16.mxu0 %v1189_v35  ;;  %v1093_v9 = vmul.f32 0.01, %v1003_v37  ;;  %v1109_v60 = vmul.f32 0.01, %v1035_v43  ;;  %v924_v14 = vadd.f32 1.0, %v3144_v57  ;;  %v6410_v8 = vld [vmem:[#allocation71_spill] sm:$0xff] }
 0x180   :  { %v1127_v61 = vsel %vm679_vm8, %v6405_v18, %v1063_v58  ;;  %v1143_v62 = vsel %vm695_vm9, %v6406_v50, %v1079_v28  ;;  %v6409_v11 = vpack.c.bf16 %v6407_v6, %v6408_v4  ;;  %v1007_v25 = vmul.f32 0.6931472, %v6410_v8  ;;  %v6411_v37 = vld [vmem:[#allocation43_spill] sm:$0xff]  ;;  %v6413_v43 = vld [vmem:[#allocation62_spill] sm:$0xff]  ;;  %v6415_v28 = vld [vmem:[#allocation77_spill] sm:$0xff] }
 0x181   :  { %vm716_vm0 = vcmp.gt.f32.partialorder %v4436_v44, 20.0  ;;  %3159 = vlog2.f32 %v909_v36  ;;  %v1191_v48 = vpack.c.bf16 %v1143_v62, %v1127_v61  ;;  %v1157_v35 = vsel %vm709_vm10, %v6411_v37, %v1093_v9  ;;  %v3146_v2 = vpop.eup %3145  ;;  %v6414_v13 = vld [vmem:[#allocation67_spill] sm:$0xff]  ;;  %v6416_v9 = vld [vmem:[#allocation30_spill] sm:$0xff]  ;;  %v6417_v50 = vld [vmem:[#allocation72_spill] sm:$0xff] }
 0x182   :  { %1368 = vmatpush1.bf16.msra.mxu0 %v6409_v11  ;;  %v1173_v58 = vsel %vm725_vm11, %v6412_v12, %v1109_v60  ;;  %vm683_vm2 = vcmp.gt.f32.partialorder %v6413_v43, 20.0  ;;  %vm699_vm3 = vcmp.gt.f32.partialorder %v6414_v13, 20.0  ;;  %3161 = vlog2.f32 %v924_v14  ;;  %v3148_v36 = vpop.eup %3147  ;;  %v6418_v6 = vld [vmem:[#allocation65_spill] sm:$0xff]  ;;  %v6419_v14 = vld [vmem:[#allocation64_spill] sm:$0xff]  ;;  %v6435_v44 = vld [vmem:[#allocation66_spill] sm:$0xff] }
 0x183   :  { %v1205_v4 = vpack.c.bf16 %v1173_v58, %v1157_v35  ;;  %v1039_v57 = vmul.f32 0.6931472, %v6415_v28  ;;  %v1095_v18 = vmul.f32 0.01, %v1007_v25  ;;  %vm718_vm4 = vcmp.gt.f32.partialorder %v4460_v29, 20.0  ;;  %1420 = vmatprep.subr.bf16.mxu1 %v1191_v48  ;;  %v3150_v60 = vpop.eup %3149  ;;  %v6421_v25 = vld [vmem:[#allocation44_spill] sm:$0xff] }
 0x184   :  { %3163 = vlog2.f32 %v911_v1  ;;  %v926_v46 = vadd.f32 1.0, %v3146_v2  ;;  %v947_v61 = vmul.f32 0.6931472, %v6416_v9  ;;  %v979_v26 = vmul.f32 0.6931472, %v4326_v10  ;;  %v6422_v35 = vld [vmem:[#allocation74_spill] sm:$0xff] }
 0x185   :  { %vm713_vm5 = vcmp.gt.f32.partialorder %v6417_v50, 20.0  ;;  %v1017_v62 = vmul.f32 0.6931472, %v3148_v36  ;;  %v6420_v11 = vpack.c.bf16 %v6418_v6, %v6419_v14  ;;  %1369 = vmatprep.subr.bf16.mxu0 %v1205_v4  ;;  %v1111_v8 = vmul.f32 0.01, %v1039_v57  ;;  %v3152_v37 = vpop.eup %3151  ;;  %v6423_v10 = vld [vmem:[#allocation4_spill] sm:$0xff] }
 0x186   :  { %v1159_v1 = vsel %vm711_vm12, %v6421_v25, %v1095_v18  ;;  %v951_v48 = vmul.f32 0.6931472, %v4287_v27  ;;  %vm715_vm6 = vcmp.gt.f32.partialorder %v6422_v35, 20.0  ;;  %vm729_vm7 = vcmp.gt.f32.partialorder %v6423_v10, 20.0  ;;  %v6424_v58 = vld [vmem:[#allocation70_spill] sm:$0xff]  ;;  %v6425_v2 = vld [vmem:[#allocation69_spill] sm:$0xff]  ;;  %v3154_v14 = vpop.eup %3153 }
 0x187   :  { %1421 = vmatpush1.bf16.msra.mxu1 %v6420_v11  ;;  %3165 = vlog2.f32 %v926_v46  ;;  %v925_v12 = vadd.f32 1.0, %v3150_v60  ;;  %v6426_v28 = vpack.c.bf16 %v6424_v58, %v6425_v2  ;;  %v1065_v36 = vmul.f32 0.01, %v947_v61  ;;  %v6427_v57 = vld [vmem:[#allocation5_spill] sm:$0xff]  ;;  %v6428_v18 = vld [vmem:[#allocation55_spill] sm:$0xff]  ;;  %v6437_v13 = vld [vmem:[#allocation68_spill] sm:$0xff] }
 0x188   :  { %v1081_v4 = vmul.f32 0.01, %v979_v26  ;;  %vm731_vm8 = vcmp.gt.f32.partialorder %v6427_v57, 20.0  ;;  %v1100_v9 = vmul.f32 0.01, %v1017_v62  ;;  %v927_v59 = vadd.f32 1.0, %v3152_v37  ;;  %v3156_v26 = vpop.eup %3155 }
 0x189   :  { %1370 = vmatpush1.bf16.msra.mxu0 %v6426_v28  ;;  %v1175_v27 = vsel %vm727_vm13, %v6428_v18, %v1111_v8  ;;  %v983_v6 = vmul.f32 0.6931472, %v4400_v23  ;;  %3167 = vlog2.f32 %v925_v12  ;;  %v6429_v60 = vld [vmem:[#allocation57_spill] sm:$0xff]  ;;  %vm685_vm9 = vcmp.gt.f32.partialorder %v4350_v55, 20.0  ;;  %v3158_v52 = vpop.eup %3157  ;;  %v6431_v12 = vld [vmem:[#allocation76_spill] sm:$0xff]  ;;  %v6432_v58 = vld [vmem:[#allocation75_spill] sm:$0xff] }
 0x18a   :  { %v1207_v46 = vpack.c.bf16 %v1175_v27, %v1159_v1  ;;  %v1129_v11 = vsel %vm681_vm14, %v6429_v60, %v1065_v36  ;;  %v6430_v25 = vld [vmem:[#allocation61_spill] sm:$0xff]  ;;  %v1021_v62 = vmul.f32 0.6931472, %v3154_v14  ;;  %vm732_vm10 = vcmp.gt.f32.partialorder %v4487_v5, 20.0  ;;  %v6445_v5 = vld [vmem:[#allocation22_spill] sm:$0xff] }
 0x18b   :  { %v1145_v61 = vsel %vm697_vm15, %v6430_v25, %v1081_v4  ;;  %3169 = vlog2.f32 %v927_v59  ;;  %vm701_vm11 = vcmp.gt.f32.partialorder %v4389_v45, 20.0  ;;  %v1067_v3 = vmul.f32 0.01, %v951_v48  ;;  %v3160_v36 = vpop.eup %3159  ;;  %v6439_v60 = vld [vmem:[#allocation73_spill] sm:$0xff] }
 0x18c   :  { %2876 = vmatmul.mubr.msk.bf16.vlgmr.msra.gmra.mrb[40].mxu0 %vm1254_vm1, %v4451_v24  ;;  %v1193_v23 = vpack.c.bf16 %v1145_v61, %v1129_v11  ;;  %1422 = vmatprep.subr.bf16.mxu1 %v1207_v46  ;;  %v1083_v8 = vmul.f32 0.01, %v983_v6  ;;  %v1011_v22 = vmul.f32 0.6931472, %v4408_v40  ;;  %vm687_vm12 = vcmp.gt.f32.partialorder %v4353_v7, 20.0  ;;  %v6434_v40 = vld [vmem:[#allocation60_spill] sm:$0xff]  ;;  %v3162_v59 = vpop.eup %3161 }
 0x18d   :  { %1409 = vmatprep.mubr.bf16.mxu0 %v6386_v51  ;;  %v4644_v1 = vsel %vm716_vm0, %v4406_v34, %v1100_v9  ;;  %v1102_v37 = vmul.f32 0.01, %v1021_v62  ;;  %v6433_v2 = vpack.c.bf16 %v6431_v12, %v6432_v58  ;;  %v1043_v48 = vmul.f32 0.6931472, %v4424_v56 }
 0x18e   :  { %1473 = vmatprep.subr.bf16.mxu0 %v1193_v23  ;;  %v1015_v28 = vmul.f32 0.6931472, %v4415_v15  ;;  %vm703_vm13 = vcmp.gt.f32.partialorder %v4392_v63, 20.0  ;;  %vm734_vm14 = vcmp.gt.f32.partialorder %v4508_v39, 20.0  ;;  %v1131_v34 = vsel %vm683_vm2, %v6434_v40, %v1067_v3  ;;  %v3164_v14 = vpop.eup %3163  ;;  %v6441_v3 = vld [vmem:[#allocation7_spill] sm:$0xff]  ;;  %v6454_v63 = vld [vmem:[#allocation24_spill] sm:$0xff] }
 0x18f   :  { %1423 = vmatpush1.bf16.msra.mxu1 %v6433_v2  ;;  %v1147_v4 = vsel %vm699_vm3, %v6435_v44, %v1083_v8  ;;  %v6436_v9 = vpack.c.bf16 %v4310_v16, %v4282_v33  ;;  %v1097_v56 = vmul.f32 0.01, %v1011_v22  ;;  %v1047_v15 = vmul.f32 0.6931472, %v4484_v38  ;;  %v6446_v44 = vld [vmem:[#allocation6_spill] sm:$0xff] }
 0x190   :  { %v4666_v18 = vsel %vm718_vm4, %v4440_v19, %v1102_v37  ;;  %v1195_v27 = vpack.c.bf16 %v1147_v4, %v1131_v34  ;;  %v1113_v43 = vmul.f32 0.01, %v1043_v48  ;;  %v1099_v6 = vmul.f32 0.01, %v1015_v28  ;;  %v6438_v19 = vld [vmem:[#allocation28_spill] sm:$0xff]  ;;  %v6443_v28 = vld [vmem:[#allocation27_spill] sm:$0xff] }
 0x191   :  { %1474 = vmatpush1.bf16.msra.mxu0 %v6436_v9  ;;  %v1049_v46 = vmul.f32 0.6931472, %v3162_v59  ;;  %v1161_v33 = vsel %vm713_vm5, %v6437_v13, %v1097_v56  ;;  %v1115_v16 = vmul.f32 0.01, %v1047_v15  ;;  %v955_v38 = vmul.f32 0.6931472, %v4552_v0  ;;  %v3166_v62 = vpop.eup %3165 }
 0x192   :  { %2878 = vmatmul.mubr.msk.bf16.vlgmr.msra.gmra.mrb[40].mxu1 %vm1254_vm1, %v4451_v24  ;;  %1526 = vmatprep.subr.bf16.mxu1 %v1195_v27  ;;  %v1177_v29 = vsel %vm729_vm7, %v6438_v19, %v1113_v43  ;;  %v1163_v11 = vsel %vm715_vm6, %v6439_v60, %v1099_v6  ;;  %v987_v25 = vmul.f32 0.6931472, %v3156_v26  ;;  %v959_v61 = vmul.f32 0.6931472, %v4564_v47  ;;  %v6447_v4 = vld [vmem:[#allocation34_spill] sm:$0xff]  ;;  %v6450_v15 = vld [vmem:[#allocation23_spill] sm:$0xff] }
 0x193   :  { %1462 = vmatprep.mubr.bf16.mxu1 %v6386_v51  ;;  %v1116_v50 = vmul.f32 0.01, %v1049_v46  ;;  %v6440_v23 = vpack.c.bf16 %v4321_v53, %v4305_v20  ;;  %v1209_v0 = vpack.c.bf16 %v1177_v29, %v1161_v33  ;;  %v1179_v8 = vsel %vm731_vm8, %v6441_v3, %v1115_v16  ;;  %v3168_v47 = vpop.eup %3167  ;;  %v6451_v27 = vld [vmem:[#allocation31_spill] sm:$0xff]  ;;  %v6452_v33 = vld [vmem:[#allocation8_spill] sm:$0xff]  ;;  %v6456_v19 = vld [vmem:[#allocation26_spill] sm:$0xff] }
 0x194   :  { %v1069_v10 = vmul.f32 0.01, %v955_v38  ;;  %v1053_v22 = vmul.f32 0.6931472, %v3166_v62  ;;  %2877 = vmatmul.mubr.msk.bf16.gmra.mrb[44].mxu0 %vm1254_vm1, %v4501_v31  ;;  %v1211_v35 = vpack.c.bf16 %v1179_v8, %v1163_v11  ;;  %v1085_v26 = vmul.f32 0.01, %v987_v25 }
 0x195   :  { %1527 = vmatpush1.bf16.msra.mxu1 %v6440_v23  ;;  %v991_v37 = vmul.f32 0.6931472, %v3158_v52  ;;  %v1180_v12 = vsel %vm732_vm10, %v4471_v21, %v1116_v50  ;;  %1475 = vmatprep.subr.bf16.mxu0 %v1209_v0  ;;  %v1071_v53 = vmul.f32 0.01, %v959_v61  ;;  %v1019_v57 = vmul.f32 0.6931472, %v3160_v36  ;;  %v3170_v58 = vpop.eup %3169 }
 0x196   :  { %1505 = vmatprep.mubr.bf16.mxu0 %v6386_v51  ;;  %v1133_v20 = vsel %vm685_vm9, %v4338_v17, %v1069_v10  ;;  %v1212_v2 = vpack.c.bf16 %v1180_v12, %v4644_v1  ;;  %v1118_v48 = vmul.f32 0.01, %v1053_v22  ;;  %1528 = vmatprep.subr.bf16.mxu1 %v1211_v35  ;;  %v6442_v52 = vld [vmem:[#allocation2_spill] sm:$0xff]  ;;  %v1149_v21 = vsel %vm701_vm11, %v6445_v5, %v1085_v26  ;;  %v6449_v36 = vld [vmem:[#allocation9_spill] sm:$0xff]  ;;  %v6453_v16 = vld [vmem:[#allocation36_spill] sm:$0xff] }
 0x197   :  { %v6444_v40 = vpack.c.bf16 %v6442_v52, %v6443_v28  ;;  %v1087_v34 = vmul.f32 0.01, %v991_v37  ;;  %v6448_v55 = vpack.c.bf16 %v6446_v44, %v6447_v4  ;;  %v1197_v17 = vpack.c.bf16 %v1149_v21, %v1133_v20  ;;  %v6457_v11 = vld [vmem:[#allocation35_spill] sm:$0xff]  ;;  %v6458_v61 = vld [vmem:[#allocation25_spill] sm:$0xff] }
 0x198   :  { %v1135_v1 = vsel %vm687_vm12, %v6449_v36, %v1071_v53  ;;  %v1051_v9 = vmul.f32 0.6931472, %v3168_v47  ;;  %v1101_v56 = vmul.f32 0.01, %v1019_v57  ;;  %v1182_v59 = vsel %vm734_vm14, %v6450_v15, %v1118_v48 }
 0x199   :  { %1476 = vmatpush1.bf16.msra.mxu0 %v6444_v40  ;;  %1529 = vmatpush1.bf16.msra.mxu1 %v6448_v55  ;;  %v1151_v45 = vsel %vm703_vm13, %v6451_v27, %v1087_v34  ;;  %v1023_v43 = vmul.f32 0.6931472, %v3164_v14  ;;  %v1055_v6 = vmul.f32 0.6931472, %v3170_v58  ;;  %v1214_v46 = vpack.c.bf16 %v1182_v59, %v4666_v18  ;;  %v6455_v18 = vld [vmem:[#allocation3_spill] sm:$0xff] }
 0x19a   :  { %2879 = vmatmul.mubr.msk.bf16.gmra.mrb[44].mxu1 %vm1254_vm1, %v4501_v31  ;;  %1579 = vmatprep.subr.bf16.mxu0 %v1197_v17  ;;  %v1199_v7 = vpack.c.bf16 %v1151_v45, %v1135_v1  ;;  %v1117_v13 = vmul.f32 0.01, %v1051_v9  ;;  %vm717_vm15 = vcmp.gt.f32.partialorder %v6452_v33, 20.0  ;;  %vm733_vm0 = vcmp.gt.f32.partialorder %v6453_v16, 20.0  ;;  %v4805_v1 = vpop.permute.xlu0 %1236 }
 0x19b   :  { %1558 = vmatprep.mubr.bf16.mxu1 %v6386_v51  ;;  %v1103_v39 = vmul.f32 0.01, %v1023_v43  ;;  %v1119_v38 = vmul.f32 0.01, %v1055_v6  ;;  %vm719_vm2 = vcmp.gt.f32.partialorder %v6454_v63, 20.0  ;;  %vm735_vm3 = vcmp.gt.f32.partialorder %v4530_v42, 20.0 }
 0x19c   :  { %1632 = vmatprep.subr.bf16.mxu1 %v1199_v7  ;;  %v1165_v14 = vsel %vm717_vm15, %v6455_v18, %v1101_v56  ;;  %v1181_v29 = vsel %vm733_vm0, %v6456_v19, %v1117_v13  ;;  %2880 = vmatmul.mubr.msk.bf16.vlgmr.msra.gmra.mrb[48].mxu0 %vm1254_vm1, %v4451_v24  ;;  %v6459_v50 = vpack.c.bf16 %v4578_v49, %v4545_v41 }
 0x19d   :  { %v1213_v60 = vpack.c.bf16 %v1181_v29, %v1165_v14  ;;  %v1167_v25 = vsel %vm719_vm2, %v6457_v11, %v1103_v39  ;;  %v1183_v62 = vsel %vm735_vm3, %v6458_v61, %v1119_v38  ;;  %1580 = vmatpush1.bf16.msra.mxu0 %v1196_v54  ;;  %1515 = vmatprep.mubr.bf16.mxu0 %v6386_v51 }
 0x19e   :  { %v1215_v42 = vpack.c.bf16 %v1183_v62, %v1167_v25 }
 0x19f   :  { %1581 = vmatprep.subr.bf16.mxu0 %v1213_v60 }
 0x1a1   :  { %1582 = vmatpush1.bf16.msra.mxu0 %v1212_v2 }
 0x1a2   :  { %2882 = vmatmul.mubr.msk.bf16.vlgmr.msra.gmra.mrb[48].mxu1 %vm1254_vm1, %v4451_v24 }
 0x1a3   :  { %1633 = vmatpush1.bf16.msra.mxu1 %v6459_v50  ;;  %1568 = vmatprep.mubr.bf16.mxu1 %v6386_v51 }
 0x1a4   :  { %1634 = vmatprep.subr.bf16.mxu1 %v1215_v42  ;;  %2881 = vmatmul.mubr.msk.bf16.gmra.mrb[52].mxu0 %vm1254_vm1, %v4501_v31 }
 0x1a5   :  { %1611 = vmatprep.mubr.bf16.mxu0 %v6386_v51 }
 0x1a7   :  { %1635 = vmatpush1.bf16.msra.mxu1 %v1214_v46 }
 0x1aa   :  { %2883 = vmatmul.mubr.msk.bf16.gmra.mrb[52].mxu1 %vm1254_vm1, %v4501_v31 }
 0x1ab   :  { %1664 = vmatprep.mubr.bf16.mxu1 %v6386_v51 }
 0x1ac   :  { %2884 = vmatmul.mubr.msk.bf16.vlgmr.msra.gmra.mrb[56].mxu0 %vm1254_vm1, %v4451_v24 }
 0x1ad   :  { %1621 = vmatprep.mubr.bf16.mxu0 %v6386_v51 }
 0x1b2   :  { %2886 = vmatmul.mubr.msk.bf16.vlgmr.msra.gmra.mrb[56].mxu1 %vm1254_vm1, %v4451_v24  ;;  %v4763_v24 = vpop.permute.xlu1 %1231 }
 0x1b3   :  { %1674 = vmatprep.mubr.bf16.mxu1 %v6386_v51 }
 0x1b4   :  { %2885 = vmatmul.mubr.msk.bf16.gmra.mrb[60].mxu0 %vm1254_vm1, %v4501_v31 }
 0x1b5   :  { %2424 = vmatprep.mubr.bf16.mxu0 %v6386_v51 }
 0x1b6   :  { %v4838_v19 = vpop.permute.xlu1 %1241 }
 0x1ba   :  { %2887 = vmatmul.mubr.msk.bf16.gmra.mrb[60].mxu1 %vm1254_vm1, %v4501_v31 }
 0x1bb   :  { %2475 = vmatprep.mubr.bf16.mxu1 %v6386_v51 }
 0x23e   :  { %v1295_v41 = vpop.f32.mrb[32].mxu0 }
 0x23f   :  { %v4761_v30 = vadd.f32 %v1295_v41, %v4758_v32  ;;  %v1297_v54 = vpop.f32.mrb[33].mxu0 }
 0x240   :  { %v4766_v49 = vadd.f32 %v1297_v54, %v4758_v32  ;;  %v1299_v23 = vpop.f32.mrb[34].mxu0 }
 0x241   :  { %v4769_v0 = vmul.f32 100.0, %v4761_v30  ;;  %v4772_v31 = vadd.f32 %v1299_v23, %v4763_v24  ;;  %v1301_v3 = vpop.f32.mrb[35].mxu0  ;;  %v1348_v8 = vpop.f32.mrb[32].mxu1 }
 0x242   :  { %6460 = vst [vmem:[#allocation38_spill] sm:$0xff] %v4766_v49  ;;  %v4775_v10 = vmul.f32 100.0, %v4766_v49  ;;  %v4779_v35 = vadd.f32 %v1348_v8, %v4758_v32  ;;  %v1350_v26 = vpop.f32.mrb[33].mxu1  ;;  %v4803_v17 = vadd.f32 %v1301_v3, %v4763_v24 }
 0x243   :  { %v1749_v22 = vmin.f32 %v4769_v0, 20.0  ;;  %v4782_v37 = vmul.f32 100.0, %v4772_v31  ;;  %v1352_v12 = vpop.f32.mrb[34].mxu1  ;;  %v4789_v57 = vadd.f32 %v1350_v26, %v4758_v32  ;;  %vm1813_vm4 = vcmp.gt.f32.partialorder %v4769_v0, 20.0 }
 0x244   :  { %6461 = vst [vmem:[#allocation39_spill] sm:$0xff] %v4775_v10  ;;  %v1750_v47 = vmin.f32 %v4775_v10, 20.0  ;;  %v4786_v53 = vmul.f32 100.0, %v4779_v35  ;;  %v1354_v2 = vpop.f32.mrb[35].mxu1  ;;  %v4793_v48 = vadd.f32 %v1352_v12, %v4763_v24  ;;  %6464 = vst [vmem:[#allocation41_spill] sm:$0xff] %v4803_v17  ;;  %v4819_v7 = vmul.f32 100.0, %v4803_v17 }
 0x245   :  { %v1877_v20 = vmul.f32 1.442695, %v1749_v22  ;;  %6462 = vst [vmem:[#allocation40_spill] sm:$0xff] %v4789_v57  ;;  %v1765_v58 = vmin.f32 %v4782_v37, 20.0  ;;  %v4800_v55 = vmul.f32 100.0, %v4789_v57  ;;  %v4809_v56 = vadd.f32 %v1354_v2, %v4763_v24 }
 0x246   :  { %v1305_v52 = vpop.f32.mrb[36].mxu0  ;;  %v1751_v28 = vmin.f32 %v4786_v53, 20.0  ;;  %v1879_v21 = vmul.f32 1.442695, %v1750_v47  ;;  %v4797_v34 = vmul.f32 100.0, %v4793_v48  ;;  %6466 = vst [vmem:[#allocation10_spill] sm:$0xff] %v4819_v7 }
 0x247   :  { %3171 = vpow2.f32 %v1877_v20  ;;  %v1909_v40 = vmul.f32 1.442695, %v1765_v58  ;;  %v1307_v5 = vpop.f32.mrb[37].mxu0  ;;  %6463 = vst [vmem:[#allocation11_spill] sm:$0xff] %v4800_v55  ;;  %6465 = vst [vmem:[#allocation15_spill] sm:$0xff] %v4809_v56  ;;  %v4812_v59 = vadd.f32 %v1305_v52, %v4805_v1  ;;  %v1752_v46 = vmin.f32 %v4800_v55, 20.0 }
 0x248   :  { %v1309_v44 = vpop.f32.mrb[38].mxu0  ;;  %v1881_v4 = vmul.f32 1.442695, %v1751_v28  ;;  %v1767_v9 = vmin.f32 %v4797_v34, 20.0  ;;  %v4828_v39 = vmul.f32 100.0, %v4809_v56  ;;  %v4831_v38 = vadd.f32 %v1307_v5, %v4805_v1 }
 0x249   :  { %3173 = vpow2.f32 %v1909_v40  ;;  %v1311_v36 = vpop.f32.mrb[39].mxu0  ;;  %v1358_v15 = vpop.f32.mrb[36].mxu1  ;;  %v4822_v13 = vmul.f32 100.0, %v4812_v59  ;;  %v1883_v60 = vmul.f32 1.442695, %v1752_v46  ;;  %v1766_v11 = vmin.f32 %v4819_v7, 20.0 }
 0x24a   :  { %3175 = vpow2.f32 %v1881_v4  ;;  %v4815_v27 = vadd.f32 %v1358_v15, %v4805_v1  ;;  %v1360_v45 = vpop.f32.mrb[37].mxu1  ;;  %v1913_v43 = vmul.f32 1.442695, %v1767_v9  ;;  %6467 = vst [vmem:[#allocation14_spill] sm:$0xff] %v4828_v39  ;;  %6468 = vst [vmem:[#allocation46_spill] sm:$0xff] %v4831_v38  ;;  %v4842_v61 = vadd.f32 %v1309_v44, %v4838_v19 }
 0x24b   :  { %3177 = vpow2.f32 %v1879_v21  ;;  %v1362_v6 = vpop.f32.mrb[38].mxu1  ;;  %v1781_v63 = vmin.f32 %v4822_v13, 20.0  ;;  %v4836_v14 = vadd.f32 %v1360_v45, %v4805_v1  ;;  %v1768_v42 = vmin.f32 %v4828_v39, 20.0 }
 0x24c   :  { %v4825_v33 = vmul.f32 100.0, %v4815_v27  ;;  %v1364_v16 = vpop.f32.mrb[39].mxu1  ;;  %3179 = vpow2.f32 %v1913_v43  ;;  %v4846_v41 = vmul.f32 100.0, %v4831_v38  ;;  %v4852_v3 = vmul.f32 100.0, %v4842_v61 }
 0x24d   :  { %6469 = vst [vmem:[#allocation13_spill] sm:$0xff] %v4836_v14  ;;  %v1941_v25 = vmul.f32 1.442695, %v1781_v63  ;;  %v4849_v23 = vmul.f32 100.0, %v4836_v14  ;;  %v4855_v8 = vadd.f32 %v1362_v6, %v4838_v19  ;;  %v4858_v26 = vadd.f32 %v1311_v36, %v4838_v19 }
 0x24e   :  { %v1783_v18 = vmin.f32 %v4825_v33, 20.0  ;;  %6470 = vst [vmem:[#allocation17_spill] sm:$0xff] %v4846_v41  ;;  %v4861_v47 = vadd.f32 %v1364_v16, %v4838_v19  ;;  %v1911_v52 = vmul.f32 1.442695, %v1766_v11  ;;  %v1797_v28 = vmin.f32 %v4852_v3, 20.0 }
 0x24f   :  { %3181 = vpow2.f32 %v1941_v25  ;;  %6471 = vst [vmem:[#allocation12_spill] sm:$0xff] %v4849_v23  ;;  %6472 = vst [vmem:[#allocation16_spill] sm:$0xff] %v4858_v26  ;;  %v4864_v20 = vmul.f32 100.0, %v4855_v8  ;;  %v1782_v40 = vmin.f32 %v4846_v41, 20.0  ;;  %v4869_v5 = vmul.f32 100.0, %v4858_v26 }
 0x250   :  { %v1945_v50 = vmul.f32 1.442695, %v1783_v18  ;;  %6473 = vst [vmem:[#allocation42_spill] sm:$0xff] %v4861_v47  ;;  %v1915_v44 = vmul.f32 1.442695, %v1768_v42  ;;  %v1784_v4 = vmin.f32 %v4849_v23, 20.0 }
 0x251   :  { %v3172_v29 = vpop.eup %3171  ;;  %6474 = vst [vmem:[#allocation48_spill] sm:$0xff] %v4869_v5  ;;  %v4873_v36 = vmul.f32 100.0, %v4861_v47  ;;  %v1799_v45 = vmin.f32 %v4864_v20, 20.0  ;;  %v1973_v43 = vmul.f32 1.442695, %v1797_v28  ;;  %v1798_v16 = vmin.f32 %v4869_v5, 20.0 }
 0x252   :  { %v2005_v62 = vadd.f32 1.0, %v3172_v29  ;;  %v1943_v46 = vmul.f32 1.442695, %v1782_v40  ;;  %v1947_v29 = vmul.f32 1.442695, %v1784_v4  ;;  %vm1829_vm5 = vcmp.gt.f32.partialorder %v4782_v37, 20.0 }
 0x253   :  { %v3174_v54 = vpop.eup %3173  ;;  %6475 = vst [vmem:[#allocation49_spill] sm:$0xff] %v4873_v36  ;;  %vm1815_vm6 = vcmp.gt.f32.partialorder %v4786_v53, 20.0  ;;  %vm1831_vm7 = vcmp.gt.f32.partialorder %v4797_v34, 20.0  ;;  %vm1845_vm8 = vcmp.gt.f32.partialorder %v4822_v13, 20.0  ;;  %vm1861_vm9 = vcmp.gt.f32.partialorder %v4852_v3, 20.0 }
 0x254   :  { %3183 = vlog2.f32 %v2005_v62  ;;  %v2021_v22 = vadd.f32 1.0, %v3174_v54  ;;  %v3176_v12 = vpop.eup %3175  ;;  %v1977_v62 = vmul.f32 1.442695, %v1799_v45  ;;  %vm1847_vm10 = vcmp.gt.f32.partialorder %v4825_v33, 20.0 }
 0x255   :  { %3185 = vpow2.f32 %v1883_v60  ;;  %v3178_v58 = vpop.eup %3177  ;;  %v2007_v2 = vadd.f32 1.0, %v3176_v12  ;;  %v1800_v60 = vmin.f32 %v4873_v36, 20.0  ;;  %vm1863_vm11 = vcmp.gt.f32.partialorder %v4864_v20, 20.0 }
 0x256   :  { %3187 = vlog2.f32 %v2021_v22  ;;  %v3180_v21 = vpop.eup %3179  ;;  %v2006_v9 = vadd.f32 1.0, %v3178_v58 }
 0x257   :  { %3189 = vpow2.f32 %v1945_v50  ;;  %v2023_v15 = vadd.f32 1.0, %v3180_v21 }
 0x258   :  { %3191 = vlog2.f32 %v2007_v2 }
 0x259   :  { %3193 = vpow2.f32 %v1911_v52  ;;  %v3182_v25 = vpop.eup %3181  ;;  %v1975_v52 = vmul.f32 1.442695, %v1798_v16 }
 0x25a   :  { %3195 = vlog2.f32 %v2023_v15  ;;  %v2037_v22 = vadd.f32 1.0, %v3182_v25 }
 0x25b   :  { %3197 = vpow2.f32 %v1915_v44  ;;  %v1979_v44 = vmul.f32 1.442695, %v1800_v60 }
 0x25c   :  { %3199 = vlog2.f32 %v2006_v9 }
 0x25d   :  { %3201 = vpow2.f32 %v1973_v43 }
 0x25e   :  { %v3184_v54 = vpop.eup %3183  ;;  %3203 = vpow2.f32 %v1943_v46 }
 0x25f   :  { %v1401_v6 = vpop.f32.mrb[40].mxu0  ;;  %v3186_v58 = vpop.eup %3185  ;;  %v2070_v2 = vmul.f32 0.6931472, %v3184_v54  ;;  %3205 = vpow2.f32 %v1947_v29 }
 0x260   :  { %v4878_v63 = vadd.f32 %v1401_v6, %v4758_v32  ;;  %v1403_v18 = vpop.f32.mrb[41].mxu0  ;;  %v3188_v21 = vpop.eup %3187  ;;  %3207 = vpow2.f32 %v1977_v62 }
 0x261   :  { %v1405_v11 = vpop.f32.mrb[42].mxu0  ;;  %v4889_v12 = vadd.f32 %v1403_v18, %v4758_v32  ;;  %v3190_v45 = vpop.eup %3189  ;;  %v2197_v43 = vmul.f32 0.01, %v2070_v2  ;;  %v2102_v6 = vmul.f32 0.6931472, %v3188_v21  ;;  %3209 = vlog2.f32 %v2037_v22 }
 0x262   :  { %v4883_v42 = vmul.f32 100.0, %v4878_v63  ;;  %v4885_v50 = vpop.f32.mrb[43].mxu0  ;;  %v4896_v15 = vadd.f32 %v1405_v11, %v4763_v24  ;;  %v3192_v16 = vpop.eup %3191  ;;  %v2039_v18 = vadd.f32 1.0, %v3190_v45  ;;  %3211 = vpow2.f32 %v1975_v52 }
 0x263   :  { %6476 = vst [vmem:[#allocation50_spill] sm:$0xff] %v4889_v12  ;;  %v4903_v60 = vmul.f32 100.0, %v4889_v12  ;;  %v2074_v11 = vmul.f32 0.6931472, %v3192_v16  ;;  %v3194_v62 = vpop.eup %3193  ;;  %v4918_v16 = vsel %vm1813_vm4, %v4761_v30, %v2197_v43 }
 0x264   :  { %v1753_v28 = vmin.f32 %v4883_v42, 20.0  ;;  %3213 = vlog2.f32 %v2039_v18  ;;  %v3196_v12 = vpop.eup %3195  ;;  %6479 = vst [vmem:[#allocation33_spill] sm:$0xff] %v4918_v16  ;;  %v2022_v26 = vadd.f32 1.0, %v3194_v62  ;;  %vm1817_vm12 = vcmp.gt.f32.partialorder %v4883_v42, 20.0 }
 0x265   :  { %v1454_v40 = vpop.f32.mrb[40].mxu1  ;;  %6477 = vst [vmem:[#allocation20_spill] sm:$0xff] %v4903_v60  ;;  %v2199_v18 = vmul.f32 0.01, %v2074_v11  ;;  %v2106_v14 = vmul.f32 0.6931472, %v3196_v12 }
 0x266   :  { %v4893_v4 = vadd.f32 %v1454_v40, %v4758_v32  ;;  %v1456_v9 = vpop.f32.mrb[41].mxu1  ;;  %v1885_v46 = vmul.f32 1.442695, %v1753_v28  ;;  %v2213_v40 = vmul.f32 0.01, %v2102_v6  ;;  %v2008_v28 = vadd.f32 1.0, %v3186_v58 }
 0x267   :  { %v1458_v25 = vpop.f32.mrb[42].mxu1  ;;  %v4905_v54 = vpop.f32.mrb[44].mxu0  ;;  %v4911_v21 = vadd.f32 %v1456_v9, %v4758_v32  ;;  %v4926_v58 = vmul.f32 100.0, %v4896_v15  ;;  %v1754_v37 = vmin.f32 %v4903_v60, 20.0  ;;  %v2215_v11 = vmul.f32 0.01, %v2106_v14 }
 0x268   :  { %v4900_v29 = vmul.f32 100.0, %v4893_v4  ;;  %v1460_v2 = vpop.f32.mrb[43].mxu1  ;;  %v4907_v51 = vpop.f32.mrb[45].mxu0  ;;  %v4923_v52 = vsel %vm1829_vm5, %v4772_v31, %v2213_v40  ;;  %3215 = vpow2.f32 %v1885_v46  ;;  %v4952_v34 = vsel %vm1815_vm6, %v4779_v35, %v2199_v18 }
 0x269   :  { %6478 = vst [vmem:[#allocation51_spill] sm:$0xff] %v4911_v21  ;;  %v4913_v45 = vpop.f32.mrb[46].mxu0  ;;  %6480 = vst [vmem:[#allocation52_spill] sm:$0xff] %v4923_v52  ;;  %v3198_v9 = vpop.eup %3197  ;;  %3217 = vpow2.f32 %v1979_v44  ;;  %v4936_v31 = vmul.f32 100.0, %v4911_v21  ;;  %v1769_v43 = vmin.f32 %v4926_v58, 20.0  ;;  %v4945_v21 = vadd.f32 %v4885_v50, %v4763_v24 }
 0x26a   :  { %v1755_v22 = vmin.f32 %v4900_v29, 20.0  ;;  %v4928_v6 = vpop.f32.mrb[47].mxu0  ;;  %v4932_v30 = vpop.eup %3199  ;;  %6484 = vst [vmem:[#allocation54_spill] sm:$0xff] %v4952_v34  ;;  %v4955_v14 = vsel %vm1831_vm7, %v4793_v48, %v2215_v11  ;;  %v1887_v36 = vmul.f32 1.442695, %v1754_v37  ;;  %v2024_v18 = vadd.f32 1.0, %v3198_v9 }
 0x26b   :  { %6481 = vst [vmem:[#allocation21_spill] sm:$0xff] %v4932_v30  ;;  %6482 = vst [vmem:[#allocation37_spill] sm:$0xff] %v4936_v31  ;;  %v3202_v40 = vpop.eup %3201  ;;  %v1756_v44 = vmin.f32 %v4936_v31, 20.0  ;;  %v1917_v62 = vmul.f32 1.442695, %v1769_v43  ;;  %v4974_v5 = vmul.f32 100.0, %v4945_v21 }
 0x26c   :  { %v1889_v0 = vmul.f32 1.442695, %v1755_v22  ;;  %v3204_v12 = vpop.eup %3203  ;;  %v2053_v22 = vadd.f32 1.0, %v3202_v40  ;;  %6483 = vst [vmem:[#allocation45_spill] sm:$0xff] %v4945_v21  ;;  %6485 = vst [vmem:[#allocation18_spill] sm:$0xff] %v4955_v14  ;;  %vm1833_vm13 = vcmp.gt.f32.partialorder %v4926_v58, 20.0 }
 0x26d   :  { %v1464_v46 = vpop.f32.mrb[44].mxu1  ;;  %v3206_v38 = vpop.eup %3205  ;;  %v1891_v23 = vmul.f32 1.442695, %v1756_v44  ;;  %6486 = vst [vmem:[#allocation47_spill] sm:$0xff] %v4974_v5  ;;  %v2038_v9 = vadd.f32 1.0, %v3204_v12  ;;  %v1770_v12 = vmin.f32 %v4974_v5, 20.0 }
 0x26e   :  { %3219 = vpow2.f32 %v1889_v0  ;;  %v4940_v47 = vpop.f32.mrb[45].mxu1  ;;  %v3208_v50 = vpop.eup %3207  ;;  %vm1819_vm14 = vcmp.gt.f32.partialorder %v4900_v29, 20.0 }
 0x26f   :  { %3221 = vlog2.f32 %v2008_v28  ;;  %v4947_v60 = vpop.f32.mrb[46].mxu1  ;;  %v4958_v28 = vadd.f32 %v1458_v25, %v4763_v24  ;;  %v4962_v40 = vpop.f32.mrb[48].mxu0  ;;  %v2055_v48 = vadd.f32 1.0, %v3208_v50  ;;  %v1919_v52 = vmul.f32 1.442695, %v1770_v12 }
 0x270   :  { %v4960_v0 = vpop.f32.mrb[47].mxu1  ;;  %3223 = vlog2.f32 %v2053_v22  ;;  %v4966_v53 = vpop.f32.mrb[49].mxu0  ;;  %v4977_v22 = vadd.f32 %v1460_v2, %v4763_v24 }
 0x271   :  { %v3210_v35 = vpop.eup %3209  ;;  %3225 = vpow2.f32 %v1917_v62  ;;  %v4969_v43 = vmul.f32 100.0, %v4958_v28  ;;  %v4971_v25 = vpop.f32.mrb[50].mxu0  ;;  %v5180_v58 = vadd.f32 %v4966_v53, %v4758_v32 }
 0x272   :  { %v3212_v11 = vpop.eup %3211  ;;  %3227 = vlog2.f32 %v2022_v26  ;;  %6487 = vst [vmem:[#allocation29_spill] sm:$0xff] %v4977_v22  ;;  %v4979_v37 = vpop.f32.mrb[51].mxu0  ;;  %v2040_v26 = vadd.f32 1.0, %v3206_v38  ;;  %v2134_v14 = vmul.f32 0.6931472, %v3210_v35  ;;  %v4997_v38 = vadd.f32 %v1464_v46, %v4805_v1 }
 0x273   :  { %v3214_v31 = vpop.eup %3213  ;;  %3229 = vlog2.f32 %v2055_v48  ;;  %v1771_v62 = vmin.f32 %v4969_v43, 20.0  ;;  %v4990_v48 = vmul.f32 100.0, %v4977_v22  ;;  %v5001_v35 = vadd.f32 %v4907_v51, %v4805_v1  ;;  %6514 = vst [vmem:[#allocation75_spill] sm:$0xff] %v5180_v58 }
 0x274   :  { %v3216_v50 = vpop.eup %3215  ;;  %3231 = vpow2.f32 %v1887_v36  ;;  %v2138_v22 = vmul.f32 0.6931472, %v3214_v31  ;;  %v2054_v5 = vadd.f32 1.0, %v3212_v11  ;;  %v5020_v16 = vmul.f32 100.0, %v4997_v38 }
 0x275   :  { %v4982_v41 = vpop.f32.mrb[48].mxu1  ;;  %3233 = vlog2.f32 %v2024_v18  ;;  %v2009_v44 = vadd.f32 1.0, %v3216_v50  ;;  %v1921_v21 = vmul.f32 1.442695, %v1771_v62  ;;  %v3218_v2 = vpop.eup %3217  ;;  %6488 = vst [vmem:[#allocation56_spill] sm:$0xff] %v4990_v48  ;;  %v4994_v18 = vadd.f32 %v4905_v54, %v4805_v1  ;;  %6489 = vst [vmem:[#allocation63_spill] sm:$0xff] %v5001_v35 }
 0x276   :  { %v4985_v34 = vpop.f32.mrb[49].mxu1  ;;  %3235 = vpow2.f32 %v1891_v23  ;;  %v1772_v51 = vmin.f32 %v4990_v48, 20.0  ;;  %v5028_v48 = vmul.f32 100.0, %v5001_v35  ;;  %v2231_v30 = vmul.f32 0.01, %v2138_v22 }
 0x277   :  { %3237 = vlog2.f32 %v2038_v9  ;;  %v5003_v62 = vpop.f32.mrb[50].mxu1  ;;  %v5005_v23 = vpop.f32.mrb[52].mxu0  ;;  %v5017_v46 = vmul.f32 100.0, %v4994_v18  ;;  %vm1835_vm15 = vcmp.gt.f32.partialorder %v4969_v43, 20.0  ;;  %vm1851_vm2 = vcmp.gt.f32.partialorder %v5020_v16, 20.0 }
 0x278   :  { %v3220_v36 = vpop.eup %3219  ;;  %3239 = vlog2.f32 %v2009_v44  ;;  %v5009_v56 = vpop.f32.mrb[51].mxu1  ;;  %v2229_v44 = vmul.f32 0.01, %v2134_v14  ;;  %6491 = vst [vmem:[#allocation32_spill] sm:$0xff] %v5028_v48  ;;  %v1923_v55 = vmul.f32 1.442695, %v1772_v51 }
 0x279   :  { %v5007_v50 = vpop.eup %3221  ;;  %v2011_v9 = vadd.f32 1.0, %v3220_v36  ;;  %v5011_v54 = vpop.f32.mrb[53].mxu0  ;;  %3241 = vpow2.f32 %v1921_v21  ;;  %v2056_v36 = vadd.f32 1.0, %v3218_v2  ;;  %v1785_v21 = vmin.f32 %v5017_v46, 20.0 }
 0x27a   :  { %6490 = vst [vmem:[#allocation19_spill] sm:$0xff] %v5007_v50  ;;  %v5022_v31 = vpop.f32.mrb[54].mxu0  ;;  %v3224_v11 = vpop.eup %3223  ;;  %3243 = vlog2.f32 %v2040_v26  ;;  %v5032_v50 = vadd.f32 %v4940_v47, %v4805_v1  ;;  %v1787_v26 = vmin.f32 %v5020_v16, 20.0  ;;  %v5042_v47 = vsel %vm1845_vm8, %v4812_v59, %v2229_v44 }
 0x27b   :  { %v5024_v57 = vpop.f32.mrb[55].mxu0  ;;  %v3226_v17 = vpop.eup %3225  ;;  %v2166_v49 = vmul.f32 0.6931472, %v3224_v11  ;;  %3245 = vlog2.f32 %v2054_v5  ;;  %v1949_v7 = vmul.f32 1.442695, %v1785_v21  ;;  %6493 = vst [vmem:[#allocation58_spill] sm:$0xff] %v5042_v47 }
 0x27c   :  { %6492 = vst [vmem:[#allocation59_spill] sm:$0xff] %v5032_v50  ;;  %v5034_v39 = vpop.eup %3227  ;;  %v2025_v14 = vadd.f32 1.0, %v3226_v17  ;;  %3247 = vlog2.f32 %v2011_v9  ;;  %v1953_v22 = vmul.f32 1.442695, %v1787_v26  ;;  %v1786_v9 = vmin.f32 %v5028_v48, 20.0 }
 0x27d   :  { %v5037_v2 = vpop.f32.mrb[52].mxu1  ;;  %v3230_v12 = vpop.eup %3229  ;;  %v2245_v11 = vmul.f32 0.01, %v2166_v49  ;;  %v5055_v51 = vmul.f32 100.0, %v5032_v50  ;;  %v5076_v50 = vadd.f32 %v4947_v60, %v4838_v19  ;;  %vm1849_vm0 = vcmp.gt.f32.partialorder %v5017_v46, 20.0 }
 0x27e   :  { %v3232_v35 = vpop.eup %3231  ;;  %v2170_v10 = vmul.f32 0.6931472, %v3230_v12  ;;  %3249 = vlog2.f32 %v2025_v14  ;;  %v5044_v5 = vpop.f32.mrb[53].mxu1  ;;  %v1951_v20 = vmul.f32 1.442695, %v1786_v9 }
 0x27f   :  { %v5046_v17 = vpop.eup %3233  ;;  %v5051_v49 = vsel %vm1861_vm9, %v4842_v61, %v2245_v11  ;;  %3251 = vpow2.f32 %v1919_v52  ;;  %6495 = vst [vmem:[#allocation43_spill] sm:$0xff] %v5055_v51  ;;  %v5057_v59 = vpop.f32.mrb[54].mxu1  ;;  %v5065_v61 = vadd.f32 %v4913_v45, %v4838_v19  ;;  %v2010_v12 = vadd.f32 1.0, %v3232_v35 }
 0x280   :  { %6494 = vst [vmem:[#allocation71_spill] sm:$0xff] %v5051_v49  ;;  %v5059_v13 = vpop.f32.mrb[56].mxu0  ;;  %v3236_v44 = vpop.eup %3235  ;;  %v2247_v14 = vmul.f32 0.01, %v2170_v10  ;;  %3253 = vpow2.f32 %v1949_v7  ;;  %v1788_v11 = vmin.f32 %v5055_v51, 20.0  ;;  %v5083_v45 = vsel %vm1847_vm10, %v4815_v27, %v2231_v30 }
 0x281   :  { %v5067_v3 = vpop.f32.mrb[55].mxu1  ;;  %v5069_v52 = vpop.f32.mrb[57].mxu0  ;;  %3255 = vpow2.f32 %v1953_v22  ;;  %6497 = vst [vmem:[#allocation62_spill] sm:$0xff] %v5083_v45  ;;  %v5091_v35 = vmul.f32 100.0, %v5065_v61  ;;  %v2012_v48 = vadd.f32 1.0, %v3236_v44  ;;  %v5098_v33 = vmul.f32 100.0, %v5076_v50 }
 0x282   :  { %v5071_v26 = vpop.eup %3237  ;;  %v5078_v10 = vpop.f32.mrb[58].mxu0  ;;  %v5088_v21 = vsel %vm1863_vm11, %v4855_v8, %v2247_v14  ;;  %3257 = vpow2.f32 %v1923_v55  ;;  %v5102_v27 = vadd.f32 %v4928_v6, %v4838_v19  ;;  %v1955_v51 = vmul.f32 1.442695, %v1788_v11 }
 0x283   :  { %6496 = vst [vmem:[#allocation53_spill] sm:$0xff] %v5071_v26  ;;  %v3240_v7 = vpop.eup %3239  ;;  %6498 = vst [vmem:[#allocation67_spill] sm:$0xff] %v5088_v21  ;;  %v5093_v22 = vpop.f32.mrb[59].mxu0  ;;  %3259 = vlog2.f32 %v2056_v36  ;;  %v1801_v30 = vmin.f32 %v5091_v35, 20.0  ;;  %v1803_v44 = vmin.f32 %v5098_v33, 20.0  ;;  %v5123_v11 = vadd.f32 %v4960_v0, %v4838_v19 }
 0x284   :  { %6499 = vst [vmem:[#allocation77_spill] sm:$0xff] %v5093_v22  ;;  %v3242_v60 = vpop.eup %3241  ;;  %6500 = vst [vmem:[#allocation30_spill] sm:$0xff] %v5102_v27  ;;  %v2078_v47 = vmul.f32 0.6931472, %v3240_v7  ;;  %3261 = vlog2.f32 %v2010_v12  ;;  %v5127_v7 = vadd.f32 %v4962_v40, %v4758_v32  ;;  %vm1865_vm3 = vcmp.gt.f32.partialorder %v5091_v35, 20.0 }
 0x285   :  { %v5104_v8 = vpop.eup %3243  ;;  %v2027_v55 = vadd.f32 1.0, %v3242_v60  ;;  %v5107_v14 = vpop.f32.mrb[56].mxu1  ;;  %v1981_v6 = vmul.f32 1.442695, %v1801_v30  ;;  %v1985_v9 = vmul.f32 1.442695, %v1803_v44 }
 0x286   :  { %6501 = vst [vmem:[#allocation72_spill] sm:$0xff] %v5104_v8  ;;  %v5110_v45 = vpop.f32.mrb[57].mxu1  ;;  %v5112_v21 = vpop.eup %3245  ;;  %v5118_v60 = vmul.f32 100.0, %v5102_v27  ;;  %6504 = vst [vmem:[#allocation44_spill] sm:$0xff] %v5123_v11  ;;  %v2201_v44 = vmul.f32 0.01, %v2078_v47 }
 0x287   :  { %6502 = vst [vmem:[#allocation65_spill] sm:$0xff] %v5112_v21  ;;  %3263 = vlog2.f32 %v2027_v55  ;;  %v5114_v49 = vpop.f32.mrb[58].mxu1  ;;  %v3248_v36 = vpop.eup %3247  ;;  %v5137_v0 = vmul.f32 100.0, %v5123_v11  ;;  %v5140_v40 = vmul.f32 100.0, %v5127_v7  ;;  %vm1867_vm4 = vcmp.gt.f32.partialorder %v5098_v33, 20.0 }
 0x288   :  { %3265 = vlog2.f32 %v2012_v48  ;;  %6503 = vst [vmem:[#allocation64_spill] sm:$0xff] %v5118_v60  ;;  %v3250_v12 = vpop.eup %3249  ;;  %v5129_v55 = vpop.f32.mrb[59].mxu1  ;;  %v1802_v8 = vmin.f32 %v5118_v60, 20.0  ;;  %v2082_v26 = vmul.f32 0.6931472, %v3248_v36 }
 0x289   :  { %3267 = vpow2.f32 %v1951_v20  ;;  %6505 = vst [vmem:[#allocation74_spill] sm:$0xff] %v5129_v55  ;;  %v5131_v30 = vpop.f32.mrb[60].mxu0  ;;  %v3252_v48 = vpop.eup %3251  ;;  %v2110_v27 = vmul.f32 0.6931472, %v3250_v12  ;;  %6508 = vst [vmem:[#allocation69_spill] sm:$0xff] %v5137_v0  ;;  %v5147_v12 = vadd.f32 %v4982_v41, %v4758_v32  ;;  %v1757_v22 = vmin.f32 %v5140_v40, 20.0 }
 0x28a   :  { %6506 = vst [vmem:[#allocation4_spill] sm:$0xff] %v5131_v30  ;;  %3269 = vpow2.f32 %v1955_v51  ;;  %v5134_v21 = vpop.f32.mrb[61].mxu0  ;;  %v3254_v20 = vpop.eup %3253  ;;  %v1983_v60 = vmul.f32 1.442695, %v1802_v8  ;;  %vm1821_vm7 = vcmp.gt.f32.partialorder %v5140_v40, 20.0 }
 0x28b   :  { %6507 = vst [vmem:[#allocation70_spill] sm:$0xff] %v5134_v21  ;;  %3271 = vpow2.f32 %v1981_v6  ;;  %v5142_v55 = vpop.f32.mrb[62].mxu0  ;;  %v3256_v30 = vpop.eup %3255  ;;  %v2217_v47 = vmul.f32 0.01, %v2110_v27  ;;  %v2041_v51 = vadd.f32 1.0, %v3254_v20  ;;  %v1804_v21 = vmin.f32 %v5137_v0, 20.0 }
 0x28c   :  { %6509 = vst [vmem:[#allocation5_spill] sm:$0xff] %v5142_v55  ;;  %3273 = vpow2.f32 %v1985_v9  ;;  %v5149_v36 = vpop.f32.mrb[63].mxu0  ;;  %v3258_v6 = vpop.eup %3257  ;;  %v2043_v11 = vadd.f32 1.0, %v3256_v30  ;;  %v5158_v27 = vsel %vm1817_vm12, %v4878_v63, %v2201_v44  ;;  %v2026_v9 = vadd.f32 1.0, %v3252_v48 }
 0x28d   :  { %6510 = vst [vmem:[#allocation55_spill] sm:$0xff] %v5149_v36  ;;  %v5153_v55 = vpop.f32.mrb[60].mxu1  ;;  %6511 = vst [vmem:[#allocation57_spill] sm:$0xff] %v5158_v27  ;;  %v5163_v41 = vsel %vm1833_vm13, %v4896_v15, %v2217_v47  ;;  %3275 = vlog2.f32 %v2041_v51  ;;  %v5167_v8 = vpop.eup %3259  ;;  %v2203_v20 = vmul.f32 0.01, %v2082_v26  ;;  %v5176_v15 = vmul.f32 100.0, %v5147_v12 }
 0x28e   :  { %6512 = vst [vmem:[#allocation61_spill] sm:$0xff] %v5163_v41  ;;  %v5165_v30 = vpop.f32.mrb[61].mxu1  ;;  %3277 = vlog2.f32 %v2043_v11  ;;  %v1987_v36 = vmul.f32 1.442695, %v1804_v21  ;;  %v5173_v63 = vpop.eup %3261  ;;  %v1893_v44 = vmul.f32 1.442695, %v1757_v22  ;;  %v5184_v26 = vadd.f32 %v4985_v34, %v4758_v32 }
 0x28f   :  { %v5171_v42 = vpop.f32.mrb[62].mxu1  ;;  %6513 = vst [vmem:[#allocation76_spill] sm:$0xff] %v5173_v63  ;;  %v2028_v21 = vadd.f32 1.0, %v3258_v6  ;;  %3279 = vpow2.f32 %v1983_v60  ;;  %v5190_v47 = vadd.f32 %v4971_v25, %v4763_v24  ;;  %v5194_v22 = vadd.f32 %v5003_v62, %v4763_v24 }
 0x290   :  { %6515 = vst [vmem:[#allocation60_spill] sm:$0xff] %v5184_v26  ;;  %v5186_v48 = vpop.f32.mrb[63].mxu1  ;;  %3281 = vlog2.f32 %v2026_v9  ;;  %v1759_v34 = vmin.f32 %v5176_v15, 20.0  ;;  %v5201_v60 = vmul.f32 100.0, %v5180_v58  ;;  %v5204_v25 = vmul.f32 100.0, %v5184_v26 }
 0x291   :  { %6516 = vst [vmem:[#allocation66_spill] sm:$0xff] %v5186_v48  ;;  %v3264_v11 = vpop.eup %3263  ;;  %3283 = vpow2.f32 %v1987_v36  ;;  %v5207_v6 = vmul.f32 100.0, %v5190_v47  ;;  %v5215_v36 = vsel %vm1819_vm14, %v4893_v4, %v2203_v20  ;;  %vm1823_vm8 = vcmp.gt.f32.partialorder %v5176_v15, 20.0 }
 0x292   :  { %v5196_v51 = vpop.eup %3265  ;;  %v2114_v53 = vmul.f32 0.6931472, %v3264_v11  ;;  %6518 = vst [vmem:[#allocation28_spill] sm:$0xff] %v5201_v60  ;;  %6519 = vst [vmem:[#allocation73_spill] sm:$0xff] %v5204_v25  ;;  %3285 = vpow2.f32 %v1893_v44  ;;  %v1897_v41 = vmul.f32 1.442695, %v1759_v34 }
 0x293   :  { %6517 = vst [vmem:[#allocation68_spill] sm:$0xff] %v5196_v51  ;;  %v3268_v0 = vpop.eup %3267  ;;  %v5210_v11 = vmul.f32 100.0, %v5194_v22  ;;  %6520 = vst [vmem:[#allocation7_spill] sm:$0xff] %v5215_v36  ;;  %3287 = vlog2.f32 %v2028_v21  ;;  %v1758_v26 = vmin.f32 %v5201_v60, 20.0  ;;  %v1760_v58 = vmin.f32 %v5204_v25, 20.0 }
 0x294   :  { %v3270_v62 = vpop.eup %3269  ;;  %v2219_v27 = vmul.f32 0.01, %v2114_v53  ;;  %3289 = vpow2.f32 %v1897_v41  ;;  %v1773_v34 = vmin.f32 %v5207_v6, 20.0  ;;  %v2042_v43 = vadd.f32 1.0, %v3268_v0 }
 0x295   :  { %v3272_v9 = vpop.eup %3271  ;;  %v1895_v20 = vmul.f32 1.442695, %v1758_v26  ;;  %v1899_v21 = vmul.f32 1.442695, %v1760_v58  ;;  %v1775_v25 = vmin.f32 %v5210_v11, 20.0  ;;  %v5237_v26 = vadd.f32 %v5009_v56, %v4763_v24 }
 0x296   :  { %v3274_v51 = vpop.eup %3273  ;;  %v5222_v44 = vsel %vm1835_vm15, %v4958_v28, %v2219_v27  ;;  %v2057_v53 = vadd.f32 1.0, %v3272_v9  ;;  %v1925_v60 = vmul.f32 1.442695, %v1773_v34  ;;  %v5230_v28 = vadd.f32 %v4979_v37, %v4763_v24 }
 0x297   :  { %6521 = vst [vmem:[#allocation2_spill] sm:$0xff] %v5222_v44  ;;  %v2059_v4 = vadd.f32 1.0, %v3274_v51  ;;  %v3276_v63 = vpop.eup %3275  ;;  %v2044_v27 = vadd.f32 1.0, %v3270_v62  ;;  %v1929_v41 = vmul.f32 1.442695, %v1775_v25  ;;  %6523 = vst [vmem:[#allocation22_spill] sm:$0xff] %v5237_v26  ;;  %v5243_v37 = vadd.f32 %v5005_v23, %v4805_v1 }
 0x298   :  { %3291 = vlog2.f32 %v2057_v53  ;;  %v3278_v48 = vpop.eup %3277  ;;  %6522 = vst [vmem:[#allocation27_spill] sm:$0xff] %v5230_v28  ;;  %v2142_v29 = vmul.f32 0.6931472, %v3276_v63  ;;  %v5233_v58 = vmul.f32 100.0, %v5230_v28  ;;  %v5253_v34 = vmul.f32 100.0, %v5237_v26 }
 0x299   :  { %3293 = vlog2.f32 %v2059_v4  ;;  %v3280_v9 = vpop.eup %3279  ;;  %v2146_v62 = vmul.f32 0.6931472, %v3278_v48  ;;  %v5260_v48 = vadd.f32 %v5037_v2, %v4805_v1  ;;  %vm1837_vm9 = vcmp.gt.f32.partialorder %v5207_v6, 20.0 }
 0x29a   :  { %3295 = vpow2.f32 %v1895_v20  ;;  %v5239_v51 = vpop.eup %3281  ;;  %v1774_v63 = vmin.f32 %v5233_v58, 20.0  ;;  %v2058_v56 = vadd.f32 1.0, %v3280_v9  ;;  %6524 = vst [vmem:[#allocation6_spill] sm:$0xff] %v5253_v34  ;;  %vm1839_vm10 = vcmp.gt.f32.partialorder %v5210_v11, 20.0 }
 0x29b   :  { %3297 = vpow2.f32 %v1899_v21  ;;  %v3284_v0 = vpop.eup %3283  ;;  %v5256_v21 = vmul.f32 100.0, %v5243_v37  ;;  %v5272_v26 = vmul.f32 100.0, %v5260_v48 }
 0x29c   :  { %3299 = vpow2.f32 %v1925_v60  ;;  %v3286_v25 = vpop.eup %3285  ;;  %v2233_v60 = vmul.f32 0.01, %v2142_v29  ;;  %v1927_v20 = vmul.f32 1.442695, %v1774_v63  ;;  %v2060_v29 = vadd.f32 1.0, %v3284_v0 }
 0x29d   :  { %3301 = vpow2.f32 %v1929_v41  ;;  %v5249_v53 = vpop.eup %3287  ;;  %v2013_v23 = vadd.f32 1.0, %v3286_v25  ;;  %v5268_v41 = vadd.f32 %v5044_v5, %v4805_v1  ;;  %v2235_v63 = vmul.f32 0.01, %v2146_v62 }
 0x29e   :  { %3303 = vlog2.f32 %v2042_v43  ;;  %v3290_v4 = vpop.eup %3289  ;;  %v5264_v43 = vadd.f32 %v5011_v54, %v4805_v1  ;;  %v1789_v25 = vmin.f32 %v5256_v21, 20.0  ;;  %v1776_v54 = vmin.f32 %v5253_v34, 20.0 }
 0x29f   :  { %3305 = vlog2.f32 %v2044_v27  ;;  %v2015_v27 = vadd.f32 1.0, %v3290_v4  ;;  %6526 = vst [vmem:[#allocation9_spill] sm:$0xff] %v5268_v41  ;;  %v1791_v62 = vmin.f32 %v5272_v26, 20.0  ;;  %v5282_v36 = vsel %vm1849_vm0, %v4994_v18, %v2233_v60 }
 0x2a0   :  { %6525 = vst [vmem:[#allocation34_spill] sm:$0xff] %v5264_v43  ;;  %3307 = vlog2.f32 %v2013_v23  ;;  %v5276_v0 = vmul.f32 100.0, %v5264_v43  ;;  %v1957_v5 = vmul.f32 1.442695, %v1789_v25  ;;  %6528 = vst [vmem:[#allocation31_spill] sm:$0xff] %v5282_v36  ;;  %v5294_v25 = vadd.f32 %v5022_v31, %v4838_v19  ;;  %v6541_v43 = vld [vmem:[#allocation11_spill] sm:$0xff] }
 0x2a1   :  { %3309 = vlog2.f32 %v2058_v56  ;;  %v1961_v60 = vmul.f32 1.442695, %v1791_v62  ;;  %vm1816_vm11 = vcmp.gt.f32.partialorder %v6541_v43, 20.0  ;;  %v5357_v36 = vadd.f32 %v5059_v13, %v4758_v32 }
 0x2a2   :  { %v3292_v9 = vpop.eup %3291  ;;  %3311 = vlog2.f32 %v2015_v27  ;;  %6527 = vst [vmem:[#allocation23_spill] sm:$0xff] %v5276_v0  ;;  %v5285_v27 = vmul.f32 100.0, %v5268_v41  ;;  %v5317_v62 = vmul.f32 100.0, %v5294_v25  ;;  %vm1853_vm14 = vcmp.gt.f32.partialorder %v5256_v21, 20.0 }
 0x2a3   :  { %v3294_v2 = vpop.eup %3293  ;;  %v2174_v28 = vmul.f32 0.6931472, %v3292_v9  ;;  %3313 = vpow2.f32 %v1927_v20 }
 0x2a4   :  { %v3296_v23 = vpop.eup %3295  ;;  %v2178_v4 = vmul.f32 0.6931472, %v3294_v2  ;;  %3315 = vlog2.f32 %v2060_v29  ;;  %6529 = vst [vmem:[#allocation8_spill] sm:$0xff] %v5285_v27  ;;  %v5290_v2 = vsel %vm1851_vm2, %v4997_v38, %v2235_v63  ;;  %v1790_v29 = vmin.f32 %v5276_v0, 20.0 }
 0x2a5   :  { %v3298_v56 = vpop.eup %3297  ;;  %v2249_v44 = vmul.f32 0.01, %v2174_v28  ;;  %6530 = vst [vmem:[#allocation36_spill] sm:$0xff] %v5290_v2  ;;  %3317 = vpow2.f32 %v1957_v5  ;;  %v1931_v63 = vmul.f32 1.442695, %v1776_v54  ;;  %v2014_v35 = vadd.f32 1.0, %v3296_v23 }
 0x2a6   :  { %v3300_v9 = vpop.eup %3299  ;;  %v2251_v20 = vmul.f32 0.01, %v2178_v4  ;;  %v2016_v5 = vadd.f32 1.0, %v3298_v56  ;;  %v1959_v54 = vmul.f32 1.442695, %v1790_v29  ;;  %v1805_v56 = vmin.f32 %v5317_v62, 20.0 }
 0x2a7   :  { %v3302_v46 = vpop.eup %3301  ;;  %v5299_v18 = vsel %vm1865_vm3, %v5065_v61, %v2249_v44  ;;  %v2029_v28 = vadd.f32 1.0, %v3300_v9  ;;  %v1792_v44 = vmin.f32 %v5285_v27, 20.0  ;;  %v5325_v9 = vadd.f32 %v5024_v57, %v4838_v19  ;;  %v6537_v29 = vld [vmem:[#allocation39_spill] sm:$0xff]  ;;  %v6542_v2 = vld [vmem:[#allocation21_spill] sm:$0xff] }
 0x2a8   :  { %6531 = vst [vmem:[#allocation24_spill] sm:$0xff] %v5299_v18  ;;  %v5302_v41 = vpop.eup %3303  ;;  %v5309_v38 = vsel %vm1867_vm4, %v5076_v50, %v2251_v20  ;;  %v2031_v31 = vadd.f32 1.0, %v3302_v46  ;;  %v5321_v50 = vadd.f32 %v5057_v59, %v4838_v19  ;;  %vm1814_vm5 = vcmp.gt.f32.partialorder %v6537_v29, 20.0 }
 0x2a9   :  { %6532 = vst [vmem:[#allocation3_spill] sm:$0xff] %v5309_v38  ;;  %v5311_v4 = vpop.eup %3305  ;;  %3319 = vlog2.f32 %v2029_v28  ;;  %6534 = vst [vmem:[#allocation35_spill] sm:$0xff] %v5325_v9  ;;  %v1963_v46 = vmul.f32 1.442695, %v1792_v44  ;;  %v5334_v59 = vmul.f32 100.0, %v5325_v9  ;;  %vm1869_vm0 = vcmp.gt.f32.partialorder %v5317_v62, 20.0 }
 0x2aa   :  { %6533 = vst [vmem:[#allocation26_spill] sm:$0xff] %v5311_v4  ;;  %3321 = vlog2.f32 %v2031_v31  ;;  %v3308_v33 = vpop.eup %3307  ;;  %v5331_v28 = vmul.f32 100.0, %v5321_v50  ;;  %v6538_v31 = vld [vmem:[#allocation10_spill] sm:$0xff]  ;;  %v1989_v61 = vmul.f32 1.442695, %v1805_v56  ;;  %vm1855_vm2 = vcmp.gt.f32.partialorder %v5272_v26, 20.0 }
 0x2ab   :  { %3323 = vpow2.f32 %v1961_v60  ;;  %v5327_v23 = vpop.eup %3309  ;;  %6536 = vst [vmem:[#allocation78_spill] sm:$0xff] %v5334_v59  ;;  %vm1830_vm6 = vcmp.gt.f32.partialorder %v6538_v31, 20.0  ;;  %v2086_v57 = vmul.f32 0.6931472, %v3308_v33  ;;  %v2072_v38 = vmul.f32 0.6931472, %v6542_v2 }
 0x2ac   :  { %6535 = vst [vmem:[#allocation25_spill] sm:$0xff] %v5327_v23  ;;  %3325 = vpow2.f32 %v1931_v63  ;;  %v3312_v20 = vpop.eup %3311  ;;  %v5340_v63 = vadd.f32 %v5067_v3, %v4838_v19  ;;  %v1807_v16 = vmin.f32 %v5331_v28, 20.0  ;;  %vm1871_vm3 = vcmp.gt.f32.partialorder %v5331_v28, 20.0  ;;  %v6576_v26 = vld [vmem:[#allocation42_spill] sm:$0xff] }
 0x2ad   :  { %3327 = vlog2.f32 %v2014_v35  ;;  %v3314_v60 = vpop.eup %3313  ;;  %v2090_v44 = vmul.f32 0.6931472, %v3312_v20  ;;  %v2205_v20 = vmul.f32 0.01, %v2086_v57  ;;  %v2198_v13 = vmul.f32 0.01, %v2072_v38 }
 0x2ae   :  { %3329 = vlog2.f32 %v2016_v5  ;;  %6539 = vst [vmem:[#allocation39_spill] sm:$0xff] %v5340_v63  ;;  %v5342_v35 = vpop.eup %3315  ;;  %v1806_v5 = vmin.f32 %v5334_v59, 20.0  ;;  %v2030_v3 = vadd.f32 1.0, %v3314_v60  ;;  %v1993_v56 = vmul.f32 1.442695, %v1807_v16  ;;  %v5537_v28 = vld [vmem:[%s6053_s5] sm:$0xff]  }
 0x2af   :  { %6540 = vst [vmem:[#allocation10_spill] sm:$0xff] %v5342_v35  ;;  %3331 = vpow2.f32 %v1959_v54  ;;  %v3318_v9 = vpop.eup %3317  ;;  %v5352_v54 = vmul.f32 100.0, %v5340_v63  ;;  %v2207_v59 = vmul.f32 0.01, %v2090_v44  ;;  %v2104_v16 = vmul.f32 0.6931472, %v5034_v39 }
 0x2b0   :  { %3333 = vpow2.f32 %v1989_v61  ;;  %v2045_v33 = vadd.f32 1.0, %v3318_v9  ;;  %v6543_v61 = vld [vmem:[#allocation14_spill] sm:$0xff]  ;;  %v1991_v9 = vmul.f32 1.442695, %v1806_v5  ;;  %v6544_v63 = vld [vmem:[#allocation19_spill] sm:$0xff]  ;;  %v5365_v5 = vmul.f32 100.0, %v5357_v36 }
 0x2b1   :  { %3335 = vpow2.f32 %v1963_v46  ;;  %vm1832_vm12 = vcmp.gt.f32.partialorder %v6543_v61, 20.0  ;;  %v1808_v57 = vmin.f32 %v5352_v54, 20.0  ;;  %v2076_v27 = vmul.f32 0.6931472, %v6544_v63 }
 0x2b2   :  { %3337 = vlog2.f32 %v2045_v33  ;;  %v2214_v34 = vmul.f32 0.01, %v2104_v16  ;;  %v2108_v44 = vmul.f32 0.6931472, %v5046_v17  ;;  %v5380_v17 = vsel %vm1821_vm7, %v5127_v7, %v2205_v20  ;;  %v6547_v20 = vld [vmem:[#allocation40_spill] sm:$0xff] }
 0x2b3   :  { %v3320_v18 = vpop.eup %3319  ;;  %3339 = vpow2.f32 %v1993_v56  ;;  %v1995_v33 = vmul.f32 1.442695, %v1808_v57  ;;  %v6545_v56 = vld [vmem:[#allocation38_spill] sm:$0xff]  ;;  %v5390_v31 = vsel %vm1823_vm8, %v5147_v12, %v2207_v59  ;;  %v2200_v40 = vmul.f32 0.01, %v2076_v27  ;;  %v6551_v57 = vld [vmem:[#allocation15_spill] sm:$0xff] }
 0x2b4   :  { %v3322_v46 = vpop.eup %3321  ;;  %v2118_v60 = vmul.f32 0.6931472, %v3320_v18  ;;  %3341 = vlog2.f32 %v2030_v3  ;;  %v2262_v63 = vsel %vm1814_vm5, %v6545_v56, %v2198_v13  ;;  %v1761_v15 = vmin.f32 %v5365_v5, 20.0 }
 0x2b5   :  { %v3324_v2 = vpop.eup %3323  ;;  %v2122_v0 = vmul.f32 0.6931472, %v3322_v46  ;;  %v6546_v46 = vld [vmem:[#allocation41_spill] sm:$0xff]  ;;  %v2264_v11 = vsel %vm1816_vm11, %v6547_v20, %v2200_v40  ;;  %v5413_v13 = vadd.f32 %v5107_v14, %v4758_v32  ;;  %v5425_v61 = vadd.f32 %v5078_v10, %v4763_v24  ;;  %v6554_v10 = vld [vmem:[#allocation18_spill] sm:$0xff] }
 0x2b6   :  { %v3326_v35 = vpop.eup %3325  ;;  %v2221_v4 = vmul.f32 0.01, %v2118_v60  ;;  %v2047_v23 = vadd.f32 1.0, %v3324_v2  ;;  %v2278_v38 = vsel %vm1830_vm6, %v6546_v46, %v2214_v34  ;;  %v6549_v60 = vld [vmem:[#allocation33_spill] sm:$0xff]  ;;  %v1901_v2 = vmul.f32 1.442695, %v1761_v15 }
 0x2b7   :  { %v5367_v39 = vpop.eup %3327  ;;  %v2223_v18 = vmul.f32 0.01, %v2122_v0  ;;  %v2326_v16 = vpack.c.bf16 %v2278_v38, %v2262_v63  ;;  %v5428_v14 = vmul.f32 100.0, %v5413_v13  ;;  %v6555_v38 = vld [vmem:[#allocation54_spill] sm:$0xff]  ;;  %v5443_v40 = vmul.f32 100.0, %v5425_v61 }
 0x2b8   :  { %v5375_v3 = vpop.eup %3329  ;;  %v5385_v0 = vsel %vm1837_vm9, %v5190_v47, %v2221_v4  ;;  %3343 = vlog2.f32 %v2047_v23  ;;  %v2216_v4 = vmul.f32 0.01, %v2108_v44  ;;  %v2032_v23 = vadd.f32 1.0, %v3326_v35 }
 0x2b9   :  { %v3332_v29 = vpop.eup %3331  ;;  %v5397_v7 = vsel %vm1839_vm10, %v5194_v22, %v2223_v18  ;;  %3345 = vpow2.f32 %v1991_v9  ;;  %2392 = vmatprep.subr.bf16.mxu0 %v2326_v16  ;;  %v6548_v22 = vld [vmem:[#allocation52_spill] sm:$0xff]  ;;  %v5417_v35 = vadd.f32 %v5069_v52, %v4758_v32  ;;  %v5421_v18 = vadd.f32 %v5110_v45, %v4758_v32 }
 0x2ba   :  { %v3334_v6 = vpop.eup %3333  ;;  %3347 = vpow2.f32 %v1995_v33  ;;  %v6550_v27 = vpack.c.bf16 %v6548_v22, %v6549_v60  ;;  %v2280_v9 = vsel %vm1832_vm12, %v6551_v57, %v2216_v4  ;;  %v2046_v56 = vadd.f32 1.0, %v3332_v29 }
 0x2bb   :  { %v3336_v12 = vpop.eup %3335  ;;  %v2061_v59 = vadd.f32 1.0, %v3334_v6  ;;  %6552 = vst [vmem:[#allocation11_spill] sm:$0xff] %v5417_v35  ;;  %v2328_v43 = vpack.c.bf16 %v2280_v9, %v2264_v11  ;;  %6553 = vst [vmem:[#allocation21_spill] sm:$0xff] %v5421_v18  ;;  %v5431_v52 = vmul.f32 100.0, %v5417_v35  ;;  %v5436_v32 = vmul.f32 100.0, %v5421_v18 }
 0x2bc   :  { %2393 = vmatpush1.bf16.msra.mxu0 %v6550_v27  ;;  %v3338_v44 = vpop.eup %3337  ;;  %v6556_v16 = vpack.c.bf16 %v6554_v10, %v6555_v38  ;;  %v1763_v29 = vmin.f32 %v5428_v14, 20.0  ;;  %v5447_v6 = vadd.f32 %v5114_v49, %v4763_v24  ;;  %v6557_v27 = vld [vmem:[#allocation77_spill] sm:$0xff]  ;;  %v6562_v10 = vld [vmem:[#allocation48_spill] sm:$0xff]  ;;  %vm1825_vm6 = vcmp.gt.f32.partialorder %v5365_v5, 20.0 }
 0x2bd   :  { %3349 = vlog2.f32 %v2061_v59  ;;  %v3340_v33 = vpop.eup %3339  ;;  %2443 = vmatprep.subr.bf16.mxu1 %v2328_v43  ;;  %v2150_v45 = vmul.f32 0.6931472, %v3338_v44  ;;  %v1762_v4 = vmin.f32 %v5431_v52, 20.0  ;;  %v1764_v15 = vmin.f32 %v5436_v32, 20.0 }
 0x2be   :  { %3351 = vpow2.f32 %v1901_v2  ;;  %v5433_v63 = vpop.eup %3341  ;;  %v2063_v46 = vadd.f32 1.0, %v3340_v33  ;;  %2444 = vmatpush1.bf16.msra.mxu1 %v6556_v16  ;;  %v2048_v59 = vadd.f32 1.0, %v3336_v12  ;;  %v1905_v20 = vmul.f32 1.442695, %v1763_v29  ;;  %v6559_v2 = vld [vmem:[#allocation17_spill] sm:$0xff] }
 0x2bf   :  { %3353 = vlog2.f32 %v2032_v23  ;;  %v1903_v22 = vmul.f32 1.442695, %v1762_v4  ;;  %v1907_v60 = vmul.f32 1.442695, %v1764_v15  ;;  %v5453_v57 = vadd.f32 %v6557_v27, %v4763_v24 }
 0x2c0   :  { %3355 = vlog2.f32 %v2063_v46  ;;  %vm1846_vm13 = vcmp.gt.f32.partialorder %v6559_v2, 20.0  ;;  %v2237_v49 = vmul.f32 0.01, %v2150_v45  ;;  %v1777_v44 = vmin.f32 %v5443_v40, 20.0 }
 0x2c1   :  { %3357 = vlog2.f32 %v2046_v56  ;;  %6558 = vst [vmem:[#allocation14_spill] sm:$0xff] %v5453_v57  ;;  %v5458_v43 = vmul.f32 100.0, %v5447_v6  ;;  %v5462_v12 = vmul.f32 100.0, %v5453_v57  ;;  %v6560_v56 = vld [vmem:[#allocation74_spill] sm:$0xff]  ;;  %vm1862_vm15 = vcmp.gt.f32.partialorder %v6562_v10, 20.0 }
 0x2c2   :  { %v3344_v23 = vpop.eup %3343  ;;  %3359 = vpow2.f32 %v1905_v20  ;;  %v5466_v46 = vadd.f32 %v6560_v56, %v4763_v24  ;;  %v1933_v45 = vmul.f32 1.442695, %v1777_v44  ;;  %v6564_v20 = vld [vmem:[#allocation49_spill] sm:$0xff]  ;;  %v5512_v2 = vadd.f32 %v5153_v55, %v4805_v1 }
 0x2c3   :  { %v2154_v11 = vmul.f32 0.6931472, %v3344_v23  ;;  %v3346_v9 = vpop.eup %3345  ;;  %3361 = vpow2.f32 %v1903_v22  ;;  %v1779_v38 = vmin.f32 %v5458_v43, 20.0  ;;  %v1778_v15 = vmin.f32 %v5462_v12, 20.0  ;;  %v6563_v23 = vld [vmem:[#allocation12_spill] sm:$0xff]  ;;  %v6566_v56 = vld [vmem:[#allocation53_spill] sm:$0xff] }
 0x2c4   :  { %v3348_v33 = vpop.eup %3347  ;;  %6561 = vst [vmem:[#allocation19_spill] sm:$0xff] %v5466_v46  ;;  %3363 = vpow2.f32 %v1907_v60  ;;  %v2062_v4 = vadd.f32 1.0, %v3346_v9  ;;  %vm1848_vm4 = vcmp.gt.f32.partialorder %v6563_v23, 20.0  ;;  %vm1864_vm5 = vcmp.gt.f32.partialorder %v6564_v20, 20.0  ;;  %6572 = vst [vmem:[#allocation41_spill] sm:$0xff] %v5512_v2  ;;  %v6575_v55 = vld [vmem:[#allocation13_spill] sm:$0xff] }
 0x2c5   :  { %v2239_v29 = vmul.f32 0.01, %v2154_v11  ;;  %3365 = vlog2.f32 %v2048_v59  ;;  %v5479_v22 = vsel %vm1853_vm14, %v5243_v37, %v2237_v49  ;;  %v1937_v27 = vmul.f32 1.442695, %v1779_v38  ;;  %v6567_v37 = vld [vmem:[#allocation65_spill] sm:$0xff]  ;;  %v6578_v20 = vld [vmem:[#allocation58_spill] sm:$0xff] }
 0x2c6   :  { %6565 = vst [vmem:[#allocation38_spill] sm:$0xff] %v5479_v22  ;;  %v5482_v11 = vmul.f32 100.0, %v5466_v46  ;;  %3367 = vpow2.f32 %v1933_v45  ;;  %v1935_v44 = vmul.f32 1.442695, %v1778_v15  ;;  %v2136_v47 = vmul.f32 0.6931472, %v6566_v56 }
 0x2c7   :  { %v3350_v16 = vpop.eup %3349  ;;  %v2064_v18 = vadd.f32 1.0, %v3348_v33  ;;  %3369 = vpow2.f32 %v1937_v27  ;;  %v2168_v49 = vmul.f32 0.6931472, %v6567_v37  ;;  %v6569_v27 = vld [vmem:[#allocation46_spill] sm:$0xff]  ;;  %vm1827_vm7 = vcmp.gt.f32.partialorder %v5428_v14, 20.0 }
 0x2c8   :  { %v3352_v24 = vpop.eup %3351  ;;  %v2182_v60 = vmul.f32 0.6931472, %v3350_v16  ;;  %v1780_v57 = vmin.f32 %v5482_v11, 20.0  ;;  %v2230_v38 = vmul.f32 0.01, %v2136_v47  ;;  %v6568_v16 = vld [vmem:[#allocation72_spill] sm:$0xff] }
 0x2c9   :  { %v5484_v59 = vpop.eup %3353  ;;  %v2017_v9 = vadd.f32 1.0, %v3352_v24  ;;  %v2140_v46 = vmul.f32 0.6931472, %v6568_v16  ;;  %vm1841_vm10 = vcmp.gt.f32.partialorder %v5443_v40, 20.0  ;;  %vm1843_vm12 = vcmp.gt.f32.partialorder %v5458_v43, 20.0 }
 0x2ca   :  { %v2253_v34 = vmul.f32 0.01, %v2182_v60  ;;  %v3356_v21 = vpop.eup %3355  ;;  %v1939_v33 = vmul.f32 1.442695, %v1780_v57  ;;  %v2246_v60 = vmul.f32 0.01, %v2168_v49  ;;  %v2294_v47 = vsel %vm1846_vm13, %v6569_v27, %v2230_v38 }
 0x2cb   :  { %3371 = vlog2.f32 %v2017_v9  ;;  %v5490_v35 = vpop.eup %3357  ;;  %v2186_v15 = vmul.f32 0.6931472, %v3356_v21  ;;  %v2172_v9 = vmul.f32 0.6931472, %v5167_v8  ;;  %v2232_v16 = vmul.f32 0.01, %v2140_v46 }
 0x2cc   :  { %v5495_v45 = vsel %vm1869_vm0, %v5294_v25, %v2253_v34  ;;  %3373 = vpow2.f32 %v1935_v44  ;;  %v3360_v56 = vpop.eup %3359  ;;  %v6570_v25 = vld [vmem:[#allocation4_spill] sm:$0xff]  ;;  %v5517_v46 = vsel %vm1855_vm2, %v5260_v48, %v2239_v29 }
 0x2cd   :  { %v2255_v37 = vmul.f32 0.01, %v2186_v15  ;;  %3375 = vpow2.f32 %v1939_v33  ;;  %v5505_v62 = vadd.f32 %v6570_v25, %v4805_v1  ;;  %v3362_v34 = vpop.eup %3361  ;;  %v2019_v57 = vadd.f32 1.0, %v3360_v56  ;;  %v6571_v44 = vld [vmem:[#allocation16_spill] sm:$0xff]  ;;  %6573 = vst [vmem:[#allocation40_spill] sm:$0xff] %v5517_v46  ;;  %v6577_v56 = vld [vmem:[#allocation71_spill] sm:$0xff] }
 0x2ce   :  { %v2310_v21 = vsel %vm1862_vm15, %v6571_v44, %v2246_v60  ;;  %v2248_v49 = vmul.f32 0.01, %v2172_v9  ;;  %v3364_v8 = vpop.eup %3363  ;;  %v2018_v15 = vadd.f32 1.0, %v3362_v34  ;;  %v2296_v27 = vsel %vm1848_vm4, %v6575_v55, %v2232_v16  ;;  %v6594_v60 = vld [vmem:[#allocation66_spill] sm:$0xff] }
 0x2cf   :  { %v5522_v38 = vsel %vm1871_vm3, %v5321_v50, %v2255_v37  ;;  %v2342_v33 = vpack.c.bf16 %v2310_v21, %v2294_v47  ;;  %v5524_v10 = vpop.eup %3365  ;;  %3377 = vlog2.f32 %v2019_v57  ;;  %v5540_v29 = vmul.f32 100.0, %v5505_v62 }
 0x2d0   :  { %6574 = vst [vmem:[#allocation52_spill] sm:$0xff] %v5522_v38  ;;  %v2312_v48 = vsel %vm1864_vm5, %v6576_v26, %v2248_v49  ;;  %3379 = vlog2.f32 %v2062_v4  ;;  %v5543_v47 = vmul.f32 100.0, %v5512_v2  ;;  %v3368_v23 = vpop.eup %3367  ;;  %v2020_v9 = vadd.f32 1.0, %v3364_v8  ;;  %v6580_v4 = vld [vmem:[#allocation70_spill] sm:$0xff]  ;;  %v6583_v8 = vld [vmem:[#allocation67_spill] sm:$0xff] }
 0x2d1   :  { %2394 = vmatprep.subr.bf16.mxu0 %v2342_v33  ;;  %v2344_v50 = vpack.c.bf16 %v2312_v48, %v2296_v27  ;;  %3381 = vlog2.f32 %v2064_v18  ;;  %v6579_v37 = vpack.c.bf16 %v6577_v56, %v6578_v20  ;;  %v5550_v16 = vadd.f32 %v6580_v4, %v4805_v1  ;;  %v3370_v34 = vpop.eup %3369  ;;  %v6584_v33 = vld [vmem:[#allocation62_spill] sm:$0xff] }
 0x2d2   :  { %v5554_v25 = vadd.f32 %v5165_v30, %v4805_v1  ;;  %3383 = vlog2.f32 %v2018_v15  ;;  %v2033_v57 = vadd.f32 1.0, %v3368_v23  ;;  %v1793_v44 = vmin.f32 %v5540_v29, 20.0  ;;  %v6587_v30 = vld [vmem:[#allocation5_spill] sm:$0xff] }
 0x2d3   :  { %2395 = vmatpush1.bf16.msra.mxu0 %v6579_v37  ;;  %6581 = vst [vmem:[#allocation33_spill] sm:$0xff] %v5550_v16  ;;  %2445 = vmatprep.subr.bf16.mxu1 %v2344_v50  ;;  %v1795_v18 = vmin.f32 %v5543_v47, 20.0  ;;  %v2035_v49 = vadd.f32 1.0, %v3370_v34  ;;  %v6585_v55 = vpack.c.bf16 %v6583_v8, %v6584_v33  ;;  %v5562_v27 = vmul.f32 100.0, %v5550_v16  ;;  %v5592_v8 = vld [vmem:[%s6053_s5 + $0x8] ss:$0 sps:$4 sm:$0xff]  }
 0x2d4   :  { %6582 = vst [vmem:[#allocation15_spill] sm:$0xff] %v5554_v25  ;;  %v5565_v1 = vmul.f32 100.0, %v5554_v25  ;;  %v5569_v15 = vadd.f32 %v6587_v30, %v4838_v19  ;;  %3385 = vlog2.f32 %v2033_v57  ;;  %v1965_v48 = vmul.f32 1.442695, %v1793_v44  ;;  %v6589_v44 = vld [vmem:[#allocation20_spill] sm:$0xff]  ;;  %v6591_v33 = vld [vmem:[#allocation47_spill] sm:$0xff] }
 0x2d5   :  { %v3372_v21 = vpop.eup %3371  ;;  %2446 = vmatpush1.bf16.msra.mxu1 %v6585_v55  ;;  %v1969_v50 = vmul.f32 1.442695, %v1795_v18  ;;  %3387 = vlog2.f32 %v2035_v49  ;;  %v1794_v56 = vmin.f32 %v5562_v27, 20.0  ;;  %v6588_v20 = vmov 0   ;;  %v6597_v25 = vld [vmem:[#allocation76_spill] sm:$0xff] }
 0x2d6   :  { %6586 = vst [vmem:[#allocation18_spill] sm:$0xff] %v5565_v1  ;;  %v3374_v26 = vpop.eup %3373  ;;  %2890 = vmatmul.mubr.msk.bf16.vlgmr.msra.gmra.mrb[64].mxu0 %vm1254_vm1, %v5537_v28  ;;  %v2094_v23 = vmul.f32 0.6931472, %v3372_v21  ;;  %3389 = vpow2.f32 %v1965_v48  ;;  %v1796_v4 = vmin.f32 %v5565_v1, 20.0  ;;  %v5581_v57 = vmul.f32 100.0, %v5569_v15 }
 0x2d7   :  { %2434 = vmatprep.mubr.bf16.mxu0 %v6588_v20  ;;  %v3376_v37 = vpop.eup %3375  ;;  %3391 = vlog2.f32 %v2020_v9  ;;  %v1967_v34 = vmul.f32 1.442695, %v1794_v56  ;;  %vm1818_vm8 = vcmp.gt.f32.partialorder %v6589_v44, 20.0  ;;  %v2034_v18 = vadd.f32 1.0, %v3374_v26  ;;  %v6592_v26 = vld [vmem:[#allocation55_spill] sm:$0xff] }
 0x2d8   :  { %2892 = vmatmul.mubr.msk.bf16.vlgmr.msra.gmra.mrb[64].mxu1 %vm1254_vm1, %v5537_v28  ;;  %3393 = vpow2.f32 %v1969_v50  ;;  %v1971_v21 = vmul.f32 1.442695, %v1796_v4  ;;  %v5587_v49 = vadd.f32 %v5171_v42, %v4838_v19  ;;  %vm1834_vm9 = vcmp.gt.f32.partialorder %v6591_v33, 20.0 }
 0x2d9   :  { %2485 = vmatprep.mubr.bf16.mxu1 %v6588_v20  ;;  %v3378_v9 = vpop.eup %3377  ;;  %v2209_v55 = vmul.f32 0.01, %v2094_v23  ;;  %v2036_v30 = vadd.f32 1.0, %v3376_v37  ;;  %v1809_v48 = vmin.f32 %v5581_v57, 20.0  ;;  %v5598_v50 = vadd.f32 %v6592_v26, %v4838_v19 }
 0x2da   :  { %6590 = vst [vmem:[#allocation54_spill] sm:$0xff] %v5587_v49  ;;  %v5600_v56 = vpop.eup %3379  ;;  %v2098_v42 = vmul.f32 0.6931472, %v3378_v9  ;;  %3395 = vpow2.f32 %v1967_v34  ;;  %v5604_v4 = vmul.f32 100.0, %v5587_v49  ;;  %v5608_v24 = vadd.f32 %v6594_v60, %v4838_v19  ;;  %v6599_v19 = vld [vmem:[#allocation37_spill] sm:$0xff]  ;;  %v6603_v49 = vld [vmem:[#allocation64_spill] sm:$0xff] }
 0x2db   :  { %6593 = vst [vmem:[#allocation77_spill] sm:$0xff] %v5598_v50  ;;  %v5610_v23 = vpop.eup %3381  ;;  %3397 = vpow2.f32 %v1971_v21  ;;  %v1997_v37 = vmul.f32 1.442695, %v1809_v48  ;;  %v5613_v26 = vmul.f32 100.0, %v5598_v50  ;;  %v2080_v16 = vmul.f32 0.6931472, %v6597_v25 }
 0x2dc   :  { %6595 = vst [vmem:[#allocation17_spill] sm:$0xff] %v5608_v24  ;;  %v5616_v9 = vpop.eup %3383  ;;  %v2211_v1 = vmul.f32 0.01, %v2098_v42  ;;  %3399 = vlog2.f32 %v2034_v18  ;;  %v1811_v34 = vmin.f32 %v5604_v4, 20.0  ;;  %v5620_v46 = vmul.f32 100.0, %v5608_v24  ;;  %v6600_v24 = vld [vmem:[#allocation56_spill] sm:$0xff] }
 0x2dd   :  { %6596 = vst [vmem:[#allocation74_spill] sm:$0xff] %v5613_v26  ;;  %vm1820_vm11 = vcmp.gt.f32.partialorder %v6599_v19, 20.0  ;;  %3401 = vpow2.f32 %v1997_v37  ;;  %v1810_v60 = vmin.f32 %v5613_v26, 20.0  ;;  %v2112_v25 = vmul.f32 0.6931472, %v5239_v51 }
 0x2de   :  { %6598 = vst [vmem:[#allocation48_spill] sm:$0xff] %v5620_v46  ;;  %2891 = vmatmul.mubr.msk.bf16.gmra.mrb[68].mxu0 %vm1254_vm1, %v5592_v8  ;;  %v3386_v18 = vpop.eup %3385  ;;  %v5632_v21 = vsel %vm1825_vm6, %v5357_v36, %v2209_v55  ;;  %3403 = vlog2.f32 %v2036_v30  ;;  %v2001_v48 = vmul.f32 1.442695, %v1811_v34  ;;  %v1812_v42 = vmin.f32 %v5620_v46, 20.0  ;;  %v6602_v55 = vld [vmem:[#allocation32_spill] sm:$0xff] }
 0x2df   :  { %2526 = vmatprep.mubr.bf16.mxu0 %v6588_v20  ;;  %v3388_v37 = vpop.eup %3387  ;;  %vm1836_vm13 = vcmp.gt.f32.partialorder %v6600_v24, 20.0  ;;  %v5641_v51 = vsel %vm1827_vm7, %v5413_v13, %v2211_v1  ;;  %v2126_v50 = vmul.f32 0.6931472, %v3386_v18  ;;  %v1999_v26 = vmul.f32 1.442695, %v1810_v60  ;;  %v6604_v13 = vld [vmem:[#allocation50_spill] sm:$0xff] }
 0x2e0   :  { %2893 = vmatmul.mubr.msk.bf16.gmra.mrb[68].mxu1 %vm1254_vm1, %v5592_v8  ;;  %6601 = vst [vmem:[#allocation12_spill] sm:$0xff] %v5641_v51  ;;  %v2202_v5 = vmul.f32 0.01, %v2080_v16  ;;  %v3390_v36 = vpop.eup %3389  ;;  %vm1850_vm14 = vcmp.gt.f32.partialorder %v6602_v55, 20.0  ;;  %v2130_v30 = vmul.f32 0.6931472, %v3388_v37  ;;  %3405 = vpow2.f32 %v2001_v48 }
 0x2e1   :  { %2577 = vmatprep.mubr.bf16.mxu1 %v6588_v20  ;;  %v2003_v34 = vmul.f32 1.442695, %v1812_v42  ;;  %v2218_v46 = vmul.f32 0.01, %v2112_v25  ;;  %v5645_v38 = vpop.eup %3391  ;;  %vm1866_vm15 = vcmp.gt.f32.partialorder %v6603_v49, 20.0  ;;  %v2049_v14 = vadd.f32 1.0, %v3390_v36 }
 0x2e2   :  { %v2225_v2 = vmul.f32 0.01, %v2126_v50  ;;  %3407 = vpow2.f32 %v1999_v26  ;;  %v2266_v16 = vsel %vm1818_vm8, %v6604_v13, %v2202_v5  ;;  %v3394_v1 = vpop.eup %3393  ;;  %v6605_v60 = vld [vmem:[#allocation43_spill] sm:$0xff]  ;;  %v6606_v18 = vld [vmem:[#allocation69_spill] sm:$0xff]  ;;  %v2227_v37 = vmul.f32 0.01, %v2130_v30 }
 0x2e3   :  { %vm1852_vm0 = vcmp.gt.f32.partialorder %v6605_v60, 20.0  ;;  %vm1868_vm2 = vcmp.gt.f32.partialorder %v6606_v18, 20.0  ;;  %3409 = vpow2.f32 %v2003_v34  ;;  %v6607_v48 = vld [vmem:[#allocation45_spill] sm:$0xff]  ;;  %v6608_v42 = vld [vmem:[#allocation68_spill] sm:$0xff]  ;;  %v2051_v44 = vadd.f32 1.0, %v3394_v1  ;;  %v6623_v55 = vld [vmem:[#allocation59_spill] sm:$0xff] }
 0x2e4   :  { %v2282_v25 = vsel %vm1834_vm9, %v6607_v48, %v2218_v46  ;;  %v2084_v22 = vmul.f32 0.6931472, %v6608_v42  ;;  %v5660_v50 = vsel %vm1841_vm10, %v5425_v61, %v2225_v2  ;;  %3411 = vlog2.f32 %v2049_v14  ;;  %v3396_v5 = vpop.eup %3395  ;;  %v6609_v13 = vld [vmem:[#allocation28_spill] sm:$0xff]  ;;  %v6612_v1 = vld [vmem:[#allocation57_spill] sm:$0xff] }
 0x2e5   :  { %v2330_v26 = vpack.c.bf16 %v2282_v25, %v2266_v16  ;;  %v5667_v30 = vsel %vm1843_vm12, %v5447_v6, %v2227_v37  ;;  %v2116_v46 = vmul.f32 0.6931472, %v5249_v53  ;;  %v3398_v34 = vpop.eup %3397  ;;  %vm1822_vm3 = vcmp.gt.f32.partialorder %v6609_v13, 20.0  ;;  %v6610_v16 = vld [vmem:[#allocation51_spill] sm:$0xff]  ;;  %v6614_v48 = vld [vmem:[#allocation25_spill] sm:$0xff] }
 0x2e6   :  { %v2204_v33 = vmul.f32 0.01, %v2084_v22  ;;  %vm1838_vm4 = vcmp.gt.f32.partialorder %v5233_v58, 20.0  ;;  %3413 = vlog2.f32 %v2051_v44  ;;  %v2050_v40 = vadd.f32 1.0, %v3396_v5  ;;  %v5675_v14 = vpop.eup %3399  ;;  %v6611_v22 = vld [vmem:[#allocation61_spill] sm:$0xff]  ;;  %v6638_v58 = vld [vmem:[#allocation60_spill] sm:$0xff] }
 0x2e7   :  { %2494 = vmatprep.subr.bf16.mxu0 %v2330_v26  ;;  %v2144_v2 = vmul.f32 0.6931472, %v5302_v41  ;;  %v2052_v6 = vadd.f32 1.0, %v3398_v34  ;;  %v2220_v43 = vmul.f32 0.01, %v2116_v46  ;;  %v6613_v37 = vpack.c.bf16 %v6611_v22, %v6612_v1  ;;  %v3402_v42 = vpop.eup %3401  ;;  %v6615_v26 = vld [vmem:[#allocation26_spill] sm:$0xff] }
 0x2e8   :  { %v2268_v53 = vsel %vm1820_vm11, %v6610_v16, %v2204_v33  ;;  %v2176_v25 = vmul.f32 0.6931472, %v6614_v48  ;;  %3415 = vlog2.f32 %v2050_v40  ;;  %v2148_v5 = vmul.f32 0.6931472, %v6615_v26  ;;  %v6616_v41 = vld [vmem:[#allocation10_spill] sm:$0xff]  ;;  %v5686_v36 = vpop.eup %3403  ;;  %v6617_v46 = vld [vmem:[#allocation73_spill] sm:$0xff] }
 0x2e9   :  { %2495 = vmatpush1.bf16.msra.mxu0 %v6613_v37  ;;  %v2234_v44 = vmul.f32 0.01, %v2144_v2  ;;  %v2180_v61 = vmul.f32 0.6931472, %v6616_v41  ;;  %vm1824_vm5 = vcmp.gt.f32.partialorder %v6617_v46, 20.0  ;;  %v6618_v34 = vld [vmem:[#allocation6_spill] sm:$0xff]  ;;  %3417 = vlog2.f32 %v2052_v6 }
 0x2ea   :  { %vm1840_vm6 = vcmp.gt.f32.partialorder %v6618_v34, 20.0  ;;  %v2065_v19 = vadd.f32 1.0, %v3402_v42  ;;  %v6619_v33 = vld [vmem:[#allocation29_spill] sm:$0xff]  ;;  %v2250_v22 = vmul.f32 0.01, %v2176_v25  ;;  %v6620_v40 = vld [vmem:[#allocation63_spill] sm:$0xff]  ;;  %v3406_v26 = vpop.eup %3405  ;;  %v6640_v46 = vpack.c.bf16 %v5385_v0, %v5380_v17 }
 0x2eb   :  { %v2284_v16 = vsel %vm1836_vm13, %v6619_v33, %v2220_v43  ;;  %v2298_v2 = vsel %vm1850_vm14, %v6620_v40, %v2234_v44  ;;  %v2236_v37 = vmul.f32 0.01, %v2148_v5  ;;  %v2252_v48 = vmul.f32 0.01, %v2180_v61  ;;  %v6621_v41 = vld [vmem:[#allocation30_spill] sm:$0xff]  ;;  %v6622_v43 = vld [vmem:[#allocation23_spill] sm:$0xff] }
 0x2ec   :  { %v2332_v1 = vpack.c.bf16 %v2284_v16, %v2268_v53  ;;  %3419 = vlog2.f32 %v2065_v19  ;;  %v2314_v51 = vsel %vm1866_vm15, %v6621_v41, %v2250_v22  ;;  %v2088_v6 = vmul.f32 0.6931472, %v5367_v39  ;;  %v3408_v24 = vpop.eup %3407  ;;  %v6624_v44 = vld [vmem:[#allocation44_spill] sm:$0xff]  ;;  %v6626_v39 = vld [vmem:[#allocation78_spill] sm:$0xff]  ;;  %v6628_v16 = vld [vmem:[#allocation7_spill] sm:$0xff] }
 0x2ed   :  { %v2120_v42 = vmul.f32 0.6931472, %v5433_v63  ;;  %vm1854_vm7 = vcmp.gt.f32.partialorder %v6622_v43, 20.0  ;;  %v2067_v53 = vadd.f32 1.0, %v3406_v26  ;;  %v2346_v25 = vpack.c.bf16 %v2314_v51, %v2298_v2  ;;  %v3410_v49 = vpop.eup %3409  ;;  %v6625_v19 = vld [vmem:[#allocation8_spill] sm:$0xff]  ;;  %v6627_v33 = vld [vmem:[#allocation2_spill] sm:$0xff] }
 0x2ee   :  { %2545 = vmatprep.subr.bf16.mxu1 %v2332_v1  ;;  %v2300_v61 = vsel %vm1852_vm0, %v6623_v55, %v2236_v37  ;;  %v2316_v5 = vsel %vm1868_vm2, %v6624_v44, %v2252_v48  ;;  %vm1856_vm8 = vcmp.gt.f32.partialorder %v6625_v19, 20.0  ;;  %vm1870_vm9 = vcmp.gt.f32.partialorder %v6626_v39, 20.0  ;;  %v3412_v2 = vpop.eup %3411  ;;  %v6630_v26 = vld [vmem:[#allocation24_spill] sm:$0xff]  ;;  %v6631_v41 = vld [vmem:[#allocation31_spill] sm:$0xff]  ;;  %v6641_v0 = vld [vmem:[#allocation34_spill] sm:$0xff] }
 0x2ef   :  { %v2066_v63 = vadd.f32 1.0, %v3408_v24  ;;  %v6629_v22 = vpack.c.bf16 %v6627_v33, %v6628_v16  ;;  %v2348_v1 = vpack.c.bf16 %v2316_v5, %v2300_v61  ;;  %v2206_v51 = vmul.f32 0.01, %v2088_v6  ;;  %2496 = vmatprep.subr.bf16.mxu0 %v2346_v25  ;;  %v6633_v55 = vld [vmem:[#allocation75_spill] sm:$0xff] }
 0x2f0   :  { %v2222_v40 = vmul.f32 0.01, %v2120_v42  ;;  %3421 = vlog2.f32 %v2067_v53  ;;  %v2068_v60 = vadd.f32 1.0, %v3410_v49  ;;  %v2092_v18 = vmul.f32 0.6931472, %v5375_v3  ;;  %v6634_v42 = vld [vmem:[#allocation27_spill] sm:$0xff]  ;;  %v3414_v3 = vpop.eup %3413 }
 0x2f1   :  { %2546 = vmatpush1.bf16.msra.mxu1 %v6629_v22  ;;  %v2124_v37 = vmul.f32 0.6931472, %v5484_v59  ;;  %vm1872_vm10 = vcmp.gt.f32.partialorder %v5352_v54, 20.0  ;;  %v2158_v48 = vmul.f32 0.6931472, %v3412_v2  ;;  %3423 = vlog2.f32 %v2066_v63  ;;  %v6635_v49 = vld [vmem:[#allocation3_spill] sm:$0xff] }
 0x2f2   :  { %2547 = vmatprep.subr.bf16.mxu1 %v2348_v1  ;;  %v6632_v24 = vpack.c.bf16 %v6630_v26, %v6631_v41  ;;  %v2270_v6 = vsel %vm1822_vm3, %v6633_v55, %v2206_v51  ;;  %v2286_v53 = vsel %vm1838_vm4, %v6634_v42, %v2222_v40  ;;  %vm1826_vm11 = vcmp.gt.f32.partialorder %v5431_v52, 20.0  ;;  %v6636_v63 = vld [vmem:[#allocation36_spill] sm:$0xff]  ;;  %v3416_v16 = vpop.eup %3415  ;;  %v6639_v1 = vld [vmem:[#allocation22_spill] sm:$0xff]  ;;  %v6644_v42 = vld [vmem:[#allocation9_spill] sm:$0xff] }
 0x2f3   :  { %vm1842_vm12 = vcmp.gt.f32.partialorder %v5462_v12, 20.0  ;;  %3425 = vlog2.f32 %v2068_v60  ;;  %v2334_v59 = vpack.c.bf16 %v2286_v53, %v2270_v6  ;;  %v2208_v25 = vmul.f32 0.01, %v2092_v18  ;;  %v3418_v60 = vpop.eup %3417  ;;  %v6646_v19 = vld [vmem:[#allocation11_spill] sm:$0xff]  ;;  %v6648_v52 = vld [vmem:[#allocation38_spill] sm:$0xff] }
 0x2f4   :  { %2497 = vmatpush1.bf16.msra.mxu0 %v6632_v24  ;;  %v2224_v61 = vmul.f32 0.01, %v2124_v37  ;;  %v2241_v44 = vmul.f32 0.01, %v2158_v48  ;;  %v2162_v5 = vmul.f32 0.6931472, %v3414_v3  ;;  %v6637_v33 = vpack.c.bf16 %v6635_v49, %v6636_v63 }
 0x2f5   :  { %v2152_v13 = vmul.f32 0.6931472, %v5490_v35  ;;  %2596 = vmatprep.subr.bf16.mxu0 %v2334_v59  ;;  %v2272_v22 = vsel %vm1824_vm5, %v6638_v58, %v2208_v25  ;;  %v2184_v40 = vmul.f32 0.6931472, %v5600_v56  ;;  %v2156_v2 = vmul.f32 0.6931472, %v5524_v10 }
 0x2f6   :  { %2548 = vmatpush1.bf16.msra.mxu1 %v6637_v33  ;;  %v2288_v51 = vsel %vm1840_vm6, %v6639_v1, %v2224_v61  ;;  %vm1828_vm13 = vcmp.gt.f32.partialorder %v5436_v32, 20.0  ;;  %vm1844_vm14 = vcmp.gt.f32.partialorder %v5482_v11, 20.0  ;;  %vm1857_vm15 = vcmp.gt.f32.partialorder %v5540_v29, 20.0  ;;  %v3420_v37 = vpop.eup %3419  ;;  %v6643_v24 = vld [vmem:[#allocation35_spill] sm:$0xff]  ;;  %v6647_v33 = vld [vmem:[#allocation14_spill] sm:$0xff] }
 0x2f7   :  { %2894 = vmatmul.mubr.msk.bf16.vlgmr.msra.gmra.mrb[72].mxu0 %vm1254_vm1, %v5537_v28  ;;  %vm1873_vm0 = vcmp.gt.f32.partialorder %v5581_v57, 20.0  ;;  %v2336_v35 = vpack.c.bf16 %v2288_v51, %v2272_v22  ;;  %v2238_v34 = vmul.f32 0.01, %v2152_v13  ;;  %v5750_v56 = vsel %vm1857_vm15, %v5505_v62, %v2241_v44  ;;  %v6645_v61 = vld [vmem:[#allocation39_spill] sm:$0xff] }
 0x2f8   :  { %2597 = vmatpush1.bf16.msra.mxu0 %v6640_v46  ;;  %2536 = vmatprep.mubr.bf16.mxu0 %v6588_v20  ;;  %vm1859_vm2 = vcmp.gt.f32.partialorder %v5543_v47, 20.0  ;;  %vm1875_vm3 = vcmp.gt.f32.partialorder %v5604_v4, 20.0  ;;  %v2254_v10 = vmul.f32 0.01, %v2184_v40  ;;  %v2188_v29 = vmul.f32 0.6931472, %v5610_v23 }
 0x2f9   :  { %2896 = vmatmul.mubr.msk.bf16.vlgmr.msra.gmra.mrb[72].mxu1 %vm1254_vm1, %v5537_v28  ;;  %v2240_v18 = vmul.f32 0.01, %v2156_v2  ;;  %v2243_v17 = vmul.f32 0.01, %v2162_v5  ;;  %2647 = vmatprep.subr.bf16.mxu1 %v2336_v35  ;;  %v2302_v62 = vsel %vm1854_vm7, %v6641_v0, %v2238_v34  ;;  %v2096_v48 = vmul.f32 0.6931472, %v5616_v9 }
 0x2fa   :  { %2587 = vmatprep.mubr.bf16.mxu1 %v6588_v20  ;;  %v2128_v26 = vmul.f32 0.6931472, %v5675_v14  ;;  %vm1858_vm4 = vcmp.gt.f32.partialorder %v5562_v27, 20.0  ;;  %v2190_v41 = vmul.f32 0.6931472, %v3420_v37  ;;  %v6642_v23 = vpack.c.bf16 %v5397_v7, %v5390_v31  ;;  %v3422_v59 = vpop.eup %3421  ;;  %v6651_v2 = vld [vmem:[#allocation19_spill] sm:$0xff] }
 0x2fb   :  { %v2318_v55 = vsel %vm1870_vm9, %v6643_v24, %v2254_v10  ;;  %v2256_v6 = vmul.f32 0.01, %v2188_v29  ;;  %v2304_v43 = vsel %vm1856_vm8, %v6644_v42, %v2240_v18  ;;  %v2210_v9 = vmul.f32 0.01, %v2096_v48  ;;  %v3424_v44 = vpop.eup %3423  ;;  %v6653_v10 = vld [vmem:[#allocation54_spill] sm:$0xff]  ;;  %v6654_v18 = vld [vmem:[#allocation52_spill] sm:$0xff] }
 0x2fc   :  { %2648 = vmatpush1.bf16.msra.mxu1 %v6642_v23  ;;  %v2350_v53 = vpack.c.bf16 %v2318_v55, %v2302_v62  ;;  %v2226_v3 = vmul.f32 0.01, %v2128_v26  ;;  %v2100_v14 = vmul.f32 0.6931472, %v5645_v38  ;;  %v2257_v25 = vmul.f32 0.01, %v2190_v41 }
 0x2fd   :  { %v2320_v31 = vsel %vm1872_vm10, %v6645_v61, %v2256_v6  ;;  %v2132_v7 = vmul.f32 0.6931472, %v5686_v36  ;;  %v2160_v39 = vmul.f32 0.6931472, %v3416_v16  ;;  %v2194_v5 = vmul.f32 0.6931472, %v3422_v59  ;;  %v3426_v13 = vpop.eup %3425 }
 0x2fe   :  { %2598 = vmatprep.subr.bf16.mxu0 %v2350_v53  ;;  %v2352_v49 = vpack.c.bf16 %v2320_v31, %v2304_v43  ;;  %v2274_v63 = vsel %vm1826_vm11, %v6646_v19, %v2210_v9  ;;  %v2290_v38 = vsel %vm1842_vm12, %v6647_v33, %v2226_v3  ;;  %v2321_v54 = vsel %vm1873_vm0, %v5569_v15, %v2257_v25  ;;  %v6650_v15 = vld [vmem:[#allocation21_spill] sm:$0xff]  ;;  %v6655_v37 = vld [vmem:[#allocation40_spill] sm:$0xff]  ;;  %v6657_v48 = vld [vmem:[#allocation74_spill] sm:$0xff] }
 0x2ff   :  { %2895 = vmatmul.mubr.msk.bf16.gmra.mrb[76].mxu0 %vm1254_vm1, %v5592_v8  ;;  %v2338_v36 = vpack.c.bf16 %v2290_v38, %v2274_v63  ;;  %v2212_v16 = vmul.f32 0.01, %v2100_v14  ;;  %v2228_v58 = vmul.f32 0.01, %v2132_v7  ;;  %v2353_v22 = vpack.c.bf16 %v2321_v54, %v5750_v56  ;;  %v6652_v56 = vld [vmem:[#allocation41_spill] sm:$0xff]  ;;  %v6658_v47 = vld [vmem:[#allocation18_spill] sm:$0xff] }
 0x300   :  { %v2259_v1 = vmul.f32 0.01, %v2194_v5  ;;  %2649 = vmatprep.subr.bf16.mxu1 %v2352_v49  ;;  %v6649_v51 = vpack.c.bf16 %v5495_v45, %v6648_v52  ;;  %v2192_v12 = vmul.f32 0.6931472, %v3424_v44  ;;  %v2242_v40 = vmul.f32 0.01, %v2160_v39  ;;  %2628 = vmatprep.mubr.bf16.mxu0 %v6588_v20 }
 0x301   :  { %2897 = vmatmul.mubr.msk.bf16.gmra.mrb[76].mxu1 %vm1254_vm1, %v5592_v8  ;;  %v2276_v57 = vsel %vm1828_vm13, %v6650_v15, %v2212_v16  ;;  %v2292_v35 = vsel %vm1844_vm14, %v6651_v2, %v2228_v58  ;;  %v2164_v46 = vmul.f32 0.6931472, %v3418_v60  ;;  %v2196_v34 = vmul.f32 0.6931472, %v3426_v13  ;;  %v6660_v4 = vld [vmem:[#allocation33_spill] sm:$0xff]  ;;  %v6662_v6 = vld [vmem:[#allocation15_spill] sm:$0xff] }
 0x302   :  { %2599 = vmatpush1.bf16.msra.mxu0 %v6649_v51  ;;  %v2307_v45 = vsel %vm1859_vm2, %v6652_v56, %v2243_v17  ;;  %v2323_v29 = vsel %vm1875_vm3, %v6653_v10, %v2259_v1  ;;  %v6656_v0 = vpack.c.bf16 %v6654_v18, %v6655_v37  ;;  %2679 = vmatprep.mubr.bf16.mxu1 %v6588_v20  ;;  %v2258_v62 = vmul.f32 0.01, %v2192_v12  ;;  %v6659_v17 = vld [vmem:[#allocation48_spill] sm:$0xff]  ;;  %v6661_v23 = vld [vmem:[#allocation77_spill] sm:$0xff] }
 0x303   :  { %v2340_v32 = vpack.c.bf16 %v2292_v35, %v2276_v57  ;;  %v2355_v11 = vpack.c.bf16 %v2323_v29, %v2307_v45  ;;  %vm1874_vm5 = vcmp.gt.f32.partialorder %v6657_v48, 20.0  ;;  %2698 = vmatprep.subr.bf16.mxu0 %v2338_v36  ;;  %v2244_v60 = vmul.f32 0.01, %v2164_v46  ;;  %v6663_v43 = vld [vmem:[#allocation17_spill] sm:$0xff]  ;;  %v6665_v27 = vld [vmem:[#allocation12_spill] sm:$0xff] }
 0x304   :  { %2650 = vmatpush1.bf16.msra.mxu1 %v6656_v0  ;;  %v2260_v26 = vmul.f32 0.01, %v2196_v34  ;;  %vm1860_vm6 = vcmp.gt.f32.partialorder %v6658_v47, 20.0  ;;  %vm1876_vm7 = vcmp.gt.f32.partialorder %v6659_v17, 20.0  ;;  %v2306_v41 = vsel %vm1858_vm4, %v6660_v4, %v2242_v40 }
 0x305   :  { %2749 = vmatprep.subr.bf16.mxu1 %v2340_v32  ;;  %v2322_v24 = vsel %vm1874_vm5, %v6661_v23, %v2258_v62  ;;  %v2308_v42 = vsel %vm1860_vm6, %v6662_v6, %v2244_v60  ;;  %v6664_v3 = vpack.c.bf16 %v5660_v50, %v5632_v21  ;;  %v6666_v14 = vpack.c.bf16 %v5667_v30, %v6665_v27  ;;  %v5849_v21 = vpop.permute.xlu0 %2365  ;;  %v5851_v30 = vpop.permute.xlu1 %2370 }
 0x306   :  { %v2354_v55 = vpack.c.bf16 %v2322_v24, %v2306_v41  ;;  %v2324_v53 = vsel %vm1876_vm7, %v6663_v43, %v2260_v26 }
 0x307   :  { %v2356_v9 = vpack.c.bf16 %v2324_v53, %v2308_v42  ;;  %2898 = vmatmul.mubr.msk.bf16.vlgmr.msra.gmra.mrb[80].mxu0 %vm1254_vm1, %v5537_v28 }
 0x308   :  { %2699 = vmatpush1.bf16.msra.mxu0 %v6664_v3  ;;  %2638 = vmatprep.mubr.bf16.mxu0 %v6588_v20 }
 0x309   :  { %2900 = vmatmul.mubr.msk.bf16.vlgmr.msra.gmra.mrb[80].mxu1 %vm1254_vm1, %v5537_v28  ;;  %2700 = vmatprep.subr.bf16.mxu0 %v2354_v55  ;;  %v5882_v38 = vpop.permute.xlu0 %2375 }
 0x30a   :  { %2750 = vmatpush1.bf16.msra.mxu1 %v6666_v14  ;;  %2689 = vmatprep.mubr.bf16.mxu1 %v6588_v20 }
 0x30b   :  { %2751 = vmatprep.subr.bf16.mxu1 %v2356_v9 }
 0x30c   :  { %2701 = vmatpush1.bf16.msra.mxu0 %v2353_v22 }
 0x30e   :  { %2752 = vmatpush1.bf16.msra.mxu1 %v2355_v11 }
 0x30f   :  { %2899 = vmatmul.mubr.msk.bf16.gmra.mrb[84].mxu0 %vm1254_vm1, %v5592_v8 }
 0x310   :  { %2730 = vmatprep.mubr.bf16.mxu0 %v6588_v20 }
 0x311   :  { %2901 = vmatmul.mubr.msk.bf16.gmra.mrb[84].mxu1 %vm1254_vm1, %v5592_v8 }
 0x312   :  { %2781 = vmatprep.mubr.bf16.mxu1 %v6588_v20 }
 0x317   :  { %2902 = vmatmul.mubr.msk.bf16.vlgmr.msra.gmra.mrb[88].mxu0 %vm1254_vm1, %v5537_v28 }
 0x318   :  { %2740 = vmatprep.mubr.bf16.mxu0 %v6588_v20 }
 0x319   :  { %2904 = vmatmul.mubr.msk.bf16.vlgmr.msra.gmra.mrb[88].mxu1 %vm1254_vm1, %v5537_v28 }
 0x31a   :  { %2791 = vmatprep.mubr.bf16.mxu1 %v6588_v20 }
 0x31f   :  { %2903 = vmatmul.mubr.msk.bf16.gmra.mrb[92].mxu0 %vm1254_vm1, %v5592_v8 }
 0x321   :  { %2905 = vmatmul.mubr.msk.bf16.gmra.mrb[92].mxu1 %vm1254_vm1, %v5592_v8 }
 0x3a9   :  { %v2426_v50 = vpop.f32.mrb[64].mxu0 }
 0x3aa   :  { %v2427_v59 = vadd.f32 %v2426_v50, %v5849_v21  ;;  %v2428_v25 = vpop.f32.mrb[65].mxu0 }
 0x3ab   :  { %v2477_v61 = vpop.f32.mrb[64].mxu1  ;;  %v2429_v31 = vadd.f32 %v2428_v25, %v5849_v21  ;;  %v2430_v28 = vpop.f32.mrb[66].mxu0 }
 0x3ac   :  { %2800 = vst [vmem:[%s6054_s7] sm:$0xff] %v2427_v59  ;;  %v2478_v20 = vadd.f32 %v2477_v61, %v5849_v21  ;;  %v2479_v7 = vpop.f32.mrb[65].mxu1  ;;  %v2431_v8 = vadd.f32 %v2430_v28, %v5851_v30  ;;  %v2432_v39 = vpop.f32.mrb[67].mxu0 }
 0x3ad   :  { %2801 = vst [vmem:[%s6054_s7 + $0x8] sm:$0xff] %v2429_v31  ;;  %v2480_v44 = vadd.f32 %v2479_v7, %v5849_v21  ;;  %v2481_v5 = vpop.f32.mrb[66].mxu1  ;;  %v2433_v49 = vadd.f32 %v2432_v39, %v5851_v30 }
 0x3ae   :  { %2802 = vst [vmem:[%s6054_s7 + $0x10] sm:$0xff] %v2478_v20  ;;  %2816 = vst [vmem:[%s6054_s7 + $0x80] sm:$0xff] %v2431_v8  ;;  %v2482_v19 = vadd.f32 %v2481_v5, %v5851_v30  ;;  %v2483_v63 = vpop.f32.mrb[67].mxu1 }
 0x3af   :  { %2803 = vst [vmem:[%s6054_s7 + $0x18] sm:$0xff] %v2480_v44  ;;  %2817 = vst [vmem:[%s6054_s7 + $0x88] sm:$0xff] %v2433_v49  ;;  %v2484_v33 = vadd.f32 %v2483_v63, %v5851_v30 }
 0x3b0   :  { %2818 = vst [vmem:[%s6054_s7 + $0x90] sm:$0xff] %v2482_v19 }
 0x3b1   :  { %2819 = vst [vmem:[%s6054_s7 + $0x98] sm:$0xff] %v2484_v33  ;;  %v2436_v13 = vpop.f32.mrb[68].mxu0 }
 0x3b2   :  { %v2437_v54 = vadd.f32 %v2436_v13, %v5882_v38  ;;  %v2438_v36 = vpop.f32.mrb[69].mxu0 }
 0x3b3   :  { %v2487_v16 = vpop.f32.mrb[68].mxu1  ;;  %v2439_v58 = vadd.f32 %v2438_v36, %v5882_v38  ;;  %v2440_v22 = vpop.f32.mrb[70].mxu0 }
 0x3b4   :  { %2832 = vst [vmem:[%s6054_s7 + $0x100] sm:$0xff] %v2437_v54  ;;  %v2488_v1 = vadd.f32 %v2487_v16, %v5882_v38  ;;  %v2489_v52 = vpop.f32.mrb[69].mxu1  ;;  %v2441_v51 = vpop.f32.mrb[71].mxu0 }
 0x3b5   :  { %2833 = vst [vmem:[%s6054_s7 + $0x108] sm:$0xff] %v2439_v58  ;;  %v2490_v12 = vadd.f32 %v2489_v52, %v5882_v38  ;;  %v2491_v40 = vpop.f32.mrb[70].mxu1 }
 0x3b6   :  { %2834 = vst [vmem:[%s6054_s7 + $0x110] sm:$0xff] %v2488_v1  ;;  %v2492_v15 = vpop.f32.mrb[71].mxu1 }
 0x3b7   :  { %2835 = vst [vmem:[%s6054_s7 + $0x118] sm:$0xff] %v2490_v12 }
 0x3ca   :  { %v2528_v57 = vpop.f32.mrb[72].mxu0 }
 0x3cb   :  { %v2529_v2 = vadd.f32 %v2528_v57, %v5849_v21  ;;  %v2530_v35 = vpop.f32.mrb[73].mxu0 }
 0x3cc   :  { %v2579_v46 = vpop.f32.mrb[72].mxu1  ;;  %v2531_v34 = vadd.f32 %v2530_v35, %v5849_v21  ;;  %v2532_v56 = vpop.f32.mrb[74].mxu0 }
 0x3cd   :  { %2804 = vst [vmem:[%s6054_s7 + $0x20] sm:$0xff] %v2529_v2  ;;  %v2580_v45 = vadd.f32 %v2579_v46, %v5849_v21  ;;  %v2581_v10 = vpop.f32.mrb[73].mxu1  ;;  %v2533_v29 = vadd.f32 %v2532_v56, %v5851_v30  ;;  %v2534_v18 = vpop.f32.mrb[75].mxu0 }
 0x3ce   :  { %2805 = vst [vmem:[%s6054_s7 + $0x28] sm:$0xff] %v2531_v34  ;;  %v2582_v37 = vadd.f32 %v2581_v10, %v5849_v21  ;;  %v2583_v0 = vpop.f32.mrb[74].mxu1  ;;  %v2535_v32 = vadd.f32 %v2534_v18, %v5851_v30 }
 0x3cf   :  { %2806 = vst [vmem:[%s6054_s7 + $0x30] sm:$0xff] %v2580_v45  ;;  %2820 = vst [vmem:[%s6054_s7 + $0xa0] sm:$0xff] %v2533_v29  ;;  %v2584_v62 = vadd.f32 %v2583_v0, %v5851_v30  ;;  %v2585_v11 = vpop.f32.mrb[75].mxu1 }
 0x3d0   :  { %2807 = vst [vmem:[%s6054_s7 + $0x38] sm:$0xff] %v2582_v37  ;;  %2821 = vst [vmem:[%s6054_s7 + $0xa8] sm:$0xff] %v2535_v32  ;;  %v2586_v48 = vadd.f32 %v2585_v11, %v5851_v30 }
 0x3d1   :  { %2822 = vst [vmem:[%s6054_s7 + $0xb0] sm:$0xff] %v2584_v62 }
 0x3d2   :  { %2823 = vst [vmem:[%s6054_s7 + $0xb8] sm:$0xff] %v2586_v48  ;;  %v2538_v60 = vpop.f32.mrb[76].mxu0 }
 0x3d3   :  { %v2539_v26 = vadd.f32 %v2538_v60, %v5882_v38  ;;  %v2540_v47 = vpop.f32.mrb[77].mxu0 }
 0x3d4   :  { %v2589_v17 = vpop.f32.mrb[76].mxu1  ;;  %v2541_v4 = vadd.f32 %v2540_v47, %v5882_v38  ;;  %v2542_v41 = vpop.f32.mrb[78].mxu0 }
 0x3d5   :  { %2836 = vst [vmem:[%s6054_s7 + $0x120] sm:$0xff] %v2539_v26  ;;  %v2590_v23 = vadd.f32 %v2589_v17, %v5882_v38  ;;  %v2591_v24 = vpop.f32.mrb[77].mxu1  ;;  %v2543_v55 = vpop.f32.mrb[79].mxu0 }
 0x3d6   :  { %2837 = vst [vmem:[%s6054_s7 + $0x128] sm:$0xff] %v2541_v4  ;;  %v2592_v6 = vadd.f32 %v2591_v24, %v5882_v38  ;;  %v2593_v42 = vpop.f32.mrb[78].mxu1 }
 0x3d7   :  { %2838 = vst [vmem:[%s6054_s7 + $0x130] sm:$0xff] %v2590_v23  ;;  %v2594_v43 = vpop.f32.mrb[79].mxu1 }
 0x3d8   :  { %2839 = vst [vmem:[%s6054_s7 + $0x138] sm:$0xff] %v2592_v6 }
 0x3da   :  { %v2630_v53 = vpop.f32.mrb[80].mxu0 }
 0x3db   :  { %v2631_v9 = vadd.f32 %v2630_v53, %v5849_v21  ;;  %v2632_v3 = vpop.f32.mrb[81].mxu0 }
 0x3dc   :  { %v2681_v27 = vpop.f32.mrb[80].mxu1  ;;  %v2633_v14 = vadd.f32 %v2632_v3, %v5849_v21  ;;  %v2634_v50 = vpop.f32.mrb[82].mxu0 }
 0x3dd   :  { %2808 = vst [vmem:[%s6054_s7 + $0x40] sm:$0xff] %v2631_v9  ;;  %v2682_v59 = vadd.f32 %v2681_v27, %v5849_v21  ;;  %v2683_v25 = vpop.f32.mrb[81].mxu1  ;;  %v2635_v61 = vadd.f32 %v2634_v50, %v5851_v30  ;;  %v2636_v31 = vpop.f32.mrb[83].mxu0 }
 0x3de   :  { %2809 = vst [vmem:[%s6054_s7 + $0x48] sm:$0xff] %v2633_v14  ;;  %v2684_v28 = vadd.f32 %v2683_v25, %v5849_v21  ;;  %v2685_v20 = vpop.f32.mrb[82].mxu1  ;;  %v2637_v7 = vadd.f32 %v2636_v31, %v5851_v30 }
 0x3df   :  { %2810 = vst [vmem:[%s6054_s7 + $0x50] sm:$0xff] %v2682_v59  ;;  %2824 = vst [vmem:[%s6054_s7 + $0xc0] sm:$0xff] %v2635_v61  ;;  %v2686_v8 = vadd.f32 %v2685_v20, %v5851_v30  ;;  %v2687_v39 = vpop.f32.mrb[83].mxu1 }
 0x3e0   :  { %2811 = vst [vmem:[%s6054_s7 + $0x58] sm:$0xff] %v2684_v28  ;;  %2825 = vst [vmem:[%s6054_s7 + $0xc8] sm:$0xff] %v2637_v7  ;;  %v2688_v44 = vadd.f32 %v2687_v39, %v5851_v30 }
 0x3e1   :  { %2826 = vst [vmem:[%s6054_s7 + $0xd0] sm:$0xff] %v2686_v8 }
 0x3e2   :  { %2827 = vst [vmem:[%s6054_s7 + $0xd8] sm:$0xff] %v2688_v44  ;;  %v2640_v5 = vpop.f32.mrb[84].mxu0 }
 0x3e3   :  { %v2641_v49 = vadd.f32 %v2640_v5, %v5882_v38  ;;  %v2642_v19 = vpop.f32.mrb[85].mxu0 }
 0x3e4   :  { %v2691_v63 = vpop.f32.mrb[84].mxu1  ;;  %v2643_v33 = vadd.f32 %v2642_v19, %v5882_v38  ;;  %v2644_v13 = vpop.f32.mrb[86].mxu0 }
 0x3e5   :  { %2840 = vst [vmem:[%s6054_s7 + $0x140] sm:$0xff] %v2641_v49  ;;  %v2692_v54 = vadd.f32 %v2691_v63, %v5882_v38  ;;  %v2693_v36 = vpop.f32.mrb[85].mxu1  ;;  %v2645_v16 = vpop.f32.mrb[87].mxu0 }
 0x3e6   :  { %2841 = vst [vmem:[%s6054_s7 + $0x148] sm:$0xff] %v2643_v33  ;;  %v2694_v58 = vadd.f32 %v2693_v36, %v5882_v38  ;;  %v2695_v22 = vpop.f32.mrb[86].mxu1 }
 0x3e7   :  { %2842 = vst [vmem:[%s6054_s7 + $0x150] sm:$0xff] %v2692_v54  ;;  %v2696_v1 = vpop.f32.mrb[87].mxu1 }
 0x3e8   :  { %2843 = vst [vmem:[%s6054_s7 + $0x158] sm:$0xff] %v2694_v58 }
 0x3ea   :  { %v2732_v52 = vpop.f32.mrb[88].mxu0 }
 0x3eb   :  { %v2733_v51 = vadd.f32 %v2732_v52, %v5849_v21  ;;  %v2734_v12 = vpop.f32.mrb[89].mxu0 }
 0x3ec   :  { %v2783_v40 = vpop.f32.mrb[88].mxu1  ;;  %v2735_v15 = vadd.f32 %v2734_v12, %v5849_v21  ;;  %v2736_v57 = vpop.f32.mrb[90].mxu0 }
 0x3ed   :  { %2812 = vst [vmem:[%s6054_s7 + $0x60] sm:$0xff] %v2733_v51  ;;  %v2784_v2 = vadd.f32 %v2783_v40, %v5849_v21  ;;  %v2785_v35 = vpop.f32.mrb[89].mxu1  ;;  %v2737_v46 = vadd.f32 %v2736_v57, %v5851_v30  ;;  %v2738_v34 = vpop.f32.mrb[91].mxu0 }
 0x3ee   :  { %2813 = vst [vmem:[%s6054_s7 + $0x68] sm:$0xff] %v2735_v15  ;;  %v2786_v56 = vadd.f32 %v2785_v35, %v5849_v21  ;;  %v2787_v45 = vpop.f32.mrb[90].mxu1  ;;  %v2739_v10 = vadd.f32 %v2738_v34, %v5851_v30 }
 0x3ef   :  { %2814 = vst [vmem:[%s6054_s7 + $0x70] sm:$0xff] %v2784_v2  ;;  %2828 = vst [vmem:[%s6054_s7 + $0xe0] sm:$0xff] %v2737_v46  ;;  %v2788_v29 = vadd.f32 %v2787_v45, %v5851_v30  ;;  %v2789_v18 = vpop.f32.mrb[91].mxu1 }
 0x3f0   :  { %2815 = vst [vmem:[%s6054_s7 + $0x78] sm:$0xff] %v2786_v56  ;;  %2829 = vst [vmem:[%s6054_s7 + $0xe8] sm:$0xff] %v2739_v10  ;;  %v2790_v21 = vadd.f32 %v2789_v18, %v5851_v30 }
 0x3f1   :  { %2830 = vst [vmem:[%s6054_s7 + $0xf0] sm:$0xff] %v2788_v29 }
 0x3f2   :  { %2831 = vst [vmem:[%s6054_s7 + $0xf8] sm:$0xff] %v2790_v21  ;;  %v2742_v37 = vpop.f32.mrb[92].mxu0 }
 0x3f3   :  { %v2743_v0 = vadd.f32 %v2742_v37, %v5882_v38  ;;  %v2744_v32 = vpop.f32.mrb[93].mxu0 }
 0x3f4   :  { %v2793_v62 = vpop.f32.mrb[92].mxu1  ;;  %v2745_v11 = vadd.f32 %v2744_v32, %v5882_v38  ;;  %v2746_v48 = vpop.f32.mrb[94].mxu0 }
 0x3f5   :  { %2844 = vst [vmem:[%s6054_s7 + $0x160] sm:$0xff] %v2743_v0  ;;  %v2794_v30 = vadd.f32 %v2793_v62, %v5882_v38  ;;  %v2795_v60 = vpop.f32.mrb[93].mxu1  ;;  %v2747_v26 = vpop.f32.mrb[95].mxu0 }
 0x3f6   :  { %2845 = vst [vmem:[%s6054_s7 + $0x168] sm:$0xff] %v2745_v11  ;;  %v2796_v47 = vadd.f32 %v2795_v60, %v5882_v38  ;;  %v2797_v17 = vpop.f32.mrb[94].mxu1 }
 0x3f7   :  { %2846 = vst [vmem:[%s6054_s7 + $0x170] sm:$0xff] %v2794_v30  ;;  %v2798_v4 = vpop.f32.mrb[95].mxu1 }
 0x3f8   :  { %2847 = vst [vmem:[%s6054_s7 + $0x178] sm:$0xff] %v2796_v47 }

</bundles_post_ra>
